<compile_context>
chip_gen: v5e
topology: v5e:2x2
jax: 0.10.0
libtpu: 0.0.40
codegen_flags: <defaults>
</compile_context>

<pallas_src>
import jax
import jax.numpy as jnp
from jax.experimental import pallas as pl
from jax.experimental.pallas import tpu as pltpu

N_KNOTS = 8
N_BINS = 16
IN_DIM = 32
K = N_KNOTS + 1            # spline bins / params per group = 9
OUT_DIM = 3 * K            # 27
E = N_BINS + 1             # 17 evaluation edges


def _rcp(v):
    """Approximate EUP reciprocal refined with one Newton step (~2^-22 rel err)."""
    r = pl.reciprocal(v, approx=True)
    return r * (2.0 - v * r)


def _softplus(z):
    # Stable softplus; the +1e-4 floor applied by the caller makes the
    # log-vs-log1p difference numerically irrelevant here, so keep the
    # known-good lowering.
    return jnp.maximum(z, 0.0) + jnp.log(1.0 + jnp.exp(-jnp.abs(z)))


def _rqspline_kernel(edges_ref, t_ref, h_ref,
                     ww_ref, wh_ref, wd_ref,
                     bw_ref, bh_ref, bd_ref,
                     out_ref):
    h = h_ref[...]                      # (TB, IN_DIM) f32
    x = edges_ref[...]                  # (1, E) evaluation edges
    T = t_ref[...]                      # (K, K+1) strictly-lower-triangular ones

    # ---- Linear projection (MXU), one dot per lane-aligned parameter group ----
    w_p = _softplus(jnp.dot(h, ww_ref[...], preferred_element_type=jnp.float32)
                    + bw_ref[...]) + 1e-4          # (TB, K) unnormalized widths
    h_p = _softplus(jnp.dot(h, wh_ref[...], preferred_element_type=jnp.float32)
                    + bh_ref[...]) + 1e-4          # (TB, K) unnormalized heights
    d_p = _softplus(jnp.dot(h, wd_ref[...], preferred_element_type=jnp.float32)
                    + bd_ref[...]) + 1e-4          # (TB, K) knot derivatives

    # ---- zero-padded cumsum as a tiny MXU matmul; normalize by the total
    #      (last cumsum column) so the separate lane-reduce + divide is avoided.
    cumx_r = jnp.dot(w_p, T, preferred_element_type=jnp.float32)   # (TB, K+1)
    cumy_r = jnp.dot(h_p, T, preferred_element_type=jnp.float32)   # (TB, K+1)
    cumx = cumx_r * _rcp(cumx_r[:, K:K + 1])
    cumy = cumy_r * _rcp(cumy_r[:, K:K + 1])

    # ---- gather-then-evaluate-once ----
    # bin_idx(x) = clamp(#{i: cumx[:, i+1] < x}, K-1).  cumx is monotone, so the
    # per-bin one-hot mask is  I_k AND NOT I_{k+1}  with I_k = (cumx[:,k] < x),
    # I_0 = True, and the last bin just I_{K-1} (the clamp).
    TB = h.shape[0]
    zeros = jnp.zeros((TB, E), jnp.float32)
    acc_cx, acc_cy = zeros, zeros
    acc_w, acc_h = zeros, zeros
    acc_dlo, acc_dhi = zeros, zeros

    i_prev = jnp.ones_like(x)           # indicator I_0 == True
    for k in range(K):
        if k < K - 1:
            i_next = (cumx[:, k + 1:k + 2] < x).astype(jnp.float32)
            m = i_prev * (1.0 - i_next)
            i_prev = i_next
        else:
            m = i_prev                  # clamp to the last bin

        cx_lo = cumx[:, k:k + 1]
        cx_hi = cumx[:, k + 1:k + 2]
        cy_lo = cumy[:, k:k + 1]
        cy_hi = cumy[:, k + 1:k + 2]

        acc_cx = acc_cx + m * cx_lo
        acc_cy = acc_cy + m * cy_lo
        acc_w = acc_w + m * (cx_hi - cx_lo)
        acc_h = acc_h + m * (cy_hi - cy_lo)
        # derivatives padded with 1.0 at the left end: d_pad[k], d_pad[k+1]
        acc_dlo = acc_dlo + (m if k == 0 else m * d_p[:, k - 1:k])
        acc_dhi = acc_dhi + m * d_p[:, k:k + 1]

    # Evaluate the rational-quadratic spline once on the gathered quantities.
    inv_w = _rcp(acc_w)
    delta = acc_h * inv_w
    theta = (x - acc_cx) * inv_w
    tomt = theta * (1.0 - theta)
    numer = acc_h * (delta * theta * theta + acc_dlo * tomt)
    denom = delta + (acc_dlo + acc_dhi - 2.0 * delta) * tomt
    F_edges = acc_cy + numer * _rcp(denom)          # (TB, E)

    probs = F_edges[:, 1:] - F_edges[:, :-1]        # (TB, N_BINS)
    out_ref[...] = jnp.log(jnp.maximum(probs, 1e-8))


def _round_up(v, m):
    return (v + m - 1) // m * m


def rqspline_head(h, W, b, *, block_b=512):
    """Forward pass.  h: (B, IN_DIM), W: (IN_DIM, 3K), b: (3K,) -> (B, N_BINS)."""
    B, in_dim = h.shape
    h = h.astype(jnp.float32)
    W = W.astype(jnp.float32)
    b = b.astype(jnp.float32)

    # Sublane-aligned batch tile; pad the batch to a multiple of it.
    TB = _round_up(max(8, min(block_b, _round_up(B, 8))), 8)
    Bp = _round_up(B, TB)
    if Bp != B:
        h = jnp.pad(h, ((0, Bp - B), (0, 0)))       # zero rows give finite output

    # Lane-aligned parameter groups (one dot per group inside the kernel).
    Ww, Wh, Wd = W[:, 0:K], W[:, K:2 * K], W[:, 2 * K:3 * K]
    bw = b[0:K].reshape(1, K)
    bh = b[K:2 * K].reshape(1, K)
    bd = b[2 * K:3 * K].reshape(1, K)

    # Constants hoisted out of the per-step kernel body.
    T = (jnp.arange(K, dtype=jnp.int32)[:, None]
         < jnp.arange(K + 1, dtype=jnp.int32)[None, :]).astype(jnp.float32)
    edges = (jnp.arange(E, dtype=jnp.float32) / float(N_BINS)).reshape(1, E)

    out = pl.pallas_call(
        _rqspline_kernel,
        out_shape=jax.ShapeDtypeStruct((Bp, N_BINS), jnp.float32),
        grid_spec=pltpu.PrefetchScalarGridSpec(
            num_scalar_prefetch=0,
            grid=(Bp // TB,),
            in_specs=[
                pl.BlockSpec((1, E), lambda i: (0, 0)),          # edges
                pl.BlockSpec((K, K + 1), lambda i: (0, 0)),      # cumsum matrix
                pl.BlockSpec((TB, in_dim), lambda i: (i, 0)),    # h tile
                pl.BlockSpec((in_dim, K), lambda i: (0, 0)),     # W_w
                pl.BlockSpec((in_dim, K), lambda i: (0, 0)),     # W_h
                pl.BlockSpec((in_dim, K), lambda i: (0, 0)),     # W_d
                pl.BlockSpec((1, K), lambda i: (0, 0)),          # b_w
                pl.BlockSpec((1, K), lambda i: (0, 0)),          # b_h
                pl.BlockSpec((1, K), lambda i: (0, 0)),          # b_d
            ],
            out_specs=pl.BlockSpec((TB, N_BINS), lambda i: (i, 0)),
        ),
        compiler_params=pltpu.CompilerParams(
            dimension_semantics=("parallel",)),     # lets v7x shard across its 2 TCs
    )(edges, T, h, Ww, Wh, Wd, bw, bh, bd)

    return out[:B] if Bp != B else out


def rqspline_ref(h, W, b):
    """Pure-JAX reference mirroring the PyTorch module."""
    params = jax.nn.softplus(h @ W + b) + 1e-4
    w_, h_, d_ = jnp.split(params, 3, axis=-1)
    w_ = w_ / w_.sum(-1, keepdims=True)
    h_ = h_ / h_.sum(-1, keepdims=True)
    cumx = jnp.pad(jnp.cumsum(w_, -1), ((0, 0), (1, 0)))
    cumy = jnp.pad(jnp.cumsum(h_, -1), ((0, 0), (1, 0)))
    d = jnp.pad(d_, ((0, 0), (1, 1)), constant_values=1.0)
    B = h.shape[0]
    edges = jnp.broadcast_to(jnp.linspace(0.0, 1.0, N_BINS + 1)[None, :], (B, N_BINS + 1))
    widths = cumx[:, 1:] - cumx[:, :-1]
    heights = cumy[:, 1:] - cumy[:, :-1]
    delta = heights / widths
    bin_idx = jnp.sum(cumx[:, None, 1:] < edges[:, :, None], axis=-1)
    bin_idx = jnp.minimum(bin_idx, K - 1)
    g = lambda a: jnp.take_along_axis(a, bin_idx, axis=-1)
    in_cx, in_cy = g(cumx), g(cumy)
    in_w, in_h, in_delta = g(widths), g(heights), g(delta)
    in_d = jnp.take_along_axis(d, bin_idx, axis=-1)
    in_d1 = jnp.take_along_axis(d, bin_idx + 1, axis=-1)
    theta = (edges - in_cx) / in_w
    tomt = theta * (1.0 - theta)
    num = in_h * (in_delta * theta ** 2 + in_d * tomt)
    den = in_delta + (in_d + in_d1 - 2.0 * in_delta) * tomt
    F_edges = in_cy + num / den
    probs = F_edges[:, 1:] - F_edges[:, :-1]
    return jnp.log(jnp.maximum(probs, 1e-8))


if __name__ == "__main__":
    key = jax.random.PRNGKey(0)
    k1, k2, k3 = jax.random.split(key, 3)
    bound = 1.0 / (IN_DIM ** 0.5)
    BATCH = 60   # small, deliberately not a multiple of the tile to exercise padding
    h = jax.random.normal(k1, (BATCH, IN_DIM), jnp.float32)
    W = jax.random.uniform(k2, (IN_DIM, OUT_DIM), jnp.float32, -bound, bound)
    b = jax.random.uniform(k3, (OUT_DIM,), jnp.float32, -bound, bound)

    # block_b=32 -> padded batch 64, grid=(2,): exercises the tiled/padded path.
    out = jax.block_until_ready(rqspline_head(h, W, b, block_b=32))
    ref = rqspline_ref(h, W, b)

    assert out.shape == (BATCH, N_BINS), out.shape
    max_err = float(jnp.max(jnp.abs(out - ref)))
    assert jnp.allclose(out, ref, atol=1e-3, rtol=1e-3), max_err
    print("KERNEL_OK")
</pallas_src>

<mosaic_0001>
module attributes {stable_mosaic.version = 11 : i64} {
  func.func @_rqspline_kernel(%arg0: i32, %arg1: memref<1x17xf32, #tpu.memory_space<vmem>>, %arg2: memref<9x10xf32, #tpu.memory_space<vmem>>, %arg3: memref<32x32xf32, #tpu.memory_space<vmem>>, %arg4: memref<32x9xf32, #tpu.memory_space<vmem>>, %arg5: memref<32x9xf32, #tpu.memory_space<vmem>>, %arg6: memref<32x9xf32, #tpu.memory_space<vmem>>, %arg7: memref<1x9xf32, #tpu.memory_space<vmem>>, %arg8: memref<1x9xf32, #tpu.memory_space<vmem>>, %arg9: memref<1x9xf32, #tpu.memory_space<vmem>>, %arg10: memref<32x16xf32, #tpu.memory_space<vmem>>) attributes {dimension_semantics = [#tpu.dimension_semantics<parallel>], iteration_bounds = array<i64: 2>, scalar_prefetch = 0 : i64, scratch_operands = 0 : i64, tpu.core_type = #tpu.core_type<tc>, window_params = [{pipeline_mode = #tpu.pipeline_mode<synchronous>, transform_indices = @transform_0, window_bounds = array<i64: 1, 17>}, {pipeline_mode = #tpu.pipeline_mode<synchronous>, transform_indices = @transform_1, window_bounds = array<i64: 9, 10>}, {transform_indices = @transform_2, window_bounds = array<i64: 32, 32>}, {pipeline_mode = #tpu.pipeline_mode<synchronous>, transform_indices = @transform_3, window_bounds = array<i64: 32, 9>}, {pipeline_mode = #tpu.pipeline_mode<synchronous>, transform_indices = @transform_4, window_bounds = array<i64: 32, 9>}, {pipeline_mode = #tpu.pipeline_mode<synchronous>, transform_indices = @transform_5, window_bounds = array<i64: 32, 9>}, {pipeline_mode = #tpu.pipeline_mode<synchronous>, transform_indices = @transform_6, window_bounds = array<i64: 1, 9>}, {pipeline_mode = #tpu.pipeline_mode<synchronous>, transform_indices = @transform_7, window_bounds = array<i64: 1, 9>}, {pipeline_mode = #tpu.pipeline_mode<synchronous>, transform_indices = @transform_8, window_bounds = array<i64: 1, 9>}, {transform_indices = @transform_9, window_bounds = array<i64: 32, 16>}]} {
    %c0 = arith.constant 0 : index
    %c0_0 = arith.constant 0 : index
    %0 = vector.load %arg3[%c0, %c0_0] : memref<32x32xf32, #tpu.memory_space<vmem>>, vector<32x32xf32>
    %c0_1 = arith.constant 0 : index
    %c0_2 = arith.constant 0 : index
    %1 = vector.load %arg1[%c0_1, %c0_2] : memref<1x17xf32, #tpu.memory_space<vmem>>, vector<1x17xf32>
    %c0_3 = arith.constant 0 : index
    %c0_4 = arith.constant 0 : index
    %2 = vector.load %arg2[%c0_3, %c0_4] : memref<9x10xf32, #tpu.memory_space<vmem>>, vector<9x10xf32>
    %c0_5 = arith.constant 0 : index
    %c0_6 = arith.constant 0 : index
    %3 = vector.load %arg4[%c0_5, %c0_6] : memref<32x9xf32, #tpu.memory_space<vmem>>, vector<32x9xf32>
    %cst = arith.constant dense<0.000000e+00> : vector<32x9xf32>
    %4 = tpu.matmul %0, %3, %cst {dimension_numbers = #tpu.dot_dimension_numbers<[1], [0], [0], [1], [0, 0, 1, 1], [], []>} : vector<32x32xf32>, vector<32x9xf32>, vector<32x9xf32> -> vector<32x9xf32>
    %c0_7 = arith.constant 0 : index
    %c0_8 = arith.constant 0 : index
    %5 = vector.load %arg7[%c0_7, %c0_8] : memref<1x9xf32, #tpu.memory_space<vmem>>, vector<1x9xf32>
    %6 = vector.broadcast %5 : vector<1x9xf32> to vector<32x9xf32>
    %7 = arith.addf %4, %6 : vector<32x9xf32>
    %cst_9 = arith.constant 0.000000e+00 : f32
    %8 = vector.broadcast %cst_9 : f32 to vector<32x9xf32>
    %9 = arith.maximumf %7, %8 : vector<32x9xf32>
    %10 = math.absf %7 : vector<32x9xf32>
    %cst_10 = arith.constant 0.000000e+00 : f32
    %11 = vector.broadcast %cst_10 : f32 to vector<32x9xf32>
    %12 = arith.subf %11, %10 : vector<32x9xf32>
    %13 = math.exp %12 : vector<32x9xf32>
    %cst_11 = arith.constant 1.000000e+00 : f32
    %14 = vector.broadcast %cst_11 : f32 to vector<32x9xf32>
    %15 = arith.addf %14, %13 : vector<32x9xf32>
    %16 = math.log %15 : vector<32x9xf32>
    %17 = arith.addf %9, %16 : vector<32x9xf32>
    %cst_12 = arith.constant 9.99999974E-5 : f32
    %18 = vector.broadcast %cst_12 : f32 to vector<32x9xf32>
    %19 = arith.addf %17, %18 : vector<32x9xf32>
    %c0_13 = arith.constant 0 : index
    %c0_14 = arith.constant 0 : index
    %20 = vector.load %arg5[%c0_13, %c0_14] : memref<32x9xf32, #tpu.memory_space<vmem>>, vector<32x9xf32>
    %cst_15 = arith.constant dense<0.000000e+00> : vector<32x9xf32>
    %21 = tpu.matmul %0, %20, %cst_15 {dimension_numbers = #tpu.dot_dimension_numbers<[1], [0], [0], [1], [0, 0, 1, 1], [], []>} : vector<32x32xf32>, vector<32x9xf32>, vector<32x9xf32> -> vector<32x9xf32>
    %c0_16 = arith.constant 0 : index
    %c0_17 = arith.constant 0 : index
    %22 = vector.load %arg8[%c0_16, %c0_17] : memref<1x9xf32, #tpu.memory_space<vmem>>, vector<1x9xf32>
    %23 = vector.broadcast %22 : vector<1x9xf32> to vector<32x9xf32>
    %24 = arith.addf %21, %23 : vector<32x9xf32>
    %cst_18 = arith.constant 0.000000e+00 : f32
    %25 = vector.broadcast %cst_18 : f32 to vector<32x9xf32>
    %26 = arith.maximumf %24, %25 : vector<32x9xf32>
    %27 = math.absf %24 : vector<32x9xf32>
    %cst_19 = arith.constant 0.000000e+00 : f32
    %28 = vector.broadcast %cst_19 : f32 to vector<32x9xf32>
    %29 = arith.subf %28, %27 : vector<32x9xf32>
    %30 = math.exp %29 : vector<32x9xf32>
    %cst_20 = arith.constant 1.000000e+00 : f32
    %31 = vector.broadcast %cst_20 : f32 to vector<32x9xf32>
    %32 = arith.addf %31, %30 : vector<32x9xf32>
    %33 = math.log %32 : vector<32x9xf32>
    %34 = arith.addf %26, %33 : vector<32x9xf32>
    %cst_21 = arith.constant 9.99999974E-5 : f32
    %35 = vector.broadcast %cst_21 : f32 to vector<32x9xf32>
    %36 = arith.addf %34, %35 : vector<32x9xf32>
    %c0_22 = arith.constant 0 : index
    %c0_23 = arith.constant 0 : index
    %37 = vector.load %arg6[%c0_22, %c0_23] : memref<32x9xf32, #tpu.memory_space<vmem>>, vector<32x9xf32>
    %cst_24 = arith.constant dense<0.000000e+00> : vector<32x9xf32>
    %38 = tpu.matmul %0, %37, %cst_24 {dimension_numbers = #tpu.dot_dimension_numbers<[1], [0], [0], [1], [0, 0, 1, 1], [], []>} : vector<32x32xf32>, vector<32x9xf32>, vector<32x9xf32> -> vector<32x9xf32>
    %c0_25 = arith.constant 0 : index
    %c0_26 = arith.constant 0 : index
    %39 = vector.load %arg9[%c0_25, %c0_26] : memref<1x9xf32, #tpu.memory_space<vmem>>, vector<1x9xf32>
    %40 = vector.broadcast %39 : vector<1x9xf32> to vector<32x9xf32>
    %41 = arith.addf %38, %40 : vector<32x9xf32>
    %cst_27 = arith.constant 0.000000e+00 : f32
    %42 = vector.broadcast %cst_27 : f32 to vector<32x9xf32>
    %43 = arith.maximumf %41, %42 : vector<32x9xf32>
    %44 = math.absf %41 : vector<32x9xf32>
    %cst_28 = arith.constant 0.000000e+00 : f32
    %45 = vector.broadcast %cst_28 : f32 to vector<32x9xf32>
    %46 = arith.subf %45, %44 : vector<32x9xf32>
    %47 = math.exp %46 : vector<32x9xf32>
    %cst_29 = arith.constant 1.000000e+00 : f32
    %48 = vector.broadcast %cst_29 : f32 to vector<32x9xf32>
    %49 = arith.addf %48, %47 : vector<32x9xf32>
    %50 = math.log %49 : vector<32x9xf32>
    %51 = arith.addf %43, %50 : vector<32x9xf32>
    %cst_30 = arith.constant 9.99999974E-5 : f32
    %52 = vector.broadcast %cst_30 : f32 to vector<32x9xf32>
    %53 = arith.addf %51, %52 : vector<32x9xf32>
    %cst_31 = arith.constant dense<0.000000e+00> : vector<32x10xf32>
    %54 = tpu.matmul %19, %2, %cst_31 {dimension_numbers = #tpu.dot_dimension_numbers<[1], [0], [0], [1], [0, 0, 1, 1], [], []>} : vector<32x9xf32>, vector<9x10xf32>, vector<32x10xf32> -> vector<32x10xf32>
    %cst_32 = arith.constant dense<0.000000e+00> : vector<32x10xf32>
    %55 = tpu.matmul %36, %2, %cst_32 {dimension_numbers = #tpu.dot_dimension_numbers<[1], [0], [0], [1], [0, 0, 1, 1], [], []>} : vector<32x9xf32>, vector<9x10xf32>, vector<32x10xf32> -> vector<32x10xf32>
    %56 = vector.extract_strided_slice %54 {offsets = [0, 9], sizes = [32, 1], strides = [1, 1]} : vector<32x10xf32> to vector<32x1xf32>
    %57 = tpu.reciprocal %56 {approx = true} : vector<32x1xf32> -> vector<32x1xf32>
    %58 = arith.mulf %56, %57 : vector<32x1xf32>
    %cst_33 = arith.constant 2.000000e+00 : f32
    %59 = vector.broadcast %cst_33 : f32 to vector<32x1xf32>
    %60 = arith.subf %59, %58 : vector<32x1xf32>
    %61 = arith.mulf %57, %60 : vector<32x1xf32>
    %62 = vector.broadcast %61 : vector<32x1xf32> to vector<32x10xf32>
    %63 = arith.mulf %54, %62 : vector<32x10xf32>
    %64 = vector.extract_strided_slice %55 {offsets = [0, 9], sizes = [32, 1], strides = [1, 1]} : vector<32x10xf32> to vector<32x1xf32>
    %65 = tpu.reciprocal %64 {approx = true} : vector<32x1xf32> -> vector<32x1xf32>
    %66 = arith.mulf %64, %65 : vector<32x1xf32>
    %cst_34 = arith.constant 2.000000e+00 : f32
    %67 = vector.broadcast %cst_34 : f32 to vector<32x1xf32>
    %68 = arith.subf %67, %66 : vector<32x1xf32>
    %69 = arith.mulf %65, %68 : vector<32x1xf32>
    %70 = vector.broadcast %69 : vector<32x1xf32> to vector<32x10xf32>
    %71 = arith.mulf %55, %70 : vector<32x10xf32>
    %cst_35 = arith.constant 0.000000e+00 : f32
    %72 = vector.broadcast %cst_35 : f32 to vector<32x17xf32>
    %cst_36 = arith.constant 1.000000e+00 : f32
    %73 = vector.broadcast %cst_36 : f32 to vector<1x17xf32>
    %74 = vector.extract_strided_slice %63 {offsets = [0, 1], sizes = [32, 1], strides = [1, 1]} : vector<32x10xf32> to vector<32x1xf32>
    %75 = vector.broadcast %74 : vector<32x1xf32> to vector<32x17xf32>
    %76 = vector.broadcast %1 : vector<1x17xf32> to vector<32x17xf32>
    %77 = arith.cmpf olt, %75, %76 : vector<32x17xf32>
    %78 = arith.extui %77 : vector<32x17xi1> to vector<32x17xi32>
    %79 = arith.sitofp %78 : vector<32x17xi32> to vector<32x17xf32>
    %cst_37 = arith.constant 1.000000e+00 : f32
    %80 = vector.broadcast %cst_37 : f32 to vector<32x17xf32>
    %81 = arith.subf %80, %79 : vector<32x17xf32>
    %82 = vector.broadcast %73 : vector<1x17xf32> to vector<32x17xf32>
    %83 = arith.mulf %82, %81 : vector<32x17xf32>
    %84 = vector.extract_strided_slice %63 {offsets = [0, 0], sizes = [32, 1], strides = [1, 1]} : vector<32x10xf32> to vector<32x1xf32>
    %85 = vector.extract_strided_slice %63 {offsets = [0, 1], sizes = [32, 1], strides = [1, 1]} : vector<32x10xf32> to vector<32x1xf32>
    %86 = vector.extract_strided_slice %71 {offsets = [0, 0], sizes = [32, 1], strides = [1, 1]} : vector<32x10xf32> to vector<32x1xf32>
    %87 = vector.extract_strided_slice %71 {offsets = [0, 1], sizes = [32, 1], strides = [1, 1]} : vector<32x10xf32> to vector<32x1xf32>
    %88 = vector.broadcast %84 : vector<32x1xf32> to vector<32x17xf32>
    %89 = arith.mulf %83, %88 : vector<32x17xf32>
    %90 = arith.addf %72, %89 : vector<32x17xf32>
    %91 = vector.broadcast %86 : vector<32x1xf32> to vector<32x17xf32>
    %92 = arith.mulf %83, %91 : vector<32x17xf32>
    %93 = arith.addf %72, %92 : vector<32x17xf32>
    %94 = arith.subf %85, %84 : vector<32x1xf32>
    %95 = vector.broadcast %94 : vector<32x1xf32> to vector<32x17xf32>
    %96 = arith.mulf %83, %95 : vector<32x17xf32>
    %97 = arith.addf %72, %96 : vector<32x17xf32>
    %98 = arith.subf %87, %86 : vector<32x1xf32>
    %99 = vector.broadcast %98 : vector<32x1xf32> to vector<32x17xf32>
    %100 = arith.mulf %83, %99 : vector<32x17xf32>
    %101 = arith.addf %72, %100 : vector<32x17xf32>
    %102 = arith.addf %72, %83 : vector<32x17xf32>
    %103 = vector.extract_strided_slice %53 {offsets = [0, 0], sizes = [32, 1], strides = [1, 1]} : vector<32x9xf32> to vector<32x1xf32>
    %104 = vector.broadcast %103 : vector<32x1xf32> to vector<32x17xf32>
    %105 = arith.mulf %83, %104 : vector<32x17xf32>
    %106 = arith.addf %72, %105 : vector<32x17xf32>
    %107 = vector.extract_strided_slice %63 {offsets = [0, 2], sizes = [32, 1], strides = [1, 1]} : vector<32x10xf32> to vector<32x1xf32>
    %108 = vector.broadcast %107 : vector<32x1xf32> to vector<32x17xf32>
    %109 = vector.broadcast %1 : vector<1x17xf32> to vector<32x17xf32>
    %110 = arith.cmpf olt, %108, %109 : vector<32x17xf32>
    %111 = arith.extui %110 : vector<32x17xi1> to vector<32x17xi32>
    %112 = arith.sitofp %111 : vector<32x17xi32> to vector<32x17xf32>
    %cst_38 = arith.constant 1.000000e+00 : f32
    %113 = vector.broadcast %cst_38 : f32 to vector<32x17xf32>
    %114 = arith.subf %113, %112 : vector<32x17xf32>
    %115 = arith.mulf %79, %114 : vector<32x17xf32>
    %116 = vector.extract_strided_slice %63 {offsets = [0, 1], sizes = [32, 1], strides = [1, 1]} : vector<32x10xf32> to vector<32x1xf32>
    %117 = vector.extract_strided_slice %63 {offsets = [0, 2], sizes = [32, 1], strides = [1, 1]} : vector<32x10xf32> to vector<32x1xf32>
    %118 = vector.extract_strided_slice %71 {offsets = [0, 1], sizes = [32, 1], strides = [1, 1]} : vector<32x10xf32> to vector<32x1xf32>
    %119 = vector.extract_strided_slice %71 {offsets = [0, 2], sizes = [32, 1], strides = [1, 1]} : vector<32x10xf32> to vector<32x1xf32>
    %120 = vector.broadcast %116 : vector<32x1xf32> to vector<32x17xf32>
    %121 = arith.mulf %115, %120 : vector<32x17xf32>
    %122 = arith.addf %90, %121 : vector<32x17xf32>
    %123 = vector.broadcast %118 : vector<32x1xf32> to vector<32x17xf32>
    %124 = arith.mulf %115, %123 : vector<32x17xf32>
    %125 = arith.addf %93, %124 : vector<32x17xf32>
    %126 = arith.subf %117, %116 : vector<32x1xf32>
    %127 = vector.broadcast %126 : vector<32x1xf32> to vector<32x17xf32>
    %128 = arith.mulf %115, %127 : vector<32x17xf32>
    %129 = arith.addf %97, %128 : vector<32x17xf32>
    %130 = arith.subf %119, %118 : vector<32x1xf32>
    %131 = vector.broadcast %130 : vector<32x1xf32> to vector<32x17xf32>
    %132 = arith.mulf %115, %131 : vector<32x17xf32>
    %133 = arith.addf %101, %132 : vector<32x17xf32>
    %134 = vector.extract_strided_slice %53 {offsets = [0, 0], sizes = [32, 1], strides = [1, 1]} : vector<32x9xf32> to vector<32x1xf32>
    %135 = vector.broadcast %134 : vector<32x1xf32> to vector<32x17xf32>
    %136 = arith.mulf %115, %135 : vector<32x17xf32>
    %137 = arith.addf %102, %136 : vector<32x17xf32>
    %138 = vector.extract_strided_slice %53 {offsets = [0, 1], sizes = [32, 1], strides = [1, 1]} : vector<32x9xf32> to vector<32x1xf32>
    %139 = vector.broadcast %138 : vector<32x1xf32> to vector<32x17xf32>
    %140 = arith.mulf %115, %139 : vector<32x17xf32>
    %141 = arith.addf %106, %140 : vector<32x17xf32>
    %142 = vector.extract_strided_slice %63 {offsets = [0, 3], sizes = [32, 1], strides = [1, 1]} : vector<32x10xf32> to vector<32x1xf32>
    %143 = vector.broadcast %142 : vector<32x1xf32> to vector<32x17xf32>
    %144 = vector.broadcast %1 : vector<1x17xf32> to vector<32x17xf32>
    %145 = arith.cmpf olt, %143, %144 : vector<32x17xf32>
    %146 = arith.extui %145 : vector<32x17xi1> to vector<32x17xi32>
    %147 = arith.sitofp %146 : vector<32x17xi32> to vector<32x17xf32>
    %cst_39 = arith.constant 1.000000e+00 : f32
    %148 = vector.broadcast %cst_39 : f32 to vector<32x17xf32>
    %149 = arith.subf %148, %147 : vector<32x17xf32>
    %150 = arith.mulf %112, %149 : vector<32x17xf32>
    %151 = vector.extract_strided_slice %63 {offsets = [0, 2], sizes = [32, 1], strides = [1, 1]} : vector<32x10xf32> to vector<32x1xf32>
    %152 = vector.extract_strided_slice %63 {offsets = [0, 3], sizes = [32, 1], strides = [1, 1]} : vector<32x10xf32> to vector<32x1xf32>
    %153 = vector.extract_strided_slice %71 {offsets = [0, 2], sizes = [32, 1], strides = [1, 1]} : vector<32x10xf32> to vector<32x1xf32>
    %154 = vector.extract_strided_slice %71 {offsets = [0, 3], sizes = [32, 1], strides = [1, 1]} : vector<32x10xf32> to vector<32x1xf32>
    %155 = vector.broadcast %151 : vector<32x1xf32> to vector<32x17xf32>
    %156 = arith.mulf %150, %155 : vector<32x17xf32>
    %157 = arith.addf %122, %156 : vector<32x17xf32>
    %158 = vector.broadcast %153 : vector<32x1xf32> to vector<32x17xf32>
    %159 = arith.mulf %150, %158 : vector<32x17xf32>
    %160 = arith.addf %125, %159 : vector<32x17xf32>
    %161 = arith.subf %152, %151 : vector<32x1xf32>
    %162 = vector.broadcast %161 : vector<32x1xf32> to vector<32x17xf32>
    %163 = arith.mulf %150, %162 : vector<32x17xf32>
    %164 = arith.addf %129, %163 : vector<32x17xf32>
    %165 = arith.subf %154, %153 : vector<32x1xf32>
    %166 = vector.broadcast %165 : vector<32x1xf32> to vector<32x17xf32>
    %167 = arith.mulf %150, %166 : vector<32x17xf32>
    %168 = arith.addf %133, %167 : vector<32x17xf32>
    %169 = vector.extract_strided_slice %53 {offsets = [0, 1], sizes = [32, 1], strides = [1, 1]} : vector<32x9xf32> to vector<32x1xf32>
    %170 = vector.broadcast %169 : vector<32x1xf32> to vector<32x17xf32>
    %171 = arith.mulf %150, %170 : vector<32x17xf32>
    %172 = arith.addf %137, %171 : vector<32x17xf32>
    %173 = vector.extract_strided_slice %53 {offsets = [0, 2], sizes = [32, 1], strides = [1, 1]} : vector<32x9xf32> to vector<32x1xf32>
    %174 = vector.broadcast %173 : vector<32x1xf32> to vector<32x17xf32>
    %175 = arith.mulf %150, %174 : vector<32x17xf32>
    %176 = arith.addf %141, %175 : vector<32x17xf32>
    %177 = vector.extract_strided_slice %63 {offsets = [0, 4], sizes = [32, 1], strides = [1, 1]} : vector<32x10xf32> to vector<32x1xf32>
    %178 = vector.broadcast %177 : vector<32x1xf32> to vector<32x17xf32>
    %179 = vector.broadcast %1 : vector<1x17xf32> to vector<32x17xf32>
    %180 = arith.cmpf olt, %178, %179 : vector<32x17xf32>
    %181 = arith.extui %180 : vector<32x17xi1> to vector<32x17xi32>
    %182 = arith.sitofp %181 : vector<32x17xi32> to vector<32x17xf32>
    %cst_40 = arith.constant 1.000000e+00 : f32
    %183 = vector.broadcast %cst_40 : f32 to vector<32x17xf32>
    %184 = arith.subf %183, %182 : vector<32x17xf32>
    %185 = arith.mulf %147, %184 : vector<32x17xf32>
    %186 = vector.extract_strided_slice %63 {offsets = [0, 3], sizes = [32, 1], strides = [1, 1]} : vector<32x10xf32> to vector<32x1xf32>
    %187 = vector.extract_strided_slice %63 {offsets = [0, 4], sizes = [32, 1], strides = [1, 1]} : vector<32x10xf32> to vector<32x1xf32>
    %188 = vector.extract_strided_slice %71 {offsets = [0, 3], sizes = [32, 1], strides = [1, 1]} : vector<32x10xf32> to vector<32x1xf32>
    %189 = vector.extract_strided_slice %71 {offsets = [0, 4], sizes = [32, 1], strides = [1, 1]} : vector<32x10xf32> to vector<32x1xf32>
    %190 = vector.broadcast %186 : vector<32x1xf32> to vector<32x17xf32>
    %191 = arith.mulf %185, %190 : vector<32x17xf32>
    %192 = arith.addf %157, %191 : vector<32x17xf32>
    %193 = vector.broadcast %188 : vector<32x1xf32> to vector<32x17xf32>
    %194 = arith.mulf %185, %193 : vector<32x17xf32>
    %195 = arith.addf %160, %194 : vector<32x17xf32>
    %196 = arith.subf %187, %186 : vector<32x1xf32>
    %197 = vector.broadcast %196 : vector<32x1xf32> to vector<32x17xf32>
    %198 = arith.mulf %185, %197 : vector<32x17xf32>
    %199 = arith.addf %164, %198 : vector<32x17xf32>
    %200 = arith.subf %189, %188 : vector<32x1xf32>
    %201 = vector.broadcast %200 : vector<32x1xf32> to vector<32x17xf32>
    %202 = arith.mulf %185, %201 : vector<32x17xf32>
    %203 = arith.addf %168, %202 : vector<32x17xf32>
    %204 = vector.extract_strided_slice %53 {offsets = [0, 2], sizes = [32, 1], strides = [1, 1]} : vector<32x9xf32> to vector<32x1xf32>
    %205 = vector.broadcast %204 : vector<32x1xf32> to vector<32x17xf32>
    %206 = arith.mulf %185, %205 : vector<32x17xf32>
    %207 = arith.addf %172, %206 : vector<32x17xf32>
    %208 = vector.extract_strided_slice %53 {offsets = [0, 3], sizes = [32, 1], strides = [1, 1]} : vector<32x9xf32> to vector<32x1xf32>
    %209 = vector.broadcast %208 : vector<32x1xf32> to vector<32x17xf32>
    %210 = arith.mulf %185, %209 : vector<32x17xf32>
    %211 = arith.addf %176, %210 : vector<32x17xf32>
    %212 = vector.extract_strided_slice %63 {offsets = [0, 5], sizes = [32, 1], strides = [1, 1]} : vector<32x10xf32> to vector<32x1xf32>
    %213 = vector.broadcast %212 : vector<32x1xf32> to vector<32x17xf32>
    %214 = vector.broadcast %1 : vector<1x17xf32> to vector<32x17xf32>
    %215 = arith.cmpf olt, %213, %214 : vector<32x17xf32>
    %216 = arith.extui %215 : vector<32x17xi1> to vector<32x17xi32>
    %217 = arith.sitofp %216 : vector<32x17xi32> to vector<32x17xf32>
    %cst_41 = arith.constant 1.000000e+00 : f32
    %218 = vector.broadcast %cst_41 : f32 to vector<32x17xf32>
    %219 = arith.subf %218, %217 : vector<32x17xf32>
    %220 = arith.mulf %182, %219 : vector<32x17xf32>
    %221 = vector.extract_strided_slice %63 {offsets = [0, 4], sizes = [32, 1], strides = [1, 1]} : vector<32x10xf32> to vector<32x1xf32>
    %222 = vector.extract_strided_slice %63 {offsets = [0, 5], sizes = [32, 1], strides = [1, 1]} : vector<32x10xf32> to vector<32x1xf32>
    %223 = vector.extract_strided_slice %71 {offsets = [0, 4], sizes = [32, 1], strides = [1, 1]} : vector<32x10xf32> to vector<32x1xf32>
    %224 = vector.extract_strided_slice %71 {offsets = [0, 5], sizes = [32, 1], strides = [1, 1]} : vector<32x10xf32> to vector<32x1xf32>
    %225 = vector.broadcast %221 : vector<32x1xf32> to vector<32x17xf32>
    %226 = arith.mulf %220, %225 : vector<32x17xf32>
    %227 = arith.addf %192, %226 : vector<32x17xf32>
    %228 = vector.broadcast %223 : vector<32x1xf32> to vector<32x17xf32>
    %229 = arith.mulf %220, %228 : vector<32x17xf32>
    %230 = arith.addf %195, %229 : vector<32x17xf32>
    %231 = arith.subf %222, %221 : vector<32x1xf32>
    %232 = vector.broadcast %231 : vector<32x1xf32> to vector<32x17xf32>
    %233 = arith.mulf %220, %232 : vector<32x17xf32>
    %234 = arith.addf %199, %233 : vector<32x17xf32>
    %235 = arith.subf %224, %223 : vector<32x1xf32>
    %236 = vector.broadcast %235 : vector<32x1xf32> to vector<32x17xf32>
    %237 = arith.mulf %220, %236 : vector<32x17xf32>
    %238 = arith.addf %203, %237 : vector<32x17xf32>
    %239 = vector.extract_strided_slice %53 {offsets = [0, 3], sizes = [32, 1], strides = [1, 1]} : vector<32x9xf32> to vector<32x1xf32>
    %240 = vector.broadcast %239 : vector<32x1xf32> to vector<32x17xf32>
    %241 = arith.mulf %220, %240 : vector<32x17xf32>
    %242 = arith.addf %207, %241 : vector<32x17xf32>
    %243 = vector.extract_strided_slice %53 {offsets = [0, 4], sizes = [32, 1], strides = [1, 1]} : vector<32x9xf32> to vector<32x1xf32>
    %244 = vector.broadcast %243 : vector<32x1xf32> to vector<32x17xf32>
    %245 = arith.mulf %220, %244 : vector<32x17xf32>
    %246 = arith.addf %211, %245 : vector<32x17xf32>
    %247 = vector.extract_strided_slice %63 {offsets = [0, 6], sizes = [32, 1], strides = [1, 1]} : vector<32x10xf32> to vector<32x1xf32>
    %248 = vector.broadcast %247 : vector<32x1xf32> to vector<32x17xf32>
    %249 = vector.broadcast %1 : vector<1x17xf32> to vector<32x17xf32>
    %250 = arith.cmpf olt, %248, %249 : vector<32x17xf32>
    %251 = arith.extui %250 : vector<32x17xi1> to vector<32x17xi32>
    %252 = arith.sitofp %251 : vector<32x17xi32> to vector<32x17xf32>
    %cst_42 = arith.constant 1.000000e+00 : f32
    %253 = vector.broadcast %cst_42 : f32 to vector<32x17xf32>
    %254 = arith.subf %253, %252 : vector<32x17xf32>
    %255 = arith.mulf %217, %254 : vector<32x17xf32>
    %256 = vector.extract_strided_slice %63 {offsets = [0, 5], sizes = [32, 1], strides = [1, 1]} : vector<32x10xf32> to vector<32x1xf32>
    %257 = vector.extract_strided_slice %63 {offsets = [0, 6], sizes = [32, 1], strides = [1, 1]} : vector<32x10xf32> to vector<32x1xf32>
    %258 = vector.extract_strided_slice %71 {offsets = [0, 5], sizes = [32, 1], strides = [1, 1]} : vector<32x10xf32> to vector<32x1xf32>
    %259 = vector.extract_strided_slice %71 {offsets = [0, 6], sizes = [32, 1], strides = [1, 1]} : vector<32x10xf32> to vector<32x1xf32>
    %260 = vector.broadcast %256 : vector<32x1xf32> to vector<32x17xf32>
    %261 = arith.mulf %255, %260 : vector<32x17xf32>
    %262 = arith.addf %227, %261 : vector<32x17xf32>
    %263 = vector.broadcast %258 : vector<32x1xf32> to vector<32x17xf32>
    %264 = arith.mulf %255, %263 : vector<32x17xf32>
    %265 = arith.addf %230, %264 : vector<32x17xf32>
    %266 = arith.subf %257, %256 : vector<32x1xf32>
    %267 = vector.broadcast %266 : vector<32x1xf32> to vector<32x17xf32>
    %268 = arith.mulf %255, %267 : vector<32x17xf32>
    %269 = arith.addf %234, %268 : vector<32x17xf32>
    %270 = arith.subf %259, %258 : vector<32x1xf32>
    %271 = vector.broadcast %270 : vector<32x1xf32> to vector<32x17xf32>
    %272 = arith.mulf %255, %271 : vector<32x17xf32>
    %273 = arith.addf %238, %272 : vector<32x17xf32>
    %274 = vector.extract_strided_slice %53 {offsets = [0, 4], sizes = [32, 1], strides = [1, 1]} : vector<32x9xf32> to vector<32x1xf32>
    %275 = vector.broadcast %274 : vector<32x1xf32> to vector<32x17xf32>
    %276 = arith.mulf %255, %275 : vector<32x17xf32>
    %277 = arith.addf %242, %276 : vector<32x17xf32>
    %278 = vector.extract_strided_slice %53 {offsets = [0, 5], sizes = [32, 1], strides = [1, 1]} : vector<32x9xf32> to vector<32x1xf32>
    %279 = vector.broadcast %278 : vector<32x1xf32> to vector<32x17xf32>
    %280 = arith.mulf %255, %279 : vector<32x17xf32>
    %281 = arith.addf %246, %280 : vector<32x17xf32>
    %282 = vector.extract_strided_slice %63 {offsets = [0, 7], sizes = [32, 1], strides = [1, 1]} : vector<32x10xf32> to vector<32x1xf32>
    %283 = vector.broadcast %282 : vector<32x1xf32> to vector<32x17xf32>
    %284 = vector.broadcast %1 : vector<1x17xf32> to vector<32x17xf32>
    %285 = arith.cmpf olt, %283, %284 : vector<32x17xf32>
    %286 = arith.extui %285 : vector<32x17xi1> to vector<32x17xi32>
    %287 = arith.sitofp %286 : vector<32x17xi32> to vector<32x17xf32>
    %cst_43 = arith.constant 1.000000e+00 : f32
    %288 = vector.broadcast %cst_43 : f32 to vector<32x17xf32>
    %289 = arith.subf %288, %287 : vector<32x17xf32>
    %290 = arith.mulf %252, %289 : vector<32x17xf32>
    %291 = vector.extract_strided_slice %63 {offsets = [0, 6], sizes = [32, 1], strides = [1, 1]} : vector<32x10xf32> to vector<32x1xf32>
    %292 = vector.extract_strided_slice %63 {offsets = [0, 7], sizes = [32, 1], strides = [1, 1]} : vector<32x10xf32> to vector<32x1xf32>
    %293 = vector.extract_strided_slice %71 {offsets = [0, 6], sizes = [32, 1], strides = [1, 1]} : vector<32x10xf32> to vector<32x1xf32>
    %294 = vector.extract_strided_slice %71 {offsets = [0, 7], sizes = [32, 1], strides = [1, 1]} : vector<32x10xf32> to vector<32x1xf32>
    %295 = vector.broadcast %291 : vector<32x1xf32> to vector<32x17xf32>
    %296 = arith.mulf %290, %295 : vector<32x17xf32>
    %297 = arith.addf %262, %296 : vector<32x17xf32>
    %298 = vector.broadcast %293 : vector<32x1xf32> to vector<32x17xf32>
    %299 = arith.mulf %290, %298 : vector<32x17xf32>
    %300 = arith.addf %265, %299 : vector<32x17xf32>
    %301 = arith.subf %292, %291 : vector<32x1xf32>
    %302 = vector.broadcast %301 : vector<32x1xf32> to vector<32x17xf32>
    %303 = arith.mulf %290, %302 : vector<32x17xf32>
    %304 = arith.addf %269, %303 : vector<32x17xf32>
    %305 = arith.subf %294, %293 : vector<32x1xf32>
    %306 = vector.broadcast %305 : vector<32x1xf32> to vector<32x17xf32>
    %307 = arith.mulf %290, %306 : vector<32x17xf32>
    %308 = arith.addf %273, %307 : vector<32x17xf32>
    %309 = vector.extract_strided_slice %53 {offsets = [0, 5], sizes = [32, 1], strides = [1, 1]} : vector<32x9xf32> to vector<32x1xf32>
    %310 = vector.broadcast %309 : vector<32x1xf32> to vector<32x17xf32>
    %311 = arith.mulf %290, %310 : vector<32x17xf32>
    %312 = arith.addf %277, %311 : vector<32x17xf32>
    %313 = vector.extract_strided_slice %53 {offsets = [0, 6], sizes = [32, 1], strides = [1, 1]} : vector<32x9xf32> to vector<32x1xf32>
    %314 = vector.broadcast %313 : vector<32x1xf32> to vector<32x17xf32>
    %315 = arith.mulf %290, %314 : vector<32x17xf32>
    %316 = arith.addf %281, %315 : vector<32x17xf32>
    %317 = vector.extract_strided_slice %63 {offsets = [0, 8], sizes = [32, 1], strides = [1, 1]} : vector<32x10xf32> to vector<32x1xf32>
    %318 = vector.broadcast %317 : vector<32x1xf32> to vector<32x17xf32>
    %319 = vector.broadcast %1 : vector<1x17xf32> to vector<32x17xf32>
    %320 = arith.cmpf olt, %318, %319 : vector<32x17xf32>
    %321 = arith.extui %320 : vector<32x17xi1> to vector<32x17xi32>
    %322 = arith.sitofp %321 : vector<32x17xi32> to vector<32x17xf32>
    %cst_44 = arith.constant 1.000000e+00 : f32
    %323 = vector.broadcast %cst_44 : f32 to vector<32x17xf32>
    %324 = arith.subf %323, %322 : vector<32x17xf32>
    %325 = arith.mulf %287, %324 : vector<32x17xf32>
    %326 = vector.extract_strided_slice %63 {offsets = [0, 7], sizes = [32, 1], strides = [1, 1]} : vector<32x10xf32> to vector<32x1xf32>
    %327 = vector.extract_strided_slice %63 {offsets = [0, 8], sizes = [32, 1], strides = [1, 1]} : vector<32x10xf32> to vector<32x1xf32>
    %328 = vector.extract_strided_slice %71 {offsets = [0, 7], sizes = [32, 1], strides = [1, 1]} : vector<32x10xf32> to vector<32x1xf32>
    %329 = vector.extract_strided_slice %71 {offsets = [0, 8], sizes = [32, 1], strides = [1, 1]} : vector<32x10xf32> to vector<32x1xf32>
    %330 = vector.broadcast %326 : vector<32x1xf32> to vector<32x17xf32>
    %331 = arith.mulf %325, %330 : vector<32x17xf32>
    %332 = arith.addf %297, %331 : vector<32x17xf32>
    %333 = vector.broadcast %328 : vector<32x1xf32> to vector<32x17xf32>
    %334 = arith.mulf %325, %333 : vector<32x17xf32>
    %335 = arith.addf %300, %334 : vector<32x17xf32>
    %336 = arith.subf %327, %326 : vector<32x1xf32>
    %337 = vector.broadcast %336 : vector<32x1xf32> to vector<32x17xf32>
    %338 = arith.mulf %325, %337 : vector<32x17xf32>
    %339 = arith.addf %304, %338 : vector<32x17xf32>
    %340 = arith.subf %329, %328 : vector<32x1xf32>
    %341 = vector.broadcast %340 : vector<32x1xf32> to vector<32x17xf32>
    %342 = arith.mulf %325, %341 : vector<32x17xf32>
    %343 = arith.addf %308, %342 : vector<32x17xf32>
    %344 = vector.extract_strided_slice %53 {offsets = [0, 6], sizes = [32, 1], strides = [1, 1]} : vector<32x9xf32> to vector<32x1xf32>
    %345 = vector.broadcast %344 : vector<32x1xf32> to vector<32x17xf32>
    %346 = arith.mulf %325, %345 : vector<32x17xf32>
    %347 = arith.addf %312, %346 : vector<32x17xf32>
    %348 = vector.extract_strided_slice %53 {offsets = [0, 7], sizes = [32, 1], strides = [1, 1]} : vector<32x9xf32> to vector<32x1xf32>
    %349 = vector.broadcast %348 : vector<32x1xf32> to vector<32x17xf32>
    %350 = arith.mulf %325, %349 : vector<32x17xf32>
    %351 = arith.addf %316, %350 : vector<32x17xf32>
    %352 = vector.extract_strided_slice %63 {offsets = [0, 8], sizes = [32, 1], strides = [1, 1]} : vector<32x10xf32> to vector<32x1xf32>
    %353 = vector.extract_strided_slice %63 {offsets = [0, 9], sizes = [32, 1], strides = [1, 1]} : vector<32x10xf32> to vector<32x1xf32>
    %354 = vector.extract_strided_slice %71 {offsets = [0, 8], sizes = [32, 1], strides = [1, 1]} : vector<32x10xf32> to vector<32x1xf32>
    %355 = vector.extract_strided_slice %71 {offsets = [0, 9], sizes = [32, 1], strides = [1, 1]} : vector<32x10xf32> to vector<32x1xf32>
    %356 = vector.broadcast %352 : vector<32x1xf32> to vector<32x17xf32>
    %357 = arith.mulf %322, %356 : vector<32x17xf32>
    %358 = arith.addf %332, %357 : vector<32x17xf32>
    %359 = vector.broadcast %354 : vector<32x1xf32> to vector<32x17xf32>
    %360 = arith.mulf %322, %359 : vector<32x17xf32>
    %361 = arith.addf %335, %360 : vector<32x17xf32>
    %362 = arith.subf %353, %352 : vector<32x1xf32>
    %363 = vector.broadcast %362 : vector<32x1xf32> to vector<32x17xf32>
    %364 = arith.mulf %322, %363 : vector<32x17xf32>
    %365 = arith.addf %339, %364 : vector<32x17xf32>
    %366 = arith.subf %355, %354 : vector<32x1xf32>
    %367 = vector.broadcast %366 : vector<32x1xf32> to vector<32x17xf32>
    %368 = arith.mulf %322, %367 : vector<32x17xf32>
    %369 = arith.addf %343, %368 : vector<32x17xf32>
    %370 = vector.extract_strided_slice %53 {offsets = [0, 7], sizes = [32, 1], strides = [1, 1]} : vector<32x9xf32> to vector<32x1xf32>
    %371 = vector.broadcast %370 : vector<32x1xf32> to vector<32x17xf32>
    %372 = arith.mulf %322, %371 : vector<32x17xf32>
    %373 = arith.addf %347, %372 : vector<32x17xf32>
    %374 = vector.extract_strided_slice %53 {offsets = [0, 8], sizes = [32, 1], strides = [1, 1]} : vector<32x9xf32> to vector<32x1xf32>
    %375 = vector.broadcast %374 : vector<32x1xf32> to vector<32x17xf32>
    %376 = arith.mulf %322, %375 : vector<32x17xf32>
    %377 = arith.addf %351, %376 : vector<32x17xf32>
    %378 = tpu.reciprocal %365 {approx = true} : vector<32x17xf32> -> vector<32x17xf32>
    %379 = arith.mulf %365, %378 : vector<32x17xf32>
    %cst_45 = arith.constant 2.000000e+00 : f32
    %380 = vector.broadcast %cst_45 : f32 to vector<32x17xf32>
    %381 = arith.subf %380, %379 : vector<32x17xf32>
    %382 = arith.mulf %378, %381 : vector<32x17xf32>
    %383 = arith.mulf %369, %382 : vector<32x17xf32>
    %384 = vector.broadcast %1 : vector<1x17xf32> to vector<32x17xf32>
    %385 = arith.subf %384, %358 : vector<32x17xf32>
    %386 = arith.mulf %385, %382 : vector<32x17xf32>
    %cst_46 = arith.constant 1.000000e+00 : f32
    %387 = vector.broadcast %cst_46 : f32 to vector<32x17xf32>
    %388 = arith.subf %387, %386 : vector<32x17xf32>
    %389 = arith.mulf %386, %388 : vector<32x17xf32>
    %390 = arith.mulf %383, %386 : vector<32x17xf32>
    %391 = arith.mulf %390, %386 : vector<32x17xf32>
    %392 = arith.mulf %373, %389 : vector<32x17xf32>
    %393 = arith.addf %391, %392 : vector<32x17xf32>
    %394 = arith.mulf %369, %393 : vector<32x17xf32>
    %395 = arith.addf %373, %377 : vector<32x17xf32>
    %cst_47 = arith.constant 2.000000e+00 : f32
    %396 = vector.broadcast %cst_47 : f32 to vector<32x17xf32>
    %397 = arith.mulf %396, %383 : vector<32x17xf32>
    %398 = arith.subf %395, %397 : vector<32x17xf32>
    %399 = arith.mulf %398, %389 : vector<32x17xf32>
    %400 = arith.addf %383, %399 : vector<32x17xf32>
    %401 = tpu.reciprocal %400 {approx = true} : vector<32x17xf32> -> vector<32x17xf32>
    %402 = arith.mulf %400, %401 : vector<32x17xf32>
    %cst_48 = arith.constant 2.000000e+00 : f32
    %403 = vector.broadcast %cst_48 : f32 to vector<32x17xf32>
    %404 = arith.subf %403, %402 : vector<32x17xf32>
    %405 = arith.mulf %401, %404 : vector<32x17xf32>
    %406 = arith.mulf %394, %405 : vector<32x17xf32>
    %407 = arith.addf %361, %406 : vector<32x17xf32>
    %408 = vector.extract_strided_slice %407 {offsets = [0, 1], sizes = [32, 16], strides = [1, 1]} : vector<32x17xf32> to vector<32x16xf32>
    %409 = vector.extract_strided_slice %407 {offsets = [0, 0], sizes = [32, 16], strides = [1, 1]} : vector<32x17xf32> to vector<32x16xf32>
    %410 = arith.subf %408, %409 : vector<32x16xf32>
    %cst_49 = arith.constant 9.99999993E-9 : f32
    %411 = vector.broadcast %cst_49 : f32 to vector<32x16xf32>
    %412 = arith.maximumf %410, %411 : vector<32x16xf32>
    %413 = math.log %412 : vector<32x16xf32>
    %c0_50 = arith.constant 0 : index
    %c0_51 = arith.constant 0 : index
    %414 = vector.load %arg10[%c0_50, %c0_51] : memref<32x16xf32, #tpu.memory_space<vmem>>, vector<32x16xf32>
    tpu.vector_store %arg10[%c0_50, %c0_51], %413 {strides = array<i32>} : memref<32x16xf32, #tpu.memory_space<vmem>>, vector<32x16xf32>,
    return
  }
  func.func @transform_0(%arg0: i32) -> (i32, i32) {
    %c0_i32 = arith.constant 0 : i32
    %c0_i32_0 = arith.constant 0 : i32
    %c0_i32_1 = arith.constant 0 : i32
    return %c0_i32, %c0_i32_0 : i32, i32
  }
  func.func @transform_1(%arg0: i32) -> (i32, i32) {
    %c0_i32 = arith.constant 0 : i32
    %c0_i32_0 = arith.constant 0 : i32
    %c0_i32_1 = arith.constant 0 : i32
    return %c0_i32, %c0_i32_0 : i32, i32
  }
  func.func @transform_2(%arg0: i32) -> (i32, i32) {
    %c0_i32 = arith.constant 0 : i32
    %c0_i32_0 = arith.constant 0 : i32
    return %arg0, %c0_i32 : i32, i32
  }
  func.func @transform_3(%arg0: i32) -> (i32, i32) {
    %c0_i32 = arith.constant 0 : i32
    %c0_i32_0 = arith.constant 0 : i32
    %c0_i32_1 = arith.constant 0 : i32
    return %c0_i32, %c0_i32_0 : i32, i32
  }
  func.func @transform_4(%arg0: i32) -> (i32, i32) {
    %c0_i32 = arith.constant 0 : i32
    %c0_i32_0 = arith.constant 0 : i32
    %c0_i32_1 = arith.constant 0 : i32
    return %c0_i32, %c0_i32_0 : i32, i32
  }
  func.func @transform_5(%arg0: i32) -> (i32, i32) {
    %c0_i32 = arith.constant 0 : i32
    %c0_i32_0 = arith.constant 0 : i32
    %c0_i32_1 = arith.constant 0 : i32
    return %c0_i32, %c0_i32_0 : i32, i32
  }
  func.func @transform_6(%arg0: i32) -> (i32, i32) {
    %c0_i32 = arith.constant 0 : i32
    %c0_i32_0 = arith.constant 0 : i32
    %c0_i32_1 = arith.constant 0 : i32
    return %c0_i32, %c0_i32_0 : i32, i32
  }
  func.func @transform_7(%arg0: i32) -> (i32, i32) {
    %c0_i32 = arith.constant 0 : i32
    %c0_i32_0 = arith.constant 0 : i32
    %c0_i32_1 = arith.constant 0 : i32
    return %c0_i32, %c0_i32_0 : i32, i32
  }
  func.func @transform_8(%arg0: i32) -> (i32, i32) {
    %c0_i32 = arith.constant 0 : i32
    %c0_i32_0 = arith.constant 0 : i32
    %c0_i32_1 = arith.constant 0 : i32
    return %c0_i32, %c0_i32_0 : i32, i32
  }
  func.func @transform_9(%arg0: i32) -> (i32, i32) {
    %c0_i32 = arith.constant 0 : i32
    %c0_i32_0 = arith.constant 0 : i32
    return %arg0, %c0_i32 : i32, i32
  }
}

</mosaic_0001>

<bundles_post_ra>
// kernel: tpu_custom_call.1
= control target key start
LH: loop header
LB: loop body
LE: loop exit
PB: predicated region body
PF: predicated region fallthrough
CT: control target
= control target key end

     0   :  { %s2745_s30 = smov 0   ;;  %s4135_s0 = inlined_call_operand.vmem [shape: f32[1,17], index: 0, kind: input, shape index: {}]   ;;  %s4136_s1 = inlined_call_operand.vmem [shape: f32[9,10], index: 1, kind: input, shape index: {}]   ;;  %s4137_s2 = inlined_call_operand.vmem [shape: f32[64,32], index: 2, kind: input, shape index: {}]   ;;  %s4138_s3 = inlined_call_operand.vmem [shape: f32[32,9], index: 3, kind: input, shape index: {}]   ;;  %s4139_s4 = inlined_call_operand.vmem [shape: f32[32,9], index: 4, kind: input, shape index: {}]   ;;  %s4140_s5 = inlined_call_operand.vmem [shape: f32[32,9], index: 5, kind: input, shape index: {}]   ;;  %s4141_s6 = inlined_call_operand.vmem [shape: f32[1,9], index: 6, kind: input, shape index: {}]   ;;  %s4142_s7 = inlined_call_operand.vmem [shape: f32[1,9], index: 7, kind: input, shape index: {}]   ;;  %s4143_s8 = inlined_call_operand.vmem [shape: f32[1,9], index: 8, kind: input, shape index: {}]   ;;  %s4144_s9 = inlined_call_operand.vmem [shape: f32[64,16], index: 9, kind: output, shape index: {}]  }
   0x1 LB: > { %s2322_s10 = sadd.s32 4294967295, %s2680_s30   ;;  %p2326_p0 = scmp.ge.s32.totalorder %s2680_s30, 1  ;;  %s2680_s30 = sphi %s2745_s30, %s19_s30  }
   0x2   : > { %p288_p1 = scmp.lt.s32.totalorder %s2680_s30, 3 }
   0x4   : > { %p289_p2 = pnand %p2326_p0, %p288_p1 }
   0x6   : > { %292 = sbr.rel (%p289_p2) target bundleno = 1354 (0x54a), region = 56 }
   0xb   : > { %v346_v0 = vld [vmem:[%s4138_s3 + $0x18] sm:$0xff]  ;;  %v345_v2 = vld [vmem:[%s4138_s3 + $0x10] sm:$0xff]  ;;  %s2327_s17 = sshll.u32 %s2322_s10, 2  ;;  %v344_v4 = vld [vmem:[%s4138_s3 + $0x8] sm:$0xff]  ;;  %vm351_vm0 = vcmask 261120   ;;  %vm600_vm1 = vcmask 1040384  }
   0xc   : > { %v513_v1 = vld [vmem:[%s4140_s5 + $0x18] sm:$0xff]  ;;  %376 = vmatpush.msra.mxu0 %v346_v0  ;;  %2387 = vmatpush.msra.mxu1 %v346_v0  ;;  %v512_v3 = vld [vmem:[%s4140_s5 + $0x10] sm:$0xff]  ;;  %p325_p3 = scmp.lt.s32.totalorder %s2327_s17, 7  ;;  %v511_v5 = vld [vmem:[%s4140_s5 + $0x8] sm:$0xff]  ;;  %v4153_v31 = vmov 7   ;;  %v4157_v32 = vmov 0  }
   0xd   : > { %530 = vmatpush.msra.mxu2 %v513_v1  ;;  %v343_v6 = vld [vmem:[%s4138_s3] sm:$0xff]  ;;  %v436_v10 = vld [vmem:[%s4139_s4 + $0x18] sm:$0xff]  ;;  %v435_v11 = vld [vmem:[%s4139_s4 + $0x10] sm:$0xff]  ;;  %2423 = vset.pattern.permute.xlu1 %v4153_v31  ;;  %vm587_vm2 = vcmask 72704   ;;  %s2691_s12 = smov 1   ;;  %s2694_s18 = smov 127  }
   0xe   : > { %377 = vmatpush.msra.mxu0 %v345_v2  ;;  %2388 = vmatpush.msra.mxu1 %v345_v2  ;;  %s4454_s17 = smov (!%p325_p3, %s2327_s17), 7  ;;  %v510_v7 = vld [vmem:[%s4140_s5] sm:$0xff]  ;;  %v434_v12 = vld [vmem:[%s4139_s4 + $0x8] sm:$0xff] }
   0xf   : > { %531 = vmatpush.msra.mxu2 %v512_v3  ;;  %s2328_s28 = sshll.u32 %s4454_s17, 3  ;;  %v433_v13 = vld [vmem:[%s4139_s4] sm:$0xff]  ;;  %v342_v16 = vld [vmem:[%s4136_s1 + $0x8] sm:$0x1]  ;;  %2416 = vset.pattern.permute.xlu0 %v4157_v32 }
  0x10   : > { %378 = vmatpush.msra.mxu0 %v344_v4  ;;  %2389 = vmatpush.msra.mxu1 %v344_v4  ;;  %s328_s11 = scalar_lea.vmem %s4137_s2, %s2328_s28  ;;  %v2581_v17 = vld [vmem:[%s4141_s6] ss:$0 sm:$0xff]  ;;  %s334_s21 = scalar_lea.vmem %s4144_s9, %s2328_s28 }
  0x11   : > { %532 = vmatpush.msra.mxu2 %v511_v5  ;;  %v336_v8 = vld [vmem:[%s328_s11] sm:$0xff]  ;;  %v339_v9 = vld [vmem:[%s328_s11 + $0x18] sm:$0xff]  ;;  %v337_v14 = vld [vmem:[%s328_s11 + $0x8] sm:$0xff]  ;;  %2392 = vmatpush.msk.msra.mxu3 %vm600_vm1, %v342_v16 }
  0x12   : > { %379 = vmatpush.msra.mxu0 %v343_v6  ;;  %2390 = vmatpush.msra.mxu1 %v343_v6  ;;  %v338_v15 = vld [vmem:[%s328_s11 + $0x10] sm:$0xff]  ;;  %v341_v19 = vld [vmem:[%s4136_s1] sm:$0xff] }
  0x13   : > { %533 = vmatpush.msra.mxu2 %v510_v7  ;;  %2331 = vmatmul.msk.f32.vlgmr.msra.gmra.mxu0 %vm351_vm0, %v336_v8  ;;  %v2827_v25 = vld [vmem:[%s4143_s8] ss:$0 sm:$0xff] }
  0x14   : > { %2334 = vmatmul.msk.f32.vlgmr.msra.gmra.mxu1 %vm351_vm0, %v339_v9  ;;  %2339 = vmatmul.msk.f32.vlgmr.msra.gmra.mxu2 %vm351_vm0, %v336_v8  ;;  %v2832_v28 = vld [vmem:[%s4142_s7] ss:$0 sm:$0xff] }
  0x15   : > { %453 = vmatpush.msrb.mxu1 %v436_v10  ;;  %2343 = vmatpush.msk.msrb.mxu0 %vm600_vm1, %v342_v16 }
  0x16   : > { %2391 = vmatpush.msk.msrb.mxu2 %vm600_vm1, %v342_v16  ;;  %2394 = vmatpush.msra.mxu3 %v341_v19 }
  0x17   : > { %454 = vmatpush.msrb.mxu1 %v435_v11  ;;  %619 = vmatpush.msrb.mxu0 %v341_v19 }
  0x18   : > { %2348 = vmatpush.msk.msrb.mxu3 %vm600_vm1, %v342_v16  ;;  %2393 = vmatpush.msrb.mxu2 %v341_v19 }
  0x19   : > { %455 = vmatpush.msrb.mxu1 %v434_v12  ;;  %2431 = vset.pattern.permute.xlu2 %v4157_v32 }
  0x1a   : > { %660 = vmatpush.msrb.mxu3 %v341_v19 }
  0x1b   : > { %456 = vmatpush.msrb.mxu1 %v433_v13  ;;  %2332 = vmatmul.msk.f32.gmra.mxu0 %vm351_vm0, %v337_v14 }
  0x1c   : > { %2335 = vmatmul.msk.f32.vlgmr.msrb.gmra.mxu1 %vm351_vm0, %v336_v8  ;;  %2340 = vmatmul.msk.f32.gmra.mxu2 %vm351_vm0, %v337_v14 }
  0x23   : > { %2333 = vmatmul.msk.f32.gmra.mxu0 %vm351_vm0, %v338_v15 }
  0x24   : > { %2336 = vmatmul.msk.f32.gmra.mxu1 %vm351_vm0, %v337_v14  ;;  %2341 = vmatmul.msk.f32.gmra.mxu2 %vm351_vm0, %v338_v15 }
  0x2c   : > { %2337 = vmatmul.msk.f32.gmra.mxu1 %vm351_vm0, %v338_v15  ;;  %2342 = vmatmul.msk.f32.gmra.mxu2 %vm351_vm0, %v339_v9 }
  0x34   : > { %2338 = vmatmul.msk.f32.gmra.mxu1 %vm351_vm0, %v339_v9 }
  0x90   : > { %v381_v18 = vpop.f32.mrf.mxu0 }
  0x91   : > { %v2818_v20 = vadd.f32 %v2581_v17, %v381_v18  ;;  %v390_v21 = vpop.f32.mrf.mxu1 }
  0x92   : > { %v2820_v22 = vadd.f32 %v2581_v17, %v390_v21 }
  0x93   : > { %v397_v23 = vand.u32 2147483647, %v2818_v20  ;;  %v393_v10 = vmax.f32 %v2818_v20, 0.0 }
  0x94   : > { %v400_v24 = vand.u32 2147483647, %v2820_v22  ;;  %v396_v6 = vmax.f32 %v2820_v22, 0.0 }
  0x95   : > { %v401_v26 = vsub.f32 0.0, %v397_v23 }
  0x96   : > { %v404_v27 = vsub.f32 0.0, %v400_v24 }
  0x97   : > { %v405_v29 = vmul.f32 1.442695, %v401_v26  ;;  %v535_v30 = vpop.f32.mrf.mxu2 }
  0x98   : > { %v411_v33 = vmul.f32 1.442695, %v404_v27  ;;  %v2837_v34 = vadd.f32 %v2827_v25, %v535_v30  ;;  %v384_v35 = vpop.f32.mrf.mxu0 }
  0x99   : > { %2585 = vpow2.f32 %v405_v29  ;;  %v2840_v36 = vadd.f32 %v2581_v17, %v384_v35  ;;  %v458_v37 = vpop.f32.mrf.mxu1 }
  0x9a   : > { %2587 = vpow2.f32 %v411_v33  ;;  %v551_v38 = vand.u32 2147483647, %v2837_v34  ;;  %v2844_v39 = vadd.f32 %v2832_v28, %v458_v37  ;;  %v547_v22 = vmax.f32 %v2837_v34, 0.0 }
  0x9b   : > { %v398_v40 = vand.u32 2147483647, %v2840_v36  ;;  %v394_v27 = vmax.f32 %v2840_v36, 0.0 }
  0x9c   : > { %v555_v41 = vsub.f32 0.0, %v551_v38  ;;  %v474_v42 = vand.u32 2147483647, %v2844_v39  ;;  %v470_v38 = vmax.f32 %v2844_v39, 0.0 }
  0x9d   : > { %v402_v43 = vsub.f32 0.0, %v398_v40 }
  0x9e   : > { %v559_v44 = vmul.f32 1.442695, %v555_v41  ;;  %v478_v45 = vsub.f32 0.0, %v474_v42 }
  0x9f   : > { %v2586_v46 = vpop.eup %2585  ;;  %v407_v47 = vmul.f32 1.442695, %v402_v43  ;;  %v538_v48 = vpop.f32.mrf.mxu2 }
  0xa0   : > { %v2588_v49 = vpop.eup %2587  ;;  %v413_v50 = vadd.f32 1.0, %v2586_v46  ;;  %2589 = vpow2.f32 %v559_v44  ;;  %v482_v51 = vmul.f32 1.442695, %v478_v45  ;;  %v2849_v52 = vadd.f32 %v2827_v25, %v538_v48  ;;  %v387_v53 = vpop.f32.mrf.mxu0 }
  0xa1   : > { %v416_v54 = vadd.f32 1.0, %v2588_v49  ;;  %2591 = vpow2.f32 %v407_v47  ;;  %v2851_v55 = vadd.f32 %v2581_v17, %v387_v53  ;;  %v461_v56 = vpop.f32.mrf.mxu1 }
  0xa2   : > { %2593 = vlog2.f32 %v413_v50  ;;  %v552_v57 = vand.u32 2147483647, %v2849_v52  ;;  %v2855_v58 = vadd.f32 %v2832_v28, %v461_v56 }
  0xa3   : > { %2595 = vlog2.f32 %v416_v54  ;;  %v399_v59 = vand.u32 2147483647, %v2851_v55  ;;  %v548_v54 = vmax.f32 %v2849_v52, 0.0 }
  0xa4   : > { %2597 = vpow2.f32 %v482_v51  ;;  %v556_v60 = vsub.f32 0.0, %v552_v57  ;;  %v475_v61 = vand.u32 2147483647, %v2855_v58 }
  0xa5   : > { %v403_v62 = vsub.f32 0.0, %v399_v59 }
  0xa6   : > { %v2590_v63 = vpop.eup %2589  ;;  %v561_v0 = vmul.f32 1.442695, %v556_v60  ;;  %v479_v1 = vsub.f32 0.0, %v475_v61 }
  0xa7   : > { %v2592_v2 = vpop.eup %2591  ;;  %v567_v3 = vadd.f32 1.0, %v2590_v63  ;;  %v409_v4 = vmul.f32 1.442695, %v403_v62  ;;  %v541_v44 = vpop.f32.mrf.mxu2  ;;  %v395_v63 = vmax.f32 %v2851_v55, 0.0  ;;  %v4147_v55 = vmov 1  }
  0xa8   : > { %v2594_v5 = vpop.eup %2593  ;;  %v414_v7 = vadd.f32 1.0, %v2592_v2  ;;  %2599 = vpow2.f32 %v561_v0  ;;  %v484_v8 = vmul.f32 1.442695, %v479_v1  ;;  %v2874_v48 = vadd.f32 %v2827_v25, %v541_v44 }
  0xa9   : > { %v2596_v9 = vpop.eup %2595  ;;  %v418_v11 = vmul.f32 0.6931472, %v2594_v5  ;;  %2601 = vlog2.f32 %v567_v3  ;;  %v464_v12 = vpop.f32.mrf.mxu1  ;;  %v471_v3 = vmax.f32 %v2855_v58, 0.0  ;;  %v4155_v44 = vmov 5  }
  0xaa   : > { %v2598_v13 = vpop.eup %2597  ;;  %2603 = vlog2.f32 %v414_v7  ;;  %v2862_v14 = vadd.f32 %v2832_v28, %v464_v12  ;;  %v424_v15 = vmul.f32 0.6931472, %v2596_v9 }
  0xab   : > { %v425_v16 = vadd.f32 %v418_v11, %v393_v10  ;;  %v490_v17 = vadd.f32 1.0, %v2598_v13  ;;  %2605 = vpow2.f32 %v409_v4 }
  0xac   : > { %2607 = vpow2.f32 %v484_v8  ;;  %v476_v18 = vand.u32 2147483647, %v2862_v14  ;;  %v428_v19 = vadd.f32 %v424_v15, %v396_v6  ;;  %v472_v58 = vmax.f32 %v2862_v14, 0.0 }
  0xad   : > { %v429_v21 = vadd.f32 0.0001, %v425_v16  ;;  %2609 = vlog2.f32 %v490_v17 }
  0xae   : > { %v2600_v20 = vpop.eup %2599  ;;  %v480_v23 = vsub.f32 0.0, %v476_v18  ;;  %v432_v24 = vadd.f32 0.0001, %v428_v19 }
  0xaf   : > { %v2602_v26 = vpop.eup %2601  ;;  %v568_v29 = vadd.f32 1.0, %v2600_v20  ;;  %2344 = vmatmul.msk.f32.vlgmr.msrb.gmra.mxu0 %vm587_vm2, %v429_v21  ;;  %v544_v14 = vpop.f32.mrf.mxu2 }
  0xb0   : > { %v2604_v30 = vpop.eup %2603  ;;  %v572_v33 = vmul.f32 0.6931472, %v2602_v26  ;;  %v486_v35 = vmul.f32 1.442695, %v480_v23  ;;  %2347 = vmatmul.msk.f32.vlgmr.msra.gmra.mxu3 %vm587_vm2, %v432_v24  ;;  %v549_v26 = vmax.f32 %v2874_v48, 0.0 }
  0xb1   : > { %v2606_v37 = vpop.eup %2605  ;;  %2611 = vlog2.f32 %v568_v29  ;;  %v467_v40 = vpop.f32.mrf.mxu1  ;;  %v420_v41 = vmul.f32 0.6931472, %v2604_v30  ;;  %v545_v30 = vadd.f32 %v2827_v25, %v544_v14 }
  0xb2   : > { %v2608_v34 = vpop.eup %2607  ;;  %v579_v42 = vadd.f32 %v572_v33, %v547_v22  ;;  %v415_v43 = vadd.f32 1.0, %v2606_v37  ;;  %2613 = vpow2.f32 %v486_v35  ;;  %v2871_v36 = vadd.f32 %v2832_v28, %v467_v40 }
  0xb3   : > { %v2610_v45 = vpop.eup %2609  ;;  %v491_v46 = vadd.f32 1.0, %v2608_v34  ;;  %v426_v47 = vadd.f32 %v420_v41, %v394_v27  ;;  %v553_v28 = vand.u32 2147483647, %v2874_v48  ;;  %v4145_v22 = vmov 2  }
  0xb4   : > { %v2876_v49 = vadd.f32 0.0001, %v579_v42  ;;  %v495_v39 = vmul.f32 0.6931472, %v2610_v45  ;;  %2615 = vlog2.f32 %v415_v43  ;;  %v477_v50 = vand.u32 2147483647, %v2871_v36 }
  0xb5   : > { %2617 = vlog2.f32 %v491_v46  ;;  %v430_v51 = vadd.f32 0.0001, %v426_v47  ;;  %v557_v62 = vsub.f32 0.0, %v553_v28  ;;  %v473_v23 = vmax.f32 %v2871_v36, 0.0 }
  0xb6   : > { %4255 = vst [vmem:[#allocation2_spill] sm:$0xff] %v2876_v49  ;;  %v502_v53 = vadd.f32 %v495_v39, %v470_v38  ;;  %1978 = vperm.xlu1 %2423, %v2876_v49   ;;  %939 = vperm.xlu0 %2416, %v2876_v49   ;;  %v481_v57 = vsub.f32 0.0, %v477_v50  ;;  %v4151_v38 = vmov 3   ;;  %v554_v41 = vand.u32 2147483647, %v545_v30 }
  0xb7   : > { %v2612_v56 = vpop.eup %2611  ;;  %2345 = vmatmul.msk.f32.gmra.mxu0 %vm587_vm2, %v430_v51  ;;  %v563_v4 = vmul.f32 1.442695, %v557_v62  ;;  %v4166_v43 = vmov 4   ;;  %v4159_v46 = vmov 6   ;;  %v550_v48 = vmax.f32 %v545_v30, 0.0 }
  0xb8   : > { %v2614_v59 = vpop.eup %2613  ;;  %v506_v60 = vadd.f32 0.0001, %v502_v53  ;;  %v574_v61 = vmul.f32 0.6931472, %v2612_v56  ;;  %v488_v1 = vmul.f32 1.442695, %v481_v57 }
  0xb9   : > { %v492_v0 = vadd.f32 1.0, %v2614_v59  ;;  %v558_v25 = vsub.f32 0.0, %v554_v41  ;;  %v4149_v53 = vmov 9  }
  0xba   : > { %v2616_v2 = vpop.eup %2615  ;;  %v580_v52 = vadd.f32 %v574_v61, %v548_v54  ;;  %2349 = vmatmul.msk.f32.vlgmr.msrb.gmra.mxu3 %vm587_vm2, %v506_v60 }
  0xbb   : > { %v2618_v5 = vpop.eup %2617  ;;  %v422_v6 = vmul.f32 0.6931472, %v2616_v2  ;;  %2619 = vlog2.f32 %v492_v0  ;;  %v565_v42 = vmul.f32 1.442695, %v558_v25 }
  0xbc   : > { %v2887_v7 = vadd.f32 0.0001, %v580_v52  ;;  %2621 = vpow2.f32 %v488_v1  ;;  %v497_v8 = vmul.f32 0.6931472, %v2618_v5 }
  0xbd   : > { %v427_v9 = vadd.f32 %v422_v6, %v395_v63  ;;  %2623 = vpow2.f32 %v563_v4 }
  0xbe   : > { %4256 = vst [vmem:[#allocation3_spill] sm:$0xff] %v2887_v7  ;;  %2424 = vset.pattern.permute.xlu1 %v4157_v32  ;;  %2417 = vset.pattern.permute.xlu0 %v4147_v55  ;;  %v503_v10 = vadd.f32 %v497_v8, %v471_v3 }
  0xbf   : > { %v431_v11 = vadd.f32 0.0001, %v427_v9  ;;  %944 = vperm.xlu1 %2424, %v2887_v7   ;;  %1090 = vperm.xlu0 %2417, %v2876_v49  }
  0xc0   : > { %v507_v12 = vadd.f32 0.0001, %v503_v10 }
  0xc1   : > { %v2620_v13 = vpop.eup %2619  ;;  %2346 = vmatmul.msk.f32.vlgmr.msrb.gmra.mxu2 %vm587_vm2, %v431_v11 }
  0xc2   : > { %v2622_v15 = vpop.eup %2621  ;;  %2350 = vmatmul.msk.f32.gmra.mxu3 %vm587_vm2, %v507_v12  ;;  %v499_v16 = vmul.f32 0.6931472, %v2620_v13 }
  0xc3   : > { %v2624_v17 = vpop.eup %2623  ;;  %v493_v18 = vadd.f32 1.0, %v2622_v15 }
  0xc4   : > { %v504_v19 = vadd.f32 %v499_v16, %v472_v58  ;;  %v569_v21 = vadd.f32 1.0, %v2624_v17 }
  0xc5   : > { %2625 = vlog2.f32 %v493_v18 }
  0xc6   : > { %v508_v20 = vadd.f32 0.0001, %v504_v19  ;;  %2627 = vlog2.f32 %v569_v21 }
  0xc7   : > { %2425 = vset.pattern.permute.xlu1 %v4147_v55  ;;  %2418 = vset.pattern.permute.xlu0 %v4145_v22  ;;  %2629 = vpow2.f32 %v565_v42 }
  0xc8   : > { %1094 = vperm.xlu1 %2425, %v2887_v7   ;;  %1238 = vperm.xlu0 %2418, %v2876_v49  }
  0xca   : > { %2351 = vmatmul.msk.f32.gmra.mxu3 %vm587_vm2, %v508_v20 }
  0xcb   : > { %v2626_v24 = vpop.eup %2625 }
  0xcc   : > { %v2628_v27 = vpop.eup %2627  ;;  %v501_v29 = vmul.f32 0.6931472, %v2626_v24 }
  0xcd   : > { %v576_v33 = vmul.f32 0.6931472, %v2628_v27  ;;  %v2630_v36 = vpop.eup %2629 }
  0xce   : > { %v505_v35 = vadd.f32 %v501_v29, %v473_v23  ;;  %v570_v45 = vadd.f32 1.0, %v2630_v36 }
  0xcf   : > { %v581_v37 = vadd.f32 %v576_v33, %v549_v26 }
  0xd0   : > { %2426 = vset.pattern.permute.xlu1 %v4145_v22  ;;  %2419 = vset.pattern.permute.xlu0 %v4151_v38  ;;  %v509_v40 = vadd.f32 0.0001, %v505_v35  ;;  %2631 = vlog2.f32 %v570_v45 }
  0xd1   : > { %v2906_v34 = vadd.f32 0.0001, %v581_v37  ;;  %1242 = vperm.xlu1 %2426, %v2887_v7   ;;  %1386 = vperm.xlu0 %2419, %v2876_v49  }
  0xd2   : > { %2352 = vmatmul.msk.f32.gmra.mxu3 %vm587_vm2, %v509_v40 }
  0xd3   : > { %4257 = vst [vmem:[#allocation4_spill] sm:$0xff] %v2906_v34  ;;  %949 = vperm.xlu2 %2431, %v2906_v34  }
  0xd6   : > { %v2632_v47 = vpop.eup %2631 }
  0xd7   : > { %v578_v39 = vmul.f32 0.6931472, %v2632_v47 }
  0xd9   : > { %2427 = vset.pattern.permute.xlu1 %v4151_v38  ;;  %2420 = vset.pattern.permute.xlu0 %v4166_v43  ;;  %v582_v50 = vadd.f32 %v578_v39, %v550_v48 }
  0xda   : > { %1390 = vperm.xlu1 %2427, %v2887_v7   ;;  %1534 = vperm.xlu0 %2420, %v2876_v49  }
  0xdb   : > { %2432 = vset.pattern.permute.xlu2 %v4147_v55  ;;  %v2934_v51 = vadd.f32 0.0001, %v582_v50 }
  0xdc   : > { %1098 = vperm.xlu2 %2432, %v2906_v34  }
  0xdd   : > { %4258 = vst [vmem:[#allocation5_spill] sm:$0xff] %v2934_v51 }
  0xe2   : > { %2428 = vset.pattern.permute.xlu1 %v4166_v43  ;;  %2421 = vset.pattern.permute.xlu0 %v4155_v44 }
  0xe3   : > { %1538 = vperm.xlu1 %2428, %v2887_v7   ;;  %1682 = vperm.xlu0 %2421, %v2876_v49  }
  0xe4   : > { %2433 = vset.pattern.permute.xlu2 %v4145_v22 }
  0xe5   : > { %1246 = vperm.xlu2 %2433, %v2906_v34  }
  0xeb   : > { %2429 = vset.pattern.permute.xlu1 %v4155_v44  ;;  %2422 = vset.pattern.permute.xlu0 %v4159_v46 }
  0xec   : > { %1686 = vperm.xlu1 %2429, %v2887_v7   ;;  %1830 = vperm.xlu0 %2422, %v2876_v49   ;;  %v4293_v49 = vmov 7  }
  0xed   : > { %2434 = vset.pattern.permute.xlu2 %v4151_v38 }
  0xee   : > { %1394 = vperm.xlu2 %2434, %v2906_v34  }
  0xf4   : > { %2430 = vset.pattern.permute.xlu1 %v4159_v46  ;;  %2445 = vset.pattern.permute.xlu0 %v4149_v53 }
  0xf5   : > { %1834 = vperm.xlu1 %2430, %v2887_v7  }
  0xf6   : > { %2435 = vset.pattern.permute.xlu2 %v4166_v43 }
  0xf7   : > { %1542 = vperm.xlu2 %2435, %v2906_v34  }
  0xfd   : > { %2438 = vset.pattern.permute.xlu1 %v4157_v32 }
  0xfe   : > { %954 = vperm.xlu1 %2438, %v2934_v51  }
  0xff   : > { %2436 = vset.pattern.permute.xlu2 %v4155_v44 }
 0x100   : > { %1690 = vperm.xlu2 %2436, %v2906_v34  }
 0x106   : > { %2439 = vset.pattern.permute.xlu1 %v4147_v55 }
 0x107   : > { %1102 = vperm.xlu1 %2439, %v2934_v51  }
 0x108   : > { %2437 = vset.pattern.permute.xlu2 %v4159_v46 }
 0x109   : > { %1838 = vperm.xlu2 %2437, %v2906_v34  }
 0x10f   : > { %2440 = vset.pattern.permute.xlu1 %v4145_v22 }
 0x110   : > { %1250 = vperm.xlu1 %2440, %v2934_v51  }
 0x111   : > { %2447 = vset.pattern.permute.xlu2 %v4149_v53 }
 0x118   : > { %2441 = vset.pattern.permute.xlu1 %v4151_v38 }
 0x119   : > { %1398 = vperm.xlu1 %2441, %v2934_v51  }
 0x121   : > { %2442 = vset.pattern.permute.xlu1 %v4166_v43 }
 0x122   : > { %1546 = vperm.xlu1 %2442, %v2934_v51  }
 0x128   : > { %v2952_v54 = vpop.permute.xlu1 %1978  ;;  %v3005_v47 = vpop.permute.xlu0 %939 }
 0x129   : > { %4259 = vst [vmem:[#allocation6_spill] sm:$0xff] %v2952_v54 }
 0x12a   : > { %2443 = vset.pattern.permute.xlu1 %v4155_v44  ;;  %4260 = vst [vmem:[#allocation7_spill] sm:$0xff] %v3005_v47  ;;  %v4303_v47 = vmov 8  }
 0x12b   : > { %1694 = vperm.xlu1 %2443, %v2934_v51  }
 0x12c   : > { %v2956_v28 = vpop.f32.mrf.mxu0 }
 0x12d   : > { %2633 = vrcp.f32 %v2956_v28 }
 0x131   : > { %v2959_v56 = vpop.permute.xlu1 %944  ;;  %v3010_v39 = vpop.permute.xlu0 %1090 }
 0x132   : > { %4262 = vst [vmem:[#allocation9_spill] sm:$0xff] %v3010_v39 }
 0x133   : > { %v2634_v57 = vpop.eup %2633  ;;  %v2961_v59 = vpop.f32.mrf.mxu3  ;;  %2444 = vset.pattern.permute.xlu1 %v4159_v46 }
 0x134   : > { %v678_v60 = vmul.f32 %v2634_v57, %v2956_v28  ;;  %2635 = vrcp.f32 %v2961_v59  ;;  %1842 = vperm.xlu1 %2444, %v2934_v51   ;;  %v2967_v61 = vpop.f32.mrf.mxu0 }
 0x135   : > { %2637 = vrcp.f32 %v2967_v61 }
 0x136   : > { %v682_v62 = vsub.f32 2.0, %v678_v60 }
 0x138   : > { %v686_v63 = vmul.f32 %v2634_v57, %v682_v62 }
 0x13a   : > { %v2636_v0 = vpop.eup %2635  ;;  %692 = vperm.xlu0 %2445, %v686_v63   ;;  %v2972_v3 = vpop.permute.xlu1 %1094 }
 0x13b   : > { %v2638_v1 = vpop.eup %2637  ;;  %v681_v2 = vmul.f32 %v2636_v0, %v2961_v59  ;;  %v3014_v57 = vpop.permute.xlu0 %1238 }
 0x13c   : > { %v679_v52 = vmul.f32 %v2638_v1, %v2967_v61  ;;  %2446 = vset.pattern.permute.xlu1 %v4149_v53  ;;  %4264 = vst [vmem:[#allocation11_spill] sm:$0xff] %v3014_v57  ;;  %v3020_v63 = vpop.permute.xlu2 %949 }
 0x13d   : > { %v685_v4 = vsub.f32 2.0, %v681_v2  ;;  %v2975_v5 = vpop.f32.mrf.mxu3 }
 0x13e   : > { %v683_v6 = vsub.f32 2.0, %v679_v52  ;;  %2639 = vrcp.f32 %v2975_v5 }
 0x13f   : > { %v689_v8 = vmul.f32 %v2636_v0, %v685_v4 }
 0x140   : > { %v687_v9 = vmul.f32 %v2638_v1, %v683_v6 }
 0x141   : > { %707 = vperm.xlu1 %2446, %v689_v8  }
 0x142   : > { %697 = vperm.xlu0 %2445, %v687_v9  }
 0x143   : > { %v2985_v13 = vpop.permute.xlu1 %1242  ;;  %v3018_v62 = vpop.permute.xlu0 %1386 }
 0x144   : > { %v2640_v10 = vpop.eup %2639  ;;  %v2978_v11 = vpop.f32.mrf.mxu2  ;;  %4266 = vst [vmem:[#allocation13_spill] sm:$0xff] %v3018_v62 }
 0x145   : > { %v718_v58 = vmul.f32 %v2640_v10, %v2975_v5  ;;  %2641 = vrcp.f32 %v2978_v11  ;;  %v2982_v12 = vpop.f32.mrf.mxu3  ;;  %v3026_v2 = vpop.permute.xlu2 %1098 }
 0x146   : > { %2643 = vrcp.f32 %v2982_v12 }
 0x147   : > { %v722_v15 = vsub.f32 2.0, %v718_v58 }
 0x149   : > { %v726_v16 = vmul.f32 %v2640_v10, %v722_v15 }
 0x14b   : > { %v2642_v17 = vpop.eup %2641  ;;  %732 = vperm.xlu2 %2447, %v726_v16  }
 0x14c   : > { %v2644_v18 = vpop.eup %2643  ;;  %v680_v19 = vmul.f32 %v2642_v17, %v2978_v11  ;;  %v2992_v24 = vpop.permute.xlu1 %1390 }
 0x14d   : > { %v719_v21 = vmul.f32 %v2644_v18, %v2982_v12  ;;  %v2989_v20 = vpop.f32.mrf.mxu3  ;;  %v3024_v1 = vpop.permute.xlu0 %1534 }
 0x14e   : > { %v684_v14 = vsub.f32 2.0, %v680_v19  ;;  %2645 = vrcp.f32 %v2989_v20  ;;  %4268 = vst [vmem:[#allocation15_spill] sm:$0xff] %v3024_v1  ;;  %v3032_v6 = vpop.permute.xlu2 %1246 }
 0x14f   : > { %v723_v23 = vsub.f32 2.0, %v719_v21 }
 0x150   : > { %v688_v26 = vmul.f32 %v2642_v17, %v684_v14 }
 0x151   : > { %v727_v27 = vmul.f32 %v2644_v18, %v723_v23 }
 0x152   : > { %702 = vperm.xlu1 %2446, %v688_v26  }
 0x153   : > { %737 = vperm.xlu2 %2447, %v727_v27  }
 0x154   : > { %v2646_v29 = vpop.eup %2645 }
 0x155   : > { %v720_v30 = vmul.f32 %v2646_v29, %v2989_v20  ;;  %v2995_v33 = vpop.f32.mrf.mxu3  ;;  %v2998_v40 = vpop.permute.xlu1 %1538 }
 0x156   : > { %2647 = vrcp.f32 %v2995_v33  ;;  %v3030_v4 = vpop.permute.xlu0 %1682  ;;  %v3038_v10 = vpop.permute.xlu2 %1394 }
 0x157   : > { %v724_v35 = vsub.f32 2.0, %v720_v30  ;;  %4270 = vst [vmem:[#allocation17_spill] sm:$0xff] %v3030_v4 }
 0x159   : > { %v728_v37 = vmul.f32 %v2646_v29, %v724_v35 }
 0x15b   : > { %742 = vperm.xlu0 %2445, %v728_v37   ;;  %2448 = vset.pattern.permute.xlu2 %v4147_v55 }
 0x15c   : > { %v2648_v41 = vpop.eup %2647 }
 0x15d   : > { %v721_v25 = vmul.f32 %v2648_v41, %v2995_v33 }
 0x15e   : > { %v3003_v45 = vpop.permute.xlu1 %1686  ;;  %v3036_v9 = vpop.permute.xlu0 %1830 }
 0x15f   : > { %v725_v42 = vsub.f32 2.0, %v721_v25  ;;  %4272 = vst [vmem:[#allocation19_spill] sm:$0xff] %v3036_v9  ;;  %v3045_v17 = vpop.permute.xlu2 %1542 }
 0x161   : > { %v729_v36 = vmul.f32 %v2648_v41, %v725_v42 }
 0x163   : > { %747 = vperm.xlu1 %2446, %v729_v36   ;;  %2465 = vset.pattern.permute.xlu0 %v4147_v55 }
 0x167   : > { %v3008_v48 = vpop.permute.xlu1 %1834 }
 0x168   : > { %4261 = vst [vmem:[#allocation8_spill] sm:$0xff] %v3008_v48 }
 0x16b   : > { %2449 = vset.pattern.permute.xlu1 %v4157_v32 }
 0x170   : > { %v3012_v50 = vpop.permute.xlu1 %954 }
 0x171   : > { %4263 = vst [vmem:[#allocation10_spill] sm:$0xff] %v3012_v50 }
 0x179   : > { %v3016_v60 = vpop.permute.xlu1 %1102 }
 0x17a   : > { %4265 = vst [vmem:[#allocation12_spill] sm:$0xff] %v3016_v60 }
 0x182   : > { %v3022_v0 = vpop.permute.xlu1 %1250 }
 0x183   : > { %4267 = vst [vmem:[#allocation14_spill] sm:$0xff] %v3022_v0 }
 0x18b   : > { %v3028_v52 = vpop.permute.xlu1 %1398 }
 0x18c   : > { %4269 = vst [vmem:[#allocation16_spill] sm:$0xff] %v3028_v52  ;;  %v4290_v52 = vmov 0  }
 0x194   : > { %v3034_v8 = vpop.permute.xlu1 %1546 }
 0x195   : > { %4271 = vst [vmem:[#allocation18_spill] sm:$0xff] %v3034_v8 }
 0x19d   : > { %v3040_v58 = vpop.permute.xlu1 %1694 }
 0x19e   : > { %4273 = vst [vmem:[#allocation20_spill] sm:$0xff] %v3040_v58 }
 0x1a6   : > { %v3049_v18 = vpop.permute.xlu1 %1842 }
 0x1a7   : > { %4274 = vst [vmem:[#allocation21_spill] sm:$0xff] %v3049_v18 }
 0x1ac   : > { %v693_v15 = vpop.permute.xlu0 %692 }
 0x1ad   : > { %v3043_v16 = vmul.f32 %v693_v15, %v2956_v28  ;;  %v3057_v28 = vpop.permute.xlu2 %1690 }
 0x1af   : > { %794 = vperm.xlu1 %2449, %v3043_v16   ;;  %756 = vperm.xlu2 %2448, %v3043_v16  }
 0x1b3   : > { %v708_v14 = vpop.permute.xlu1 %707 }
 0x1b4   : > { %v698_v19 = vpop.permute.xlu0 %697  ;;  %v3062_v23 = vmul.f32 %v708_v14, %v2961_v59 }
 0x1b5   : > { %v3052_v21 = vmul.f32 %v698_v19, %v2967_v61  ;;  %v3069_v61 = vpop.permute.xlu2 %1838 }
 0x1b7   : > { %845 = vrot.lane.b32.xlu1 %v3043_v16, %s2691_s12  ;;  %2450 = vset.pattern.permute.xlu2 %v4145_v22 }
 0x1b8   : > { %761 = vperm.xlu0 %2465, %v3052_v21   ;;  %966 = vperm.xlu2 %2450, %v3043_v16  }
 0x1bd   : > { %v733_v59 = vpop.permute.xlu2 %732 }
 0x1be   : > { %v3079_v26 = vmul.f32 %v733_v59, %v2975_v5  ;;  %v4161_v5 = vmov 8   ;;  %v3174_v59 = vld [vmem:[%s4135_s0] ss:$0 sm:$0xff] }
 0x1bf   : > { %806 = vperm.xlu1 %2449, %v3062_v23  }
 0x1c0   : > { %2467 = vset.pattern.permute.xlu0 %v4145_v22  ;;  %2451 = vset.pattern.permute.xlu2 %v4151_v38  ;;  %4275 = vst [vmem:[#allocation22_spill] sm:$0xff] %v3079_v26 }
 0x1c1   : > { %970 = vperm.xlu0 %2467, %v3052_v21   ;;  %1114 = vperm.xlu2 %2451, %v3043_v16  }
 0x1c4   : > { %v703_v27 = vpop.permute.xlu1 %702 }
 0x1c5   : > { %v3107_v29 = vmul.f32 %v703_v27, %v2978_v11  ;;  %v738_v11 = vpop.permute.xlu2 %737 }
 0x1c6   : > { %v3149_v42 = vmul.f32 %v738_v11, %v2982_v12  ;;  %v4163_v11 = vmov 0.0  }
 0x1c7   : > { %851 = vrot.lane.b32.xlu1 %v3062_v23, %s2691_s12  ;;  %4276 = vst [vmem:[#allocation23_spill] sm:$0xff] %v3107_v29 }
 0x1c8   : > { %2473 = vset.pattern.permute.xlu1 %v4147_v55  ;;  %4280 = vst [vmem:[#allocation27_spill] sm:$0xff] %v3149_v42 }
 0x1c9   : > { %2468 = vset.pattern.permute.xlu0 %v4151_v38  ;;  %2452 = vset.pattern.permute.xlu2 %v4166_v43 }
 0x1ca   : > { %1118 = vperm.xlu0 %2468, %v3052_v21   ;;  %1262 = vperm.xlu2 %2452, %v3043_v16  }
 0x1cd   : > { %v743_v30 = vpop.permute.xlu0 %742 }
 0x1ce   : > { %v3123_v35 = vmul.f32 %v743_v30, %v2989_v20 }
 0x1cf   : > { %889 = vrot.lane.b32.xlu1 %v3079_v26, %s2691_s12 }
 0x1d2   : > { %2469 = vset.pattern.permute.xlu0 %v4166_v43  ;;  %2453 = vset.pattern.permute.xlu2 %v4155_v44 }
 0x1d3   : > { %1266 = vperm.xlu0 %2469, %v3052_v21   ;;  %1410 = vperm.xlu2 %2453, %v3043_v16  }
 0x1d5   : > { %v3142_v41 = vpop.permute.xlu1 %747 }
 0x1d7   : > { %1010 = vperm.xlu1 %2473, %v3079_v26  }
 0x1db   : > { %2470 = vset.pattern.permute.xlu0 %v4155_v44  ;;  %2454 = vset.pattern.permute.xlu2 %v4159_v46 }
 0x1dc   : > { %1414 = vperm.xlu0 %2470, %v3052_v21   ;;  %1558 = vperm.xlu2 %2454, %v3043_v16  }
 0x1df   : > { %2474 = vset.pattern.permute.xlu1 %v4145_v22 }
 0x1e0   : > { %1158 = vperm.xlu1 %2474, %v3079_v26  }
 0x1e4   : > { %2471 = vset.pattern.permute.xlu0 %v4159_v46  ;;  %2455 = vset.pattern.permute.xlu2 %v4153_v31 }
 0x1e5   : > { %1562 = vperm.xlu0 %2471, %v3052_v21   ;;  %1706 = vperm.xlu2 %2455, %v3043_v16  }
 0x1e8   : > { %2475 = vset.pattern.permute.xlu1 %v4151_v38 }
 0x1e9   : > { %1306 = vperm.xlu1 %2475, %v3079_v26  }
 0x1ed   : > { %2472 = vset.pattern.permute.xlu0 %v4153_v31  ;;  %2456 = vset.pattern.permute.xlu2 %v4161_v5 }
 0x1ee   : > { %1710 = vperm.xlu0 %2472, %v3052_v21   ;;  %1854 = vperm.xlu2 %2456, %v3043_v16  }
 0x1f1   : > { %2476 = vset.pattern.permute.xlu1 %v4166_v43 }
 0x1f2   : > { %1454 = vperm.xlu1 %2476, %v3079_v26  }
 0x1f6   : > { %2481 = vset.pattern.permute.xlu0 %v4157_v32  ;;  %2457 = vset.pattern.permute.xlu2 %v4147_v55 }
 0x1f7   : > { %802 = vperm.xlu0 %2481, %v3107_v29   ;;  %771 = vperm.xlu2 %2457, %v3062_v23  }
 0x1fa   : > { %2477 = vset.pattern.permute.xlu1 %v4155_v44 }
 0x1fb   : > { %1602 = vperm.xlu1 %2477, %v3079_v26  }
 0x1ff   : > { %849 = vrot.lane.b32.xlu0 %v3107_v29, %s2691_s12  ;;  %2458 = vset.pattern.permute.xlu2 %v4145_v22 }
 0x200   : > { %978 = vperm.xlu2 %2458, %v3062_v23   ;;  %2498 = vset.pattern.permute.xlu0 %v4147_v55 }
 0x203   : > { %2478 = vset.pattern.permute.xlu1 %v4159_v46 }
 0x204   : > { %1750 = vperm.xlu1 %2478, %v3079_v26  }
 0x207   : > { %893 = vrot.lane.b32.xlu0 %v3123_v35, %s2691_s12 }
 0x208   : > { %2459 = vset.pattern.permute.xlu2 %v4151_v38 }
 0x209   : > { %1126 = vperm.xlu2 %2459, %v3062_v23   ;;  %v3129_v37 = vpop.permute.xlu2 %756 }
 0x20a   : > { %4277 = vst [vmem:[#allocation24_spill] sm:$0xff] %v3129_v37 }
 0x20c   : > { %2479 = vset.pattern.permute.xlu1 %v4153_v31 }
 0x20d   : > { %1898 = vperm.xlu1 %2479, %v3079_v26  }
 0x20f   : > { %1018 = vperm.xlu0 %2498, %v3123_v35  }
 0x211   : > { %2460 = vset.pattern.permute.xlu2 %v4166_v43 }
 0x212   : > { %1274 = vperm.xlu2 %2460, %v3062_v23   ;;  %v3136_v20 = vpop.permute.xlu2 %966 }
 0x213   : > { %4278 = vst [vmem:[#allocation25_spill] sm:$0xff] %v3136_v20 }
 0x215   : > { %2480 = vset.pattern.permute.xlu1 %v4147_v55 }
 0x216   : > { %766 = vperm.xlu1 %2480, %v3107_v29  }
 0x217   : > { %2499 = vset.pattern.permute.xlu0 %v4145_v22 }
 0x218   : > { %1166 = vperm.xlu0 %2499, %v3123_v35  }
 0x21a   : > { %2461 = vset.pattern.permute.xlu2 %v4155_v44 }
 0x21b   : > { %1422 = vperm.xlu2 %2461, %v3062_v23   ;;  %v3146_v25 = vpop.permute.xlu2 %1114 }
 0x21c   : > { %4279 = vst [vmem:[#allocation26_spill] sm:$0xff] %v3146_v25 }
 0x21e   : > { %2482 = vset.pattern.permute.xlu1 %v4157_v32 }
 0x21f   : > { %824 = vperm.xlu1 %2482, %v3149_v42  }
 0x220   : > { %2500 = vset.pattern.permute.xlu0 %v4151_v38 }
 0x221   : > { %1314 = vperm.xlu0 %2500, %v3123_v35   ;;  %v3155_v36 = vpop.permute.xlu1 %794 }
 0x222   : > { %4281 = vst [vmem:[#allocation28_spill] sm:$0xff] %v3155_v36 }
 0x223   : > { %2462 = vset.pattern.permute.xlu2 %v4159_v46 }
 0x224   : > { %1570 = vperm.xlu2 %2462, %v3062_v23   ;;  %v3159_v15 = vpop.permute.xlu2 %1262 }
 0x225   : > { %4282 = vst [vmem:[#allocation29_spill] sm:$0xff] %v3159_v15 }
 0x227   : > { %2483 = vset.pattern.permute.xlu1 %v4145_v22 }
 0x228   : > { %974 = vperm.xlu1 %2483, %v3107_v29  }
 0x229   : > { %2501 = vset.pattern.permute.xlu0 %v4166_v43  ;;  %v3164_v12 = vpop.permute.xlu1 %845 }
 0x22a   : > { %1462 = vperm.xlu0 %2501, %v3123_v35   ;;  %v762_v19 = vpop.permute.xlu0 %761  ;;  %v3268_v62 = vsub.f32 %v3043_v16, %v3164_v12 }
 0x22b   : > { %vm778_vm3 = vcmp.lt.f32.partialorder %v762_v19, %v3174_v59 }
 0x22c   : > { %2463 = vset.pattern.permute.xlu2 %v4153_v31  ;;  %v2354_v30 = vsel %vm778_vm3, 1.0, %v4163_v11 }
 0x22d   : > { %1718 = vperm.xlu2 %2463, %v3062_v23   ;;  %v3169_v14 = vpop.permute.xlu2 %1410  ;;  %v3187_v53 = vsub.f32 1.0, %v2354_v30 }
 0x22e   : > { %4283 = vst [vmem:[#allocation30_spill] sm:$0xff] %v3169_v14 }
 0x22f   : > { %4285 = vst [vmem:[#allocation32_spill] sm:$0xff] %v3187_v53 }
 0x230   : > { %2485 = vset.pattern.permute.xlu1 %v4151_v38 }
 0x231   : > { %1122 = vperm.xlu1 %2485, %v3107_v29   ;;  %v3179_v27 = vpop.permute.xlu1 %806 }
 0x232   : > { %4284 = vst [vmem:[#allocation31_spill] sm:$0xff] %v3179_v27  ;;  %2502 = vset.pattern.permute.xlu0 %v4155_v44  ;;  %v4292_v27 = vmov 5  }
 0x233   : > { %1610 = vperm.xlu0 %2502, %v3123_v35   ;;  %v971_v22 = vpop.permute.xlu0 %970 }
 0x234   : > { %vm982_vm4 = vcmp.lt.f32.partialorder %v971_v22, %v3174_v59 }
 0x235   : > { %v2358_v55 = vsel %vm982_vm4, 1.0, %v4163_v11  ;;  %2464 = vset.pattern.permute.xlu2 %v4161_v5  ;;  %v958_v5 = vmul.f32 %v2959_v56, %v3187_v53 }
 0x236   : > { %v994_v38 = vsub.f32 1.0, %v2358_v55  ;;  %1866 = vperm.xlu2 %2464, %v3062_v23   ;;  %v3190_v31 = vpop.permute.xlu2 %1558 }
 0x237   : > { %4286 = vst [vmem:[#allocation33_spill] sm:$0xff] %v3190_v31 }
 0x238   : > { %v3192_v44 = vmul.f32 %v2354_v30, %v994_v38  ;;  %v4288_v38 = vmov 6  }
 0x239   : > { %2487 = vset.pattern.permute.xlu1 %v4166_v43  ;;  %v3195_v32 = vpop.permute.xlu1 %851 }
 0x23a   : > { %4287 = vst [vmem:[#allocation34_spill] sm:$0xff] %v3192_v44  ;;  %1270 = vperm.xlu1 %2487, %v3107_v29   ;;  %v3199_v46 = vmul.f32 %v3192_v44, %v762_v19  ;;  %v1082_v11 = vmul.f32 %v3192_v44, %v2959_v56  ;;  %v1106_v18 = vmul.f32 %v2972_v3, %v3192_v44  ;;  %v4289_v19 = vmov 0.0  }
 0x23b   : > { %2503 = vset.pattern.permute.xlu0 %v4288_v38 }
 0x23c   : > { %1758 = vperm.xlu0 %2503, %v3123_v35   ;;  %v1119_v30 = vpop.permute.xlu0 %1118  ;;  %v1086_v43 = vadd.f32 %v1082_v11, %v3187_v53  ;;  %v1110_v58 = vadd.f32 %v1106_v18, %v958_v5 }
 0x23d   : > { %vm1130_vm5 = vcmp.lt.f32.partialorder %v1119_v30, %v3174_v59 }
 0x23e   : > { %v2362_v8 = vsel %vm1130_vm5, 1.0, %v4289_v19  ;;  %2466 = vset.pattern.permute.xlu2 %v4290_v52 }
 0x23f   : > { %v1142_v0 = vsub.f32 1.0, %v2362_v8  ;;  %v3213_v60 = vpop.permute.xlu2 %1706  ;;  %798 = vperm.xlu2 %2466, %v3052_v21  }
 0x240   : > { %4291 = vst [vmem:[#allocation35_spill] sm:$0xff] %v3213_v60 }
 0x241   : > { %v3216_v56 = vmul.f32 %v2358_v55, %v1142_v0  ;;  %v3218_v50 = vpop.permute.xlu1 %889 }
 0x242   : > { %2489 = vset.pattern.permute.xlu1 %v4292_v27 }
 0x243   : > { %1418 = vperm.xlu1 %2489, %v3107_v29   ;;  %v3223_v18 = vmul.f32 %v3216_v56, %v971_v22  ;;  %v1230_v5 = vmul.f32 %v3216_v56, %v2972_v3  ;;  %v1254_v11 = vmul.f32 %v2985_v13, %v3216_v56 }
 0x244   : > { %2504 = vset.pattern.permute.xlu0 %v4293_v49 }
 0x245   : > { %1906 = vperm.xlu0 %2504, %v3123_v35   ;;  %v1267_v55 = vpop.permute.xlu0 %1266  ;;  %v1234_v0 = vadd.f32 %v1230_v5, %v1086_v43  ;;  %v1258_v54 = vadd.f32 %v1254_v11, %v1110_v58  ;;  %v3244_v43 = vmul.f32 %v3142_v41, %v2995_v33 }
 0x246   : > { %vm1278_vm6 = vcmp.lt.f32.partialorder %v1267_v55, %v3174_v59 }
 0x247   : > { %v2366_v9 = vsel %vm1278_vm6, 1.0, %v4289_v19  ;;  %847 = vrot.lane.b32.xlu2 %v3052_v21, %s2691_s12  ;;  %4296 = vst [vmem:[#allocation38_spill] sm:$0xff] %v3244_v43 }
 0x248   : > { %v1290_v22 = vsub.f32 1.0, %v2366_v9  ;;  %v3235_v51 = vpop.permute.xlu2 %1854 }
 0x249   : > { %4294 = vst [vmem:[#allocation36_spill] sm:$0xff] %v3235_v51  ;;  %v3237_v3 = vpop.permute.xlu1 %1010 }
 0x24a   : > { %4295 = vst [vmem:[#allocation37_spill] sm:$0xff] %v3237_v3  ;;  %v3239_v4 = vmul.f32 %v2362_v8, %v1290_v22 }
 0x24b   : > { %2491 = vset.pattern.permute.xlu1 %v4288_v38 }
 0x24c   : > { %1566 = vperm.xlu1 %2491, %v3107_v29   ;;  %v3248_v58 = vmul.f32 %v3239_v4, %v1119_v30  ;;  %v1378_v5 = vmul.f32 %v3239_v4, %v2985_v13  ;;  %v1402_v11 = vmul.f32 %v2992_v24, %v3239_v4 }
 0x24d   : > { %2505 = vset.pattern.permute.xlu0 %v4290_v52 }
 0x24e   : > { %834 = vperm.xlu0 %2505, %v3244_v43   ;;  %v1415_v8 = vpop.permute.xlu0 %1414  ;;  %v1382_v22 = vadd.f32 %v1378_v5, %v1234_v0  ;;  %v1406_v3 = vadd.f32 %v1402_v11, %v1258_v54  ;;  %v4299_v11 = vmov 9  }
 0x24f   : > { %vm1426_vm7 = vcmp.lt.f32.partialorder %v1415_v8, %v3174_v59  ;;  %819 = vperm.xlu2 %2466, %v3079_v26  }
 0x250   : > { %v2370_v33 = vsel %vm1426_vm7, 1.0, %v4289_v19 }
 0x251   : > { %v1438_v41 = vsub.f32 1.0, %v2370_v33  ;;  %v3259_v30 = vpop.permute.xlu2 %771 }
 0x252   : > { %4297 = vst [vmem:[#allocation39_spill] sm:$0xff] %v3259_v30  ;;  %v3261_v13 = vpop.permute.xlu1 %1158  ;;  %vm780_vm3 = vcmp.lt.f32.partialorder %v3259_v30, %v3174_v59 }
 0x253   : > { %4298 = vst [vmem:[#allocation40_spill] sm:$0xff] %v3261_v13  ;;  %v3263_v1 = vmul.f32 %v2366_v9, %v1438_v41 }
 0x254   : > { %2493 = vset.pattern.permute.xlu1 %v4293_v49 }
 0x255   : > { %1714 = vperm.xlu1 %2493, %v3107_v29   ;;  %v3272_v54 = vmul.f32 %v3263_v1, %v1267_v55  ;;  %v1526_v0 = vmul.f32 %v3263_v1, %v2992_v24  ;;  %v1550_v5 = vmul.f32 %v2998_v40, %v3263_v1  ;;  %v4300_v55 = vmov 1  }
 0x256   : > { %2521 = vset.pattern.permute.xlu0 %v4299_v11 }
 0x257   : > { %2034 = vperm.xlu0 %2521, %v3268_v62   ;;  %v3280_v9 = vpop.permute.xlu0 %1562  ;;  %891 = vrot.lane.b32.xlu2 %v3149_v42, %s2691_s12  ;;  %v1530_v16 = vadd.f32 %v1526_v0, %v1382_v22  ;;  %v1554_v12 = vadd.f32 %v1550_v5, %v1406_v3  ;;  %v3297_v22 = vsub.f32 %v3062_v23, %v3195_v32 }
 0x258   : > { %vm1574_vm8 = vcmp.lt.f32.partialorder %v3280_v9, %v3174_v59  ;;  %2484 = vset.pattern.permute.xlu2 %v4300_v55 }
 0x259   : > { %v2374_v24 = vsel %vm1574_vm8, 1.0, %v4289_v19 }
 0x25a   : > { %v1586_v41 = vsub.f32 1.0, %v2374_v24  ;;  %v3288_v13 = vpop.permute.xlu2 %978 }
 0x25b   : > { %4301 = vst [vmem:[#allocation41_spill] sm:$0xff] %v3288_v13  ;;  %v3290_v57 = vpop.permute.xlu1 %1306  ;;  %vm984_vm2 = vcmp.lt.f32.partialorder %v3288_v13, %v3174_v59 }
 0x25c   : > { %4302 = vst [vmem:[#allocation42_spill] sm:$0xff] %v3290_v57  ;;  %v3292_v39 = vmul.f32 %v2370_v33, %v1586_v41  ;;  %v4304_v57 = vmov 2  }
 0x25d   : > { %2495 = vset.pattern.permute.xlu1 %v4303_v47 }
 0x25e   : > { %1862 = vperm.xlu1 %2495, %v3107_v29   ;;  %v3301_v3 = vmul.f32 %v3292_v39, %v1415_v8  ;;  %v1674_v0 = vmul.f32 %v3292_v39, %v2998_v40  ;;  %v1698_v5 = vmul.f32 %v3003_v45, %v3292_v39 }
 0x25f   : > { %2523 = vset.pattern.permute.xlu0 %v4304_v57  ;;  %1014 = vperm.xlu2 %2484, %v3149_v42  }
 0x260   : > { %1046 = vperm.xlu0 %2523, %v3297_v22   ;;  %v3310_v33 = vpop.permute.xlu0 %1710  ;;  %v1678_v32 = vadd.f32 %v1674_v0, %v1530_v16  ;;  %v1702_v23 = vadd.f32 %v1698_v5, %v1554_v12  ;;  %v4309_v0 = vmov 3  }
 0x261   : > { %4305 = vst [vmem:[#allocation43_spill] sm:$0xff] %v3310_v33  ;;  %vm1722_vm9 = vcmp.lt.f32.partialorder %v3310_v33, %v3174_v59 }
 0x262   : > { %v3315_v8 = vsel %vm1722_vm9, 1.0, %v4289_v19 }
 0x263   : > { %4306 = vst [vmem:[#allocation44_spill] sm:$0xff] %v3315_v8  ;;  %v1734_v40 = vsub.f32 1.0, %v3315_v8  ;;  %v3318_v41 = vpop.permute.xlu2 %1126 }
 0x264   : > { %4307 = vst [vmem:[#allocation45_spill] sm:$0xff] %v3318_v41  ;;  %v3320_v36 = vpop.permute.xlu1 %1454  ;;  %vm1132_vm4 = vcmp.lt.f32.partialorder %v3318_v41, %v3174_v59 }
 0x265   : > { %4308 = vst [vmem:[#allocation46_spill] sm:$0xff] %v3320_v36  ;;  %v3322_v51 = vmul.f32 %v2374_v24, %v1734_v40 }
 0x266   : > { %895 = vrot.lane.b32.xlu1 %v3244_v43, %s2691_s12 }
 0x267   : > { %2486 = vset.pattern.permute.xlu2 %v4304_v57  ;;  %2506 = vset.pattern.permute.xlu1 %v4300_v55  ;;  %v1822_v16 = vmul.f32 %v3322_v51, %v3003_v45  ;;  %v1846_v12 = vmul.f32 %v3008_v48, %v3322_v51  ;;  %v4314_v45 = vmov 4  }
 0x268   : > { %2524 = vset.pattern.permute.xlu0 %v4309_v0  ;;  %1162 = vperm.xlu2 %2486, %v3149_v42  }
 0x269   : > { %1194 = vperm.xlu0 %2524, %v3297_v22   ;;  %v3335_v24 = vadd.f32 %v1822_v16, %v1678_v32  ;;  %v3337_v5 = vadd.f32 %v1846_v12, %v1702_v23  ;;  %v803_v40 = vpop.permute.xlu0 %802 }
 0x26b   : > { %4310 = vst [vmem:[#allocation47_spill] sm:$0xff] %v3335_v24 }
 0x26c   : > { %4311 = vst [vmem:[#allocation48_spill] sm:$0xff] %v3337_v5  ;;  %v3339_v36 = vpop.permute.xlu2 %1274 }
 0x26d   : > { %4312 = vst [vmem:[#allocation49_spill] sm:$0xff] %v3339_v36  ;;  %v3341_v33 = vpop.permute.xlu1 %1602  ;;  %vm1280_vm5 = vcmp.lt.f32.partialorder %v3339_v36, %v3174_v59 }
 0x26e   : > { %4313 = vst [vmem:[#allocation50_spill] sm:$0xff] %v3341_v33  ;;  %1022 = vperm.xlu1 %2506, %v3244_v43  }
 0x270   : > { %2488 = vset.pattern.permute.xlu2 %v4309_v0 }
 0x271   : > { %2525 = vset.pattern.permute.xlu0 %v4314_v45  ;;  %1310 = vperm.xlu2 %2488, %v3149_v42   ;;  %v3350_v32 = vpop.permute.xlu0 %849 }
 0x272   : > { %1342 = vperm.xlu0 %2525, %v3297_v22   ;;  %4316 = vst [vmem:[#allocation52_spill] sm:$0xff] %v3350_v32 }
 0x275   : > { %v3348_v48 = vpop.permute.xlu2 %1422 }
 0x276   : > { %4315 = vst [vmem:[#allocation51_spill] sm:$0xff] %v3348_v48  ;;  %2507 = vset.pattern.permute.xlu1 %v4304_v57  ;;  %v3353_v23 = vpop.permute.xlu1 %1750  ;;  %vm1428_vm6 = vcmp.lt.f32.partialorder %v3348_v48, %v3174_v59 }
 0x277   : > { %4317 = vst [vmem:[#allocation53_spill] sm:$0xff] %v3353_v23  ;;  %1170 = vperm.xlu1 %2507, %v3244_v43  }
 0x279   : > { %2490 = vset.pattern.permute.xlu2 %v4314_v45  ;;  %v3365_v33 = vpop.permute.xlu0 %893 }
 0x27a   : > { %2526 = vset.pattern.permute.xlu0 %v4292_v27  ;;  %1458 = vperm.xlu2 %2490, %v3149_v42   ;;  %4320 = vst [vmem:[#allocation56_spill] sm:$0xff] %v3365_v33 }
 0x27b   : > { %1490 = vperm.xlu0 %2526, %v3297_v22  }
 0x27e   : > { %v3360_v16 = vpop.permute.xlu2 %1570 }
 0x27f   : > { %4318 = vst [vmem:[#allocation54_spill] sm:$0xff] %v3360_v16  ;;  %2508 = vset.pattern.permute.xlu1 %v4309_v0  ;;  %v3363_v12 = vpop.permute.xlu1 %1898 }
 0x280   : > { %4319 = vst [vmem:[#allocation55_spill] sm:$0xff] %v3363_v12  ;;  %1318 = vperm.xlu1 %2508, %v3244_v43  }
 0x281   : > { %v1019_v12 = vpop.permute.xlu0 %1018 }
 0x282   : > { %2492 = vset.pattern.permute.xlu2 %v4292_v27 }
 0x283   : > { %2527 = vset.pattern.permute.xlu0 %v4288_v38  ;;  %1606 = vperm.xlu2 %2492, %v3149_v42  }
 0x284   : > { %1638 = vperm.xlu0 %2527, %v3297_v22  }
 0x287   : > { %v3372_v23 = vpop.permute.xlu2 %1718 }
 0x288   : > { %4321 = vst [vmem:[#allocation57_spill] sm:$0xff] %v3372_v23  ;;  %2509 = vset.pattern.permute.xlu1 %v4314_v45  ;;  %v767_v5 = vpop.permute.xlu1 %766 }
 0x289   : > { %vm779_vm10 = vcmp.lt.f32.partialorder %v767_v5, %v3174_v59  ;;  %1466 = vperm.xlu1 %2509, %v3244_v43  }
 0x28a   : > { %v2355_v24 = vsel %vm779_vm10, 1.0, %v4289_v19  ;;  %v1167_v29 = vpop.permute.xlu0 %1166 }
 0x28b   : > { %v3378_v8 = vsub.f32 1.0, %v2355_v24  ;;  %2494 = vset.pattern.permute.xlu2 %v4288_v38 }
 0x28c   : > { %2528 = vset.pattern.permute.xlu0 %v4293_v49  ;;  %1754 = vperm.xlu2 %2494, %v3149_v42  }
 0x28d   : > { %4322 = vst [vmem:[#allocation58_spill] sm:$0xff] %v3378_v8  ;;  %1786 = vperm.xlu0 %2528, %v3297_v22   ;;  %v811_v33 = vmul.f32 %v803_v40, %v3378_v8  ;;  %v959_v20 = vmul.f32 %v3020_v63, %v3378_v8 }
 0x290   : > { %v3385_v60 = vpop.permute.xlu2 %1866 }
 0x291   : > { %4323 = vst [vmem:[#allocation59_spill] sm:$0xff] %v3385_v60  ;;  %2510 = vset.pattern.permute.xlu1 %v4292_v27  ;;  %v825_v31 = vpop.permute.xlu1 %824 }
 0x292   : > { %v3389_v14 = vmul.f32 %v825_v31, %v3187_v53  ;;  %1614 = vperm.xlu1 %2510, %v3244_v43  }
 0x293   : > { %v1315_v37 = vpop.permute.xlu0 %1314 }
 0x294   : > { %2496 = vset.pattern.permute.xlu2 %v4293_v49 }
 0x295   : > { %1902 = vperm.xlu2 %2496, %v3149_v42   ;;  %2531 = vset.pattern.permute.xlu0 %v4300_v55 }
 0x299   : > { %v799_v32 = vpop.permute.xlu2 %798 }
 0x29a   : > { %v810_v40 = vmul.f32 %v799_v32, %v3187_v53  ;;  %2511 = vset.pattern.permute.xlu1 %v4288_v38  ;;  %v975_v15 = vpop.permute.xlu1 %974 }
 0x29b   : > { %vm983_vm11 = vcmp.lt.f32.partialorder %v975_v15, %v3174_v59  ;;  %1762 = vperm.xlu1 %2511, %v3244_v43  }
 0x29c   : > { %v1006_v31 = vadd.f32 %v3199_v46, %v810_v40  ;;  %v2359_v60 = vsel %vm983_vm11, 1.0, %v4289_v19 }
 0x29d   : > { %v995_v25 = vsub.f32 1.0, %v2359_v60  ;;  %2497 = vset.pattern.permute.xlu2 %v4290_v52 }
 0x29e   : > { %v1154_v23 = vadd.f32 %v3223_v18, %v1006_v31  ;;  %829 = vperm.xlu2 %2497, %v3123_v35  }
 0x29f   : > { %v3404_v32 = vmul.f32 %v2355_v24, %v995_v25 }
 0x2a0   : > { %v1302_v53 = vadd.f32 %v3248_v58, %v1154_v23 }
 0x2a1   : > { %v848_v16 = vpop.permute.xlu2 %847  ;;  %v1003_v46 = vmul.f32 %v3404_v32, %v767_v5  ;;  %v3411_v40 = vmul.f32 %v1019_v12, %v3404_v32  ;;  %v1083_v52 = vmul.f32 %v3404_v32, %v3020_v63  ;;  %v1107_v18 = vmul.f32 %v3026_v2, %v3404_v32 }
 0x2a2   : > { %v1450_v25 = vadd.f32 %v3272_v54, %v1302_v53  ;;  %v3419_v24 = vsub.f32 %v3052_v21, %v848_v16  ;;  %v1742_v53 = vmul.f32 %v3322_v51, %v3280_v9 }
 0x2a3   : > { %2512 = vset.pattern.permute.xlu1 %v4293_v49  ;;  %v1123_v58 = vpop.permute.xlu1 %1122  ;;  %v1007_v23 = vadd.f32 %v1003_v46, %v811_v33  ;;  %v1087_v5 = vadd.f32 %v1083_v52, %v3378_v8  ;;  %v1111_v31 = vadd.f32 %v1107_v18, %v959_v20  ;;  %v1463_v20 = vpop.permute.xlu0 %1462 }
 0x2a4   : > { %vm1131_vm12 = vcmp.lt.f32.partialorder %v1123_v58, %v3174_v59  ;;  %1910 = vperm.xlu1 %2512, %v3244_v43   ;;  %868 = vperm.xlu0 %2531, %v3419_v24   ;;  %v1598_v63 = vadd.f32 %v3301_v3, %v1450_v25 }
 0x2a5   : > { %v2363_v54 = vsel %vm1131_vm12, 1.0, %v4289_v19 }
 0x2a6   : > { %v1143_v16 = vsub.f32 1.0, %v2363_v54  ;;  %2513 = vset.pattern.permute.xlu2 %v4300_v55  ;;  %v3431_v33 = vadd.f32 %v1742_v53, %v1598_v63 }
 0x2a7   : > { %863 = vperm.xlu2 %2513, %v3268_v62  }
 0x2a8   : > { %v3434_v12 = vmul.f32 %v2359_v60, %v1143_v16 }
 0x2a9   : > { %v3436_v46 = vpop.permute.xlu2 %819 }
 0x2aa   : > { %4324 = vst [vmem:[#allocation60_spill] sm:$0xff] %v3434_v12  ;;  %v1151_v52 = vmul.f32 %v3434_v12, %v975_v15  ;;  %v3440_v3 = vmul.f32 %v1167_v29, %v3434_v12  ;;  %v1231_v9 = vmul.f32 %v3434_v12, %v3026_v2  ;;  %v1255_v18 = vmul.f32 %v3032_v6, %v3434_v12 }
 0x2ab   : > { %4325 = vst [vmem:[#allocation61_spill] sm:$0xff] %v3436_v46  ;;  %v1611_v46 = vpop.permute.xlu0 %1610 }
 0x2ac   : > { %2529 = vset.pattern.permute.xlu1 %v4303_v47  ;;  %v1271_v25 = vpop.permute.xlu1 %1270  ;;  %v1155_v63 = vadd.f32 %v1151_v52, %v1007_v23  ;;  %v1235_v53 = vadd.f32 %v1231_v9, %v1087_v5  ;;  %v1259_v60 = vadd.f32 %v1255_v18, %v1111_v31 }
 0x2ad   : > { %vm1279_vm13 = vcmp.lt.f32.partialorder %v1271_v25, %v3174_v59  ;;  %1934 = vperm.xlu1 %2529, %v3297_v22  }
 0x2ae   : > { %v2367_v15 = vsel %vm1279_vm13, 1.0, %v4289_v19 }
 0x2af   : > { %v1291_v29 = vsub.f32 1.0, %v2367_v15  ;;  %2514 = vset.pattern.permute.xlu2 %v4304_v57 }
 0x2b0   : > { %1034 = vperm.xlu2 %2514, %v3268_v62  }
 0x2b1   : > { %v3452_v2 = vmul.f32 %v2363_v54, %v1291_v29  ;;  %v892_v16 = vpop.permute.xlu2 %891 }
 0x2b2   : > { %v3455_v12 = vsub.f32 %v3149_v42, %v892_v16 }
 0x2b3   : > { %4326 = vst [vmem:[#allocation62_spill] sm:$0xff] %v3452_v2  ;;  %v1299_v23 = vmul.f32 %v3452_v2, %v1123_v58  ;;  %v3459_v5 = vmul.f32 %v1315_v37, %v3452_v2  ;;  %v1379_v31 = vmul.f32 %v3452_v2, %v3032_v6  ;;  %v1403_v52 = vmul.f32 %v3038_v10, %v3452_v2  ;;  %v1759_v2 = vpop.permute.xlu0 %1758 }
 0x2b4   : > { %912 = vperm.xlu0 %2531, %v3455_v12  }
 0x2b5   : > { %2532 = vset.pattern.permute.xlu1 %v4304_v57  ;;  %v1419_v54 = vpop.permute.xlu1 %1418  ;;  %v1303_v9 = vadd.f32 %v1299_v23, %v1155_v63  ;;  %v1383_v18 = vadd.f32 %v1379_v31, %v1235_v53  ;;  %v1407_v29 = vadd.f32 %v1403_v52, %v1259_v60 }
 0x2b6   : > { %vm1427_vm14 = vcmp.lt.f32.partialorder %v1419_v54, %v3174_v59  ;;  %1038 = vperm.xlu1 %2532, %v3419_v24  }
 0x2b7   : > { %v2371_v37 = vsel %vm1427_vm14, 1.0, %v4289_v19 }
 0x2b8   : > { %v1439_v58 = vsub.f32 1.0, %v2371_v37  ;;  %2515 = vset.pattern.permute.xlu2 %v4309_v0 }
 0x2b9   : > { %v1015_v6 = vpop.permute.xlu2 %1014  ;;  %1182 = vperm.xlu2 %2515, %v3268_v62  }
 0x2ba   : > { %v3472_v16 = vmul.f32 %v2367_v15, %v1439_v58  ;;  %v1026_v42 = vmul.f32 %v1015_v6, %v3192_v44 }
 0x2bc   : > { %4327 = vst [vmem:[#allocation63_spill] sm:$0xff] %v3472_v16  ;;  %v1030_v63 = vadd.f32 %v1026_v42, %v3389_v14  ;;  %2565 = vset.pattern.permute.xlu0 %v4293_v49  ;;  %v1447_v53 = vmul.f32 %v3472_v16, %v1271_v25  ;;  %v3479_v60 = vmul.f32 %v1463_v20, %v3472_v16 }
 0x2bd   : > { %v1527_v23 = vmul.f32 %v3472_v16, %v3038_v10  ;;  %1986 = vperm.xlu0 %2565, %v2906_v34   ;;  %v1551_v15 = vmul.f32 %v3045_v17, %v3472_v16 }
 0x2be   : > { %v1567_v31 = vpop.permute.xlu1 %1566  ;;  %2533 = vset.pattern.permute.xlu1 %v4309_v0  ;;  %v1451_v52 = vadd.f32 %v1447_v53, %v1303_v9  ;;  %v1907_v53 = vpop.permute.xlu0 %1906 }
 0x2bf   : > { %v1531_v42 = vadd.f32 %v1527_v23, %v1383_v18  ;;  %vm1575_vm15 = vcmp.lt.f32.partialorder %v1567_v31, %v3174_v59  ;;  %1186 = vperm.xlu1 %2533, %v3419_v24   ;;  %v1555_v14 = vadd.f32 %v1551_v15, %v1407_v29 }
 0x2c0   : > { %v2375_v20 = vsel %vm1575_vm15, 1.0, %v4289_v19 }
 0x2c1   : > { %v1587_v25 = vsub.f32 1.0, %v2375_v20  ;;  %2516 = vset.pattern.permute.xlu2 %v4314_v45 }
 0x2c2   : > { %v1163_v10 = vpop.permute.xlu2 %1162  ;;  %1330 = vperm.xlu2 %2516, %v3268_v62  }
 0x2c3   : > { %v3492_v58 = vmul.f32 %v2371_v37, %v1587_v25  ;;  %v1174_v6 = vmul.f32 %v1163_v10, %v3216_v56 }
 0x2c5   : > { %4328 = vst [vmem:[#allocation64_spill] sm:$0xff] %v3492_v58  ;;  %v1178_v16 = vadd.f32 %v1174_v6, %v1030_v63  ;;  %2566 = vset.pattern.permute.xlu0 %v4303_v47  ;;  %v1595_v9 = vmul.f32 %v3492_v58, %v1419_v54  ;;  %v1675_v18 = vmul.f32 %v3492_v58, %v3045_v17 }
 0x2c6   : > { %v1699_v29 = vmul.f32 %v3057_v28, %v3492_v58  ;;  %1858 = vperm.xlu0 %2566, %v3052_v21   ;;  %v3503_v23 = vmul.f32 %v1611_v46, %v3492_v58  ;;  %v3513_v21 = vsub.f32 %v3079_v26, %v3218_v50  ;;  %v835_v50 = vpop.permute.xlu0 %834 }
 0x2c7   : > { %v1715_v37 = vpop.permute.xlu1 %1714  ;;  %2534 = vset.pattern.permute.xlu1 %v4314_v45  ;;  %v1599_v63 = vadd.f32 %v1595_v9, %v1451_v52  ;;  %v1679_v15 = vadd.f32 %v1675_v18, %v1531_v42 }
 0x2c8   : > { %v1703_v25 = vadd.f32 %v1699_v29, %v1555_v14  ;;  %vm1723_vm0 = vcmp.lt.f32.partialorder %v1715_v37, %v3174_v59  ;;  %1334 = vperm.xlu1 %2534, %v3419_v24  }
 0x2c9   : > { %v2379_v17 = vsel %vm1723_vm0, 1.0, %v4289_v19 }
 0x2ca   : > { %v1735_v54 = vsub.f32 1.0, %v2379_v17  ;;  %2517 = vset.pattern.permute.xlu2 %v4292_v27 }
 0x2cb   : > { %v1311_v10 = vpop.permute.xlu2 %1310  ;;  %1478 = vperm.xlu2 %2517, %v3268_v62  }
 0x2cc   : > { %v3515_v46 = vmul.f32 %v2375_v20, %v1735_v54  ;;  %v1322_v52 = vmul.f32 %v1311_v10, %v3239_v4 }
 0x2ce   : > { %4329 = vst [vmem:[#allocation65_spill] sm:$0xff] %v3515_v46  ;;  %v1326_v42 = vadd.f32 %v1322_v52, %v1178_v16  ;;  %1946 = vperm.xlu0 %2566, %v3513_v21   ;;  %v1743_v14 = vmul.f32 %v3515_v46, %v1567_v31  ;;  %v1823_v6 = vmul.f32 %v3515_v46, %v3057_v28 }
 0x2cf   : > { %v1847_v9 = vmul.f32 %v3069_v61, %v3515_v46  ;;  %v3525_v18 = vmul.f32 %v1759_v2, %v3515_v46 }
 0x2d0   : > { %v1863_v29 = vpop.permute.xlu1 %1862  ;;  %v1747_v20 = vadd.f32 %v1743_v14, %v1599_v63  ;;  %2535 = vset.pattern.permute.xlu1 %v4292_v27  ;;  %v1827_v54 = vadd.f32 %v1823_v6, %v1679_v15  ;;  %v2360_v6 = vsel %vm984_vm2, 1.0, %v4289_v19 }
 0x2d1   : > { %v3528_v16 = vadd.f32 %v1847_v9, %v1703_v25  ;;  %vm1871_vm1 = vcmp.lt.f32.partialorder %v1863_v29, %v3174_v59  ;;  %1482 = vperm.xlu1 %2535, %v3419_v24  }
 0x2d2   : > { %v3533_v28 = vsel %vm1871_vm1, 1.0, %v4289_v19 }
 0x2d3   : > { %v1883_v31 = vsub.f32 1.0, %v3533_v28  ;;  %2518 = vset.pattern.permute.xlu2 %v4288_v38 }
 0x2d4   : > { %v1459_v2 = vpop.permute.xlu2 %1458  ;;  %1626 = vperm.xlu2 %2518, %v3268_v62  }
 0x2d5   : > { %v3540_v63 = vmul.f32 %v2379_v17, %v1883_v31  ;;  %v1470_v15 = vmul.f32 %v1459_v2, %v3263_v1  ;;  %v2003_v17 = vmul.f32 %v3533_v28, %v1863_v29 }
 0x2d7   : > { %v1891_v25 = vmul.f32 %v3540_v63, %v1715_v37  ;;  %v1474_v10 = vadd.f32 %v1470_v15, %v1326_v42  ;;  %v1971_v52 = vmul.f32 %v3540_v63, %v3069_v61  ;;  %v3547_v14 = vmul.f32 %v1907_v53, %v3540_v63  ;;  %v3559_v61 = vpop.permute.xlu0 %2034 }
 0x2d8   : > { %v896_v9 = vpop.permute.xlu1 %895  ;;  %v996_v53 = vsub.f32 1.0, %v2360_v6 }
 0x2d9   : > { %v1895_v13 = vadd.f32 %v1891_v25, %v1747_v20  ;;  %v3554_v31 = vsub.f32 %v3244_v43, %v896_v9  ;;  %2536 = vset.pattern.permute.xlu1 %v4288_v38  ;;  %v3557_v37 = vadd.f32 %v1971_v52, %v1827_v54  ;;  %v2356_v20 = vsel %vm780_vm3, 1.0, %v4289_v19 }
 0x2da   : > { %1630 = vperm.xlu1 %2536, %v3419_v24   ;;  %v3571_v2 = vsub.f32 1.0, %v2356_v20  ;;  %v3573_v15 = vmul.f32 %v2356_v20, %v996_v53  ;;  %v2364_v52 = vsel %vm1132_vm4, 1.0, %v4289_v19  ;;  %vm2261_vm3 = vcmask 130048  }
 0x2db   : > { %4330 = vst [vmem:[#allocation66_spill] sm:$0xff] %v3554_v31  ;;  %v3562_v42 = vadd.f32 %v2003_v17, %v1895_v13  ;;  %1958 = vperm.xlu0 %2566, %v3554_v31  }
 0x2dc   : > { %2519 = vset.pattern.permute.xlu2 %v4293_v49  ;;  %4332 = vst [vmem:[#allocation68_spill] sm:$0xff] %v3571_v2  ;;  %v840_v9 = vmul.f32 %v835_v50, %v3571_v2 }
 0x2dd   : > { %4331 = vst [vmem:[#allocation67_spill] sm:$0xff] %v3562_v42  ;;  %v1607_v29 = vpop.permute.xlu2 %1606  ;;  %1774 = vperm.xlu2 %2519, %v3268_v62  }
 0x2de   : > { %v1618_v54 = vmul.f32 %v1607_v29, %v3292_v39  ;;  %v1144_v29 = vsub.f32 1.0, %v2364_v52 }
 0x2df   : > { %v3581_v41 = vpop.permute.xlu0 %1046 }
 0x2e0   : > { %v1622_v13 = vadd.f32 %v1618_v54, %v1474_v10  ;;  %v1023_v25 = vpop.permute.xlu1 %1022  ;;  %v3588_v53 = vmul.f32 %v2360_v6, %v1144_v29 }
 0x2e1   : > { %v1028_v17 = vmul.f32 %v1023_v25, %v3573_v15  ;;  %v2368_v25 = vsel %vm1280_vm5, 1.0, %v4289_v19 }
 0x2e2   : > { %2537 = vset.pattern.permute.xlu1 %v4293_v49  ;;  %4333 = vst [vmem:[#allocation69_spill] sm:$0xff] %v3588_v53 }
 0x2e3   : > { %v1032_v30 = vadd.f32 %v1028_v17, %v840_v9  ;;  %1778 = vperm.xlu1 %2537, %v3419_v24   ;;  %2094 = vperm.xlu0 %2566, %v2887_v7  }
 0x2e5   : > { %2520 = vset.pattern.permute.xlu2 %v4303_v47 }
 0x2e6   : > { %v1755_v10 = vpop.permute.xlu2 %1754  ;;  %1922 = vperm.xlu2 %2520, %v3268_v62   ;;  %v1292_v62 = vsub.f32 1.0, %v2368_v25 }
 0x2e7   : > { %v1766_v50 = vmul.f32 %v1755_v10, %v3322_v51  ;;  %v3597_v36 = vpop.permute.xlu0 %1194  ;;  %v2372_v10 = vsel %vm1428_vm6, 1.0, %v4289_v19 }
 0x2e9   : > { %v3590_v20 = vadd.f32 %v1766_v50, %v1622_v13  ;;  %v1171_v54 = vpop.permute.xlu1 %1170  ;;  %v3605_v13 = vmul.f32 %v2364_v52, %v1292_v62  ;;  %v4337_v52 = vld [vmem:[#allocation54_spill] sm:$0xff] }
 0x2ea   : > { %v1176_v9 = vmul.f32 %v1171_v54, %v3588_v53  ;;  %v1440_v54 = vsub.f32 1.0, %v2372_v10  ;;  %vm1576_vm7 = vcmp.lt.f32.partialorder %v4337_v52, %v3174_v59  ;;  %v4339_v52 = vld [vmem:[#allocation25_spill] sm:$0xff] }
 0x2eb   : > { %4334 = vst [vmem:[#allocation70_spill] sm:$0xff] %v3590_v20  ;;  %2538 = vset.pattern.permute.xlu1 %v4303_v47  ;;  %2018 = vperm.xlu0 %2566, %v3123_v35   ;;  %vm981_vm8 = vcmp.lt.f32.partialorder %v4339_v52, %v3174_v59 }
 0x2ec   : > { %v1180_v17 = vadd.f32 %v1176_v9, %v1032_v30  ;;  %1926 = vperm.xlu1 %2538, %v3419_v24   ;;  %4336 = vst [vmem:[#allocation72_spill] sm:$0xff] %v3605_v13 }
 0x2ee   : > { %2522 = vset.pattern.permute.xlu2 %v4300_v55 }
 0x2ef   : > { %v3600_v6 = vpop.permute.xlu2 %1902  ;;  %878 = vperm.xlu2 %2522, %v3297_v22   ;;  %v3612_v9 = vpop.permute.xlu0 %1342 }
 0x2f0   : > { %4335 = vst [vmem:[#allocation71_spill] sm:$0xff] %v3600_v6  ;;  %v3618_v6 = vmul.f32 %v2368_v25, %v1440_v54 }
 0x2f2   : > { %v1319_v29 = vpop.permute.xlu1 %1318  ;;  %4338 = vst [vmem:[#allocation73_spill] sm:$0xff] %v3618_v6 }
 0x2f3   : > { %v1324_v30 = vmul.f32 %v1319_v29, %v3605_v13 }
 0x2f4   : > { %2540 = vset.pattern.permute.xlu1 %v4304_v57 }
 0x2f5   : > { %v1328_v50 = vadd.f32 %v1324_v30, %v1180_v17  ;;  %1058 = vperm.xlu1 %2540, %v3513_v21   ;;  %v2376_v30 = vsel %vm1576_vm7, 1.0, %v4289_v19 }
 0x2f7   : > { %2530 = vset.pattern.permute.xlu2 %v4299_v11 }
 0x2f8   : > { %2046 = vperm.xlu2 %2530, %v3297_v22   ;;  %v830_v20 = vpop.permute.xlu2 %829 }
 0x2f9   : > { %v839_v62 = vmul.f32 %v830_v20, %v3378_v8  ;;  %v1588_v20 = vsub.f32 1.0, %v2376_v30 }
 0x2fb   : > { %v1031_v29 = vadd.f32 %v3411_v40, %v839_v62  ;;  %v1467_v17 = vpop.permute.xlu1 %1466  ;;  %v2357_v62 = vsel %vm981_vm8, 1.0, %v4289_v19 }
 0x2fc   : > { %v1472_v48 = vmul.f32 %v1467_v17, %v3618_v6 }
 0x2fd   : > { %v1179_v42 = vadd.f32 %v3440_v3, %v1031_v29  ;;  %2541 = vset.pattern.permute.xlu1 %v4309_v0  ;;  %v4340_v3 = vld [vmem:[#allocation57_spill] sm:$0xff]  ;;  %v3634_v29 = vpop.permute.xlu0 %1490 }
 0x2fe   : > { %v1476_v22 = vadd.f32 %v1472_v48, %v1328_v50  ;;  %1206 = vperm.xlu1 %2541, %v3513_v21   ;;  %vm1724_vm9 = vcmp.lt.f32.partialorder %v4340_v3, %v3174_v59  ;;  %v4341_v48 = vld [vmem:[#allocation24_spill] sm:$0xff]  ;;  %v3638_v50 = vmul.f32 %v2372_v10, %v1588_v20 }
 0x2ff   : > { %v1327_v25 = vadd.f32 %v3459_v5, %v1179_v42  ;;  %vm777_vm10 = vcmp.lt.f32.partialorder %v4341_v48, %v3174_v59  ;;  %v993_v42 = vsub.f32 1.0, %v2357_v62  ;;  %v4357_v48 = vld [vmem:[#allocation32_spill] sm:$0xff] }
 0x300   : > { %2038 = vperm.xlu2 %2530, %v3419_v24   ;;  %4342 = vst [vmem:[#allocation74_spill] sm:$0xff] %v3638_v50  ;;  %v2380_v24 = vsel %vm1724_vm9, 1.0, %v4289_v19  ;;  %v2353_v46 = vsel %vm777_vm10, 1.0, %v4289_v19 }
 0x301   : > { %v1475_v40 = vadd.f32 %v3479_v60, %v1327_v25  ;;  %v864_v54 = vpop.permute.xlu2 %863  ;;  %v1736_v20 = vsub.f32 1.0, %v2380_v24 }
 0x303   : > { %v1623_v17 = vadd.f32 %v3503_v23, %v1475_v40  ;;  %v4343_v23 = vld [vmem:[#allocation26_spill] sm:$0xff]  ;;  %v3653_v40 = vsub.f32 1.0, %v2353_v46 }
 0x304   : > { %v1615_v5 = vpop.permute.xlu1 %1614  ;;  %vm1129_vm11 = vcmp.lt.f32.partialorder %v4343_v23, %v3174_v59 }
 0x305   : > { %v1620_v60 = vmul.f32 %v1615_v5, %v3638_v50  ;;  %v1771_v25 = vadd.f32 %v3525_v18, %v1623_v17  ;;  %v3655_v5 = vmul.f32 %v2353_v46, %v993_v42  ;;  %v4344_v17 = vld [vmem:[#allocation59_spill] sm:$0xff]  ;;  %v3665_v58 = vpop.permute.xlu0 %1638 }
 0x306   : > { %2542 = vset.pattern.permute.xlu1 %v4314_v45  ;;  %vm1872_vm12 = vcmp.lt.f32.partialorder %v4344_v17, %v3174_v59 }
 0x307   : > { %v1624_v3 = vadd.f32 %v1620_v60, %v1476_v22  ;;  %1354 = vperm.xlu1 %2542, %v3513_v21   ;;  %v3648_v10 = vadd.f32 %v3547_v14, %v1771_v25  ;;  %v2361_v22 = vsel %vm1129_vm11, 1.0, %v4289_v19  ;;  %v881_v14 = vmul.f32 %v864_v54, %v3653_v40  ;;  %v4347_v54 = vld [vmem:[#allocation29_spill] sm:$0xff] }
 0x308   : > { %2539 = vset.pattern.permute.xlu2 %v4300_v55  ;;  %v3663_v25 = vmul.f32 %v2376_v30, %v1736_v20  ;;  %v1141_v46 = vsub.f32 1.0, %v2361_v22  ;;  %v3668_v42 = vsel %vm1872_vm12, 1.0, %v4289_v19  ;;  %vm1277_vm13 = vcmp.lt.f32.partialorder %v4347_v54, %v3174_v59 }
 0x309   : > { %907 = vperm.xlu2 %2539, %v3513_v21   ;;  %4346 = vst [vmem:[#allocation76_spill] sm:$0xff] %v3668_v42  ;;  %v1884_v30 = vsub.f32 1.0, %v3668_v42 }
 0x30a   : > { %v1035_v18 = vpop.permute.xlu2 %1034  ;;  %4345 = vst [vmem:[#allocation75_spill] sm:$0xff] %v3663_v25  ;;  %v3677_v20 = vmul.f32 %v2357_v62, %v1141_v46  ;;  %v4349_v62 = vld [vmem:[#allocation52_spill] sm:$0xff]  ;;  %v4350_v46 = vld [vmem:[#allocation23_spill] sm:$0xff] }
 0x30b   : > { %v1049_v60 = vmul.f32 %v1035_v18, %v3655_v5  ;;  %v3690_v54 = vsub.f32 %v4350_v46, %v4349_v62  ;;  %v4354_v46 = vld [vmem:[#allocation33_spill] sm:$0xff] }
 0x30c   : > { %vm1573_vm15 = vcmp.lt.f32.partialorder %v4354_v46, %v3174_v59 }
 0x30d   : > { %v1053_v43 = vadd.f32 %v1049_v60, %v881_v14  ;;  %v1763_v26 = vpop.permute.xlu1 %1762  ;;  %v2365_v14 = vsel %vm1277_vm13, 1.0, %v4289_v19  ;;  %v3682_v60 = vmul.f32 %v2380_v24, %v1884_v30  ;;  %v4352_v24 = vld [vmem:[#allocation30_spill] sm:$0xff] }
 0x30e   : > { %v1768_v34 = vmul.f32 %v1763_v26, %v3663_v25  ;;  %v1289_v31 = vsub.f32 1.0, %v2365_v14  ;;  %vm1425_vm14 = vcmp.lt.f32.partialorder %v4352_v24, %v3174_v59 }
 0x30f   : > { %2543 = vset.pattern.permute.xlu1 %v4292_v27  ;;  %4348 = vst [vmem:[#allocation77_spill] sm:$0xff] %v3682_v60  ;;  %v2369_v30 = vsel %vm1425_vm14, 1.0, %v4289_v19 }
 0x310   : > { %v1772_v8 = vadd.f32 %v1768_v34, %v1624_v3  ;;  %1502 = vperm.xlu1 %2543, %v3513_v21   ;;  %v3684_v34 = vpop.permute.xlu0 %1786 }
 0x311   : > { %2546 = vset.pattern.permute.xlu2 %v4299_v11 }
 0x312   : > { %2058 = vperm.xlu2 %2546, %v3513_v21  }
 0x313   : > { %v1183_v18 = vpop.permute.xlu2 %1182 }
 0x314   : > { %v1197_v26 = vmul.f32 %v1183_v18, %v3677_v20 }
 0x316   : > { %v1201_v3 = vadd.f32 %v1197_v26, %v1053_v43  ;;  %v1911_v17 = vpop.permute.xlu1 %1910  ;;  %v3698_v43 = vmul.f32 %v2361_v22, %v1289_v31 }
 0x317   : > { %v1916_v7 = vmul.f32 %v1911_v17, %v3682_v60 }
 0x318   : > { %2544 = vset.pattern.permute.xlu1 %v4288_v38  ;;  %4353 = vst [vmem:[#allocation23_spill] sm:$0xff] %v3698_v43  ;;  %v869_v26 = vpop.permute.xlu0 %868 }
 0x319   : > { %v3692_v23 = vadd.f32 %v1916_v7, %v1772_v8  ;;  %1650 = vperm.xlu1 %2544, %v3513_v21   ;;  %v1437_v8 = vsub.f32 1.0, %v2369_v30 }
 0x31a   : > { %2548 = vset.pattern.permute.xlu2 %v4304_v57 }
 0x31b   : > { %4351 = vst [vmem:[#allocation52_spill] sm:$0xff] %v3692_v23  ;;  %1042 = vperm.xlu2 %2548, %v3690_v54   ;;  %v3710_v31 = vmul.f32 %v2365_v14, %v1437_v8  ;;  %v2373_v23 = vsel %vm1573_vm15, 1.0, %v4289_v19  ;;  %v4358_v14 = vld [vmem:[#allocation35_spill] sm:$0xff] }
 0x31c   : > { %v1331_v17 = vpop.permute.xlu2 %1330  ;;  %v1585_v52 = vsub.f32 1.0, %v2373_v23  ;;  %vm1721_vm0 = vcmp.lt.f32.partialorder %v4358_v14, %v3174_v59 }
 0x31d   : > { %v1345_v18 = vmul.f32 %v1331_v17, %v3698_v43  ;;  %4355 = vst [vmem:[#allocation78_spill] sm:$0xff] %v3710_v31  ;;  %v882_v43 = vmul.f32 %v869_v26, %v4357_v48 }
 0x31e   : > { %v3724_v8 = vmul.f32 %v2369_v30, %v1585_v52 }
 0x31f   : > { %v1349_v62 = vadd.f32 %v1345_v18, %v1201_v3  ;;  %v3703_v7 = vpop.permute.xlu1 %1934 }
 0x320   : > { %4359 = vst [vmem:[#allocation32_spill] sm:$0xff] %v3724_v8 }
 0x321   : > { %2545 = vset.pattern.permute.xlu1 %v4293_v49 }
 0x322   : > { %1798 = vperm.xlu1 %2545, %v3513_v21  }
 0x323   : > { %1062 = vperm.xlu2 %2548, %v3455_v12  }
 0x325   : > { %v1479_v22 = vpop.permute.xlu2 %1478 }
 0x326   : > { %v1493_v17 = vmul.f32 %v1479_v22, %v3710_v31  ;;  %v3714_v3 = vpop.permute.xlu0 %912  ;;  %v2377_v22 = vsel %vm1721_vm0, 1.0, %v4289_v19 }
 0x327   : > { %4356 = vst [vmem:[#allocation79_spill] sm:$0xff] %v3714_v3 }
 0x328   : > { %v1497_v18 = vadd.f32 %v1493_v17, %v1349_v62  ;;  %v1039_v24 = vpop.permute.xlu1 %1038 }
 0x329   : > { %v1050_v21 = vmul.f32 %v1039_v24, %v3192_v44  ;;  %v1733_v44 = vsub.f32 1.0, %v2377_v22 }
 0x32a   : > { %2547 = vset.pattern.permute.xlu1 %v4300_v55 }
 0x32b   : > { %v1054_v46 = vadd.f32 %v1050_v21, %v882_v43  ;;  %2549 = vset.pattern.permute.xlu2 %v4309_v0  ;;  %873 = vperm.xlu1 %2547, %v3690_v54  }
 0x32c   : > { %1190 = vperm.xlu2 %2549, %v3690_v54  }
 0x32e   : > { %v1627_v62 = vpop.permute.xlu2 %1626 }
 0x32f   : > { %v1641_v26 = vmul.f32 %v1627_v62, %v3724_v8  ;;  %v1987_v24 = vpop.permute.xlu0 %1986  ;;  %v4362_v62 = vld [vmem:[#allocation36_spill] sm:$0xff] }
 0x330   : > { %v1995_v17 = vmul.f32 %v1987_v24, %v3540_v63  ;;  %v2083_v43 = vmul.f32 %v3533_v28, %v1987_v24  ;;  %vm1869_vm1 = vcmp.lt.f32.partialorder %v4362_v62, %v3174_v59 }
 0x331   : > { %v1645_v21 = vadd.f32 %v1641_v26, %v1497_v18  ;;  %v1187_v31 = vpop.permute.xlu1 %1186  ;;  %v3742_v18 = vmul.f32 %v2373_v23, %v1733_v44 }
 0x332   : > { %v3731_v3 = vadd.f32 %v1995_v17, %v3528_v16  ;;  %v3734_v14 = vadd.f32 %v2083_v43, %v3557_v37  ;;  %v1198_v52 = vmul.f32 %v1187_v31, %v3216_v56  ;;  %v3745_v16 = vsel %vm1869_vm1, 1.0, %v4289_v19 }
 0x333   : > { %2555 = vset.pattern.permute.xlu1 %v4299_v11  ;;  %4363 = vst [vmem:[#allocation36_spill] sm:$0xff] %v3742_v18  ;;  %v1881_v17 = vsub.f32 1.0, %v3745_v16 }
 0x334   : > { %4360 = vst [vmem:[#allocation80_spill] sm:$0xff] %v3731_v3  ;;  %v1202_v30 = vadd.f32 %v1198_v52, %v1054_v46  ;;  %1210 = vperm.xlu2 %2549, %v3455_v12   ;;  %2042 = vperm.xlu1 %2555, %v3690_v54   ;;  %v2049_v52 = vmul.f32 %v3745_v16, %v3559_v61 }
 0x335   : > { %4361 = vst [vmem:[#allocation81_spill] sm:$0xff] %v3734_v14  ;;  %v3756_v59 = vmul.f32 %v2377_v22, %v1881_v17  ;;  %v1200_v17 = vmul.f32 %v3597_v36, %v3588_v53  ;;  %v1496_v36 = vmul.f32 %v3634_v29, %v3618_v6  ;;  %v4382_v6 = vld [vmem:[#allocation33_spill] sm:$0xff] }
 0x337   : > { %v1775_v26 = vpop.permute.xlu2 %1774  ;;  %4364 = vst [vmem:[#allocation82_spill] sm:$0xff] %v3756_v59 }
 0x338   : > { %v1789_v37 = vmul.f32 %v1775_v26, %v3742_v18  ;;  %v3749_v46 = vpop.permute.xlu0 %1858 }
 0x33a   : > { %v1793_v24 = vadd.f32 %v1789_v37, %v1645_v21  ;;  %v1335_v31 = vpop.permute.xlu1 %1334 }
 0x33b   : > { %v1346_v43 = vmul.f32 %v1335_v31, %v3239_v4  ;;  %v4365_v31 = vld [vmem:[#allocation56_spill] sm:$0xff] }
 0x33c   : > { %2550 = vset.pattern.permute.xlu2 %v4314_v45  ;;  %2556 = vset.pattern.permute.xlu1 %v4303_v47  ;;  %v3763_v3 = vsub.f32 %v3123_v35, %v4365_v31 }
 0x33d   : > { %v1350_v44 = vadd.f32 %v1346_v43, %v1202_v30  ;;  %1338 = vperm.xlu2 %2550, %v3690_v54   ;;  %1950 = vperm.xlu1 %2556, %v3455_v12  }
 0x340   : > { %v1923_v23 = vpop.permute.xlu2 %1922  ;;  %v3768_v14 = vpop.permute.xlu0 %1946 }
 0x341   : > { %v1937_v21 = vmul.f32 %v1923_v23, %v3756_v59 }
 0x343   : > { %v1941_v26 = vadd.f32 %v1937_v21, %v1793_v24  ;;  %v1483_v37 = vpop.permute.xlu1 %1482  ;;  %v1052_v24 = vmul.f32 %v3581_v41, %v3573_v15 }
 0x344   : > { %v1494_v30 = vmul.f32 %v1483_v37, %v3263_v1 }
 0x345   : > { %v3766_v43 = vadd.f32 %v2049_v52, %v1941_v26  ;;  %1358 = vperm.xlu2 %2550, %v3455_v12   ;;  %2557 = vset.pattern.permute.xlu1 %v4300_v55 }
 0x346   : > { %v1498_v22 = vadd.f32 %v1494_v30, %v1350_v44  ;;  %917 = vperm.xlu1 %2557, %v3763_v3   ;;  %v1348_v44 = vmul.f32 %v3612_v9, %v3605_v13  ;;  %v1644_v30 = vmul.f32 %v3665_v58, %v3638_v50  ;;  %v3794_v9 = vld [vmem:[%s4135_s0] ss:$0 sm:$0xff]  ;;  %v1940_v58 = vmul.f32 %v3703_v7, %v3682_v60  ;;  %v4376_v60 = vld [vmem:[#allocation25_spill] sm:$0xff]  ;;  %v4381_v50 = vld [vmem:[#allocation3_spill] sm:$0xff] }
 0x347   : > { %vm1870_vm2 = vcmp.lt.f32.partialorder %v3749_v46, %v3794_v9  ;;  %v4384_v13 = vld [vmem:[#allocation60_spill] sm:$0xff] }
 0x349   : > { %v879_v61 = vpop.permute.xlu2 %878 }
 0x34a   : > { %v884_v35 = vmul.f32 %v879_v61, %v3571_v2 }
 0x34c   : > { %v1056_v23 = vadd.f32 %v1052_v24, %v884_v35  ;;  %v1631_v21 = vpop.permute.xlu1 %1630 }
 0x34d   : > { %v1642_v52 = vmul.f32 %v1631_v21, %v3292_v39  ;;  %2551 = vset.pattern.permute.xlu2 %v4292_v27  ;;  %v3780_v26 = vpop.permute.xlu0 %1958 }
 0x34e   : > { %4366 = vst [vmem:[#allocation56_spill] sm:$0xff] %v3780_v26  ;;  %v1204_v37 = vadd.f32 %v1200_v17, %v1056_v23  ;;  %1486 = vperm.xlu2 %2551, %v3690_v54   ;;  %2558 = vset.pattern.permute.xlu1 %v4304_v57  ;;  %v3805_v23 = vsel %vm1870_vm2, 1.0, %v4289_v19  ;;  %v4368_v19 = vld [vmem:[#allocation44_spill] sm:$0xff]  ;;  %v4375_v26 = vld [vmem:[#allocation34_spill] sm:$0xff] }
 0x34f   : > { %v1646_v41 = vadd.f32 %v1642_v52, %v1498_v22  ;;  %1066 = vperm.xlu1 %2558, %v3763_v3   ;;  %v1792_v22 = vmul.f32 %v3684_v34, %v3663_v25  ;;  %v4377_v25 = vld [vmem:[#allocation26_spill] sm:$0xff] }
 0x350   : > { %v1352_v31 = vadd.f32 %v1348_v44, %v1204_v37 }
 0x352   : > { %v1500_v61 = vadd.f32 %v1496_v36, %v1352_v31  ;;  %v2047_v24 = vpop.permute.xlu2 %2046  ;;  %v1882_v36 = vsub.f32 1.0, %v3805_v23 }
 0x353   : > { %v2052_v34 = vmul.f32 %v3668_v42, %v2047_v24 }
 0x354   : > { %v1648_v35 = vadd.f32 %v1644_v30, %v1500_v61  ;;  %v3816_v30 = vmul.f32 %v4368_v19, %v1882_v36 }
 0x355   : > { %v1779_v17 = vpop.permute.xlu1 %1778  ;;  %v3800_v29 = vpop.permute.xlu0 %2094 }
 0x356   : > { %v1796_v21 = vadd.f32 %v1792_v22, %v1648_v35  ;;  %v1790_v52 = vmul.f32 %v1779_v17, %v3322_v51  ;;  %1506 = vperm.xlu2 %2551, %v3455_v12  }
 0x357   : > { %2559 = vset.pattern.permute.xlu1 %v4309_v0 }
 0x358   : > { %v1944_v44 = vadd.f32 %v1940_v58, %v1796_v21  ;;  %v1794_v37 = vadd.f32 %v1790_v52, %v1646_v41  ;;  %1214 = vperm.xlu1 %2559, %v3763_v3  }
 0x35a   : > { %v3813_v31 = vadd.f32 %v2052_v34, %v1944_v44  ;;  %v2039_v7 = vpop.permute.xlu2 %2038  ;;  %v4370_v44 = vld [vmem:[#allocation43_spill] sm:$0xff] }
 0x35b   : > { %v2050_v24 = vmul.f32 %v3805_v23, %v2039_v7  ;;  %v1890_v34 = vmul.f32 %v3816_v30, %v4370_v44 }
 0x35c   : > { %4367 = vst [vmem:[#allocation83_spill] sm:$0xff] %v3813_v31 }
 0x35d   : > { %v2019_v61 = vpop.permute.xlu0 %2018  ;;  %v1894_v19 = vadd.f32 %v1890_v34, %v3431_v33 }
 0x35e   : > { %v2027_v22 = vmul.f32 %v3533_v28, %v2019_v61  ;;  %v1927_v35 = vpop.permute.xlu1 %1926  ;;  %2552 = vset.pattern.permute.xlu2 %v4288_v38 }
 0x35f   : > { %v1938_v17 = vmul.f32 %v1927_v35, %v3816_v30  ;;  %1634 = vperm.xlu2 %2552, %v3690_v54  }
 0x360   : > { %v3823_v41 = vadd.f32 %v2027_v22, %v3648_v10  ;;  %2560 = vset.pattern.permute.xlu1 %v4314_v45 }
 0x361   : > { %v1942_v58 = vadd.f32 %v1938_v17, %v1794_v37  ;;  %1362 = vperm.xlu1 %2560, %v3763_v3   ;;  %v2002_v37 = vmul.f32 %v3805_v23, %v3749_v46 }
 0x362   : > { %4369 = vst [vmem:[#allocation44_spill] sm:$0xff] %v3823_v41 }
 0x363   : > { %v2054_v21 = vadd.f32 %v2050_v24, %v1942_v58  ;;  %v908_v52 = vpop.permute.xlu2 %907  ;;  %v2006_v35 = vadd.f32 %v2002_v37, %v1894_v19 }
 0x364   : > { %v925_v10 = vmul.f32 %v908_v52, %v3653_v40 }
 0x365   : > { %2649 = vrcp.f32 %v2054_v21  ;;  %v2134_v33 = vsub.f32 %v3794_v9, %v2006_v35 }
 0x366   : > { %2651 = vrcp.f32 %v3766_v43 }
 0x367   : > { %v1059_v36 = vpop.permute.xlu1 %1058  ;;  %1654 = vperm.xlu2 %2552, %v3455_v12  }
 0x368   : > { %v1073_v61 = vmul.f32 %v1059_v36, %v3655_v5 }
 0x369   : > { %2561 = vset.pattern.permute.xlu1 %v4292_v27 }
 0x36a   : > { %v1077_v7 = vadd.f32 %v1073_v61, %v925_v10  ;;  %1510 = vperm.xlu1 %2561, %v3763_v3   ;;  %v4371_v10 = vld [vmem:[#allocation28_spill] sm:$0xff] }
 0x36b   : > { %v2650_v22 = vpop.eup %2649  ;;  %v809_v61 = vmul.f32 %v4371_v10, %v3653_v40  ;;  %v1149_v10 = vmul.f32 %v3677_v20, %v4376_v60 }
 0x36c   : > { %v2118_v17 = vmul.f32 %v2650_v22, %v2054_v21  ;;  %v3838_v24 = vpop.permute.xlu2 %2058 }
 0x36e   : > { %v2122_v58 = vsub.f32 2.0, %v2118_v17  ;;  %v4373_v17 = vld [vmem:[#allocation24_spill] sm:$0xff] }
 0x36f   : > { %2553 = vset.pattern.permute.xlu2 %v4293_v49 }
 0x370   : > { %v1207_v52 = vpop.permute.xlu1 %1206  ;;  %1782 = vperm.xlu2 %2553, %v3690_v54   ;;  %v3843_v44 = vmul.f32 %v2650_v22, %v2122_v58  ;;  %v4372_v22 = vld [vmem:[#allocation23_spill] sm:$0xff]  ;;  %v1001_v58 = vmul.f32 %v3655_v5, %v4373_v17 }
 0x371   : > { %v1221_v46 = vmul.f32 %v1207_v52, %v3677_v20 }
 0x372   : > { %2562 = vset.pattern.permute.xlu1 %v4288_v38  ;;  %v3848_v34 = vmul.f32 %v2134_v33, %v3843_v44  ;;  %v1005_v33 = vadd.f32 %v1001_v58, %v809_v61  ;;  %v4379_v61 = vld [vmem:[#allocation78_spill] sm:$0xff] }
 0x373   : > { %v1225_v21 = vadd.f32 %v1221_v46, %v1077_v7  ;;  %1658 = vperm.xlu1 %2562, %v3763_v3   ;;  %v4374_v46 = vld [vmem:[#allocation79_spill] sm:$0xff] }
 0x375   : > { %v1043_v36 = vpop.permute.xlu2 %1042 }
 0x376   : > { %v3852_v19 = vmul.f32 %v1043_v36, %v3404_v32  ;;  %v926_v36 = vmul.f32 %v4374_v46, %v4357_v48 }
 0x378   : > { %1802 = vperm.xlu2 %2553, %v3455_v12  }
 0x379   : > { %v1355_v37 = vpop.permute.xlu1 %1354 }
 0x37a   : > { %v1369_v35 = vmul.f32 %v1355_v37, %v4372_v22  ;;  %v1297_v37 = vmul.f32 %v4372_v22, %v4377_v25 }
 0x37b   : > { %2563 = vset.pattern.permute.xlu1 %v4293_v49 }
 0x37c   : > { %v1373_v7 = vadd.f32 %v1369_v35, %v1225_v21  ;;  %1806 = vperm.xlu1 %2563, %v3763_v3   ;;  %v1153_v21 = vadd.f32 %v1149_v10, %v1005_v33  ;;  %v4378_v35 = vld [vmem:[#allocation29_spill] sm:$0xff]  ;;  %v2652_v33 = vpop.eup %2651 }
 0x37d   : > { %v1063_v52 = vpop.permute.xlu2 %1062  ;;  %v1445_v58 = vmul.f32 %v4379_v61, %v4378_v35  ;;  %v4383_v35 = vld [vmem:[#allocation35_spill] sm:$0xff] }
 0x37e   : > { %v1074_v42 = vmul.f32 %v1063_v52, %v4375_v26  ;;  %v1301_v46 = vadd.f32 %v1297_v37, %v1153_v21  ;;  %v4380_v26 = vld [vmem:[#allocation30_spill] sm:$0xff] }
 0x37f   : > { %v1593_v52 = vmul.f32 %v3724_v8, %v4380_v26  ;;  %v2117_v26 = vmul.f32 %v2652_v33, %v3766_v43  ;;  %v4386_v43 = vld [vmem:[#allocation9_spill] sm:$0xff] }
 0x380   : > { %v1078_v17 = vadd.f32 %v1074_v42, %v926_v36  ;;  %2554 = vset.pattern.permute.xlu2 %v4303_v47  ;;  %v1449_v25 = vadd.f32 %v1445_v58, %v1301_v46  ;;  %v1741_v42 = vmul.f32 %v3742_v18, %v4382_v6  ;;  %v4385_v6 = vld [vmem:[#allocation7_spill] sm:$0xff]  ;;  %v2001_v46 = vmul.f32 %v3745_v16, %v4362_v62  ;;  %v4388_v62 = vld [vmem:[#allocation13_spill] sm:$0xff] }
 0x381   : > { %1930 = vperm.xlu2 %2554, %v3690_v54   ;;  %v1889_v54 = vmul.f32 %v3756_v59, %v4383_v35  ;;  %v4387_v35 = vld [vmem:[#allocation11_spill] sm:$0xff] }
 0x382   : > { %v1503_v48 = vpop.permute.xlu1 %1502  ;;  %v1597_v31 = vadd.f32 %v1593_v52, %v1449_v25  ;;  %v2121_v52 = vsub.f32 2.0, %v2117_v26  ;;  %v1525_v26 = vmul.f32 %v4379_v61, %v4388_v62 }
 0x383   : > { %v1517_v60 = vmul.f32 %v1503_v48, %v4379_v61 }
 0x384   : > { %1982 = vperm.xlu1 %2563, %v4381_v50   ;;  %v1745_v21 = vadd.f32 %v1741_v42, %v1597_v31  ;;  %v1229_v31 = vmul.f32 %v3677_v20, %v4386_v43 }
 0x385   : > { %v1521_v36 = vadd.f32 %v1517_v60, %v1373_v7  ;;  %v1081_v7 = vmul.f32 %v3655_v5, %v4385_v6 }
 0x386   : > { %v1191_v10 = vpop.permute.xlu2 %1190  ;;  %v1893_v50 = vadd.f32 %v1889_v54, %v1745_v21  ;;  %v1377_v54 = vmul.f32 %v4372_v22, %v4387_v35  ;;  %v2125_v21 = vmul.f32 %v2652_v33, %v2121_v52  ;;  %v4390_v33 = vld [vmem:[#allocation17_spill] sm:$0xff] }
 0x387   : > { %v3883_v37 = vmul.f32 %v1191_v10, %v4384_v13  ;;  %v1085_v10 = vadd.f32 %v1081_v7, %v3653_v40  ;;  %v1821_v52 = vmul.f32 %v3742_v18, %v4390_v33 }
 0x388   : > { %v2005_v25 = vadd.f32 %v2001_v46, %v1893_v50  ;;  %v4389_v50 = vld [vmem:[#allocation15_spill] sm:$0xff] }
 0x389   : > { %2564 = vset.pattern.permute.xlu2 %v4299_v11  ;;  %v1233_v41 = vadd.f32 %v1229_v31, %v1085_v10  ;;  %v4391_v31 = vld [vmem:[#allocation5_spill] sm:$0xff] }
 0x38a   : > { %2062 = vperm.xlu2 %2564, %v3455_v12   ;;  %v2133_v53 = vsub.f32 %v3794_v9, %v2005_v25 }
 0x38b   : > { %v1651_v58 = vpop.permute.xlu1 %1650 }
 0x38c   : > { %v1665_v48 = vmul.f32 %v1651_v58, %v3724_v8  ;;  %2575 = vset.pattern.permute.xlu1 %v4299_v11 }
 0x38d   : > { %2066 = vperm.xlu1 %2575, %v3763_v3  }
 0x38e   : > { %v1669_v60 = vadd.f32 %v1665_v48, %v1521_v36  ;;  %v1211_v12 = vpop.permute.xlu2 %1210  ;;  %v1381_v36 = vadd.f32 %v1377_v54, %v1233_v41  ;;  %v2137_v48 = vmul.f32 %v2133_v53, %v2125_v21  ;;  %v4393_v53 = vld [vmem:[#allocation62_spill] sm:$0xff] }
 0x38f   : > { %v1222_v42 = vmul.f32 %v1211_v12, %v3216_v56  ;;  %v1673_v56 = vmul.f32 %v3724_v8, %v4389_v50  ;;  %v1961_v12 = vmul.f32 %v3768_v14, %v3756_v59  ;;  %v4394_v8 = vld [vmem:[#allocation66_spill] sm:$0xff] }
 0x390   : > { %v2141_v2 = vsub.f32 1.0, %v2137_v48 }
 0x391   : > { %v1226_v58 = vadd.f32 %v1222_v42, %v1078_v17  ;;  %v1529_v17 = vadd.f32 %v1525_v26, %v1381_v36  ;;  %v4392_v42 = vld [vmem:[#allocation19_spill] sm:$0xff] }
 0x392   : > { %2567 = vset.pattern.permute.xlu2 %v4303_v47  ;;  %v1969_v10 = vmul.f32 %v3756_v59, %v4392_v42 }
 0x393   : > { %1954 = vperm.xlu2 %2567, %v3763_v3   ;;  %v1677_v25 = vadd.f32 %v1673_v56, %v1529_v17  ;;  %v4395_v56 = vld [vmem:[#allocation6_spill] sm:$0xff]  ;;  %v3926_v17 = vmul.f32 %v2141_v2, %v2137_v48 }
 0x394   : > { %v1799_v7 = vpop.permute.xlu1 %1798 }
 0x395   : > { %v1813_v46 = vmul.f32 %v1799_v7, %v3742_v18  ;;  %2577 = vset.pattern.permute.xlu1 %v4293_v49  ;;  %v2073_v7 = vmul.f32 %v3745_v16, %v3838_v24  ;;  %v1825_v36 = vadd.f32 %v1821_v52, %v1677_v25 }
 0x396   : > { %1990 = vperm.xlu1 %2577, %v4391_v31  }
 0x397   : > { %v1817_v3 = vadd.f32 %v1813_v46, %v1669_v60  ;;  %v1339_v41 = vpop.permute.xlu2 %1338  ;;  %v1973_v33 = vadd.f32 %v1969_v10, %v1825_v36  ;;  %v2081_v46 = vmul.f32 %v3745_v16, %v4395_v56 }
 0x398   : > { %v1347_v54 = vmul.f32 %v1339_v41, %v4393_v53  ;;  %v4396_v41 = vld [vmem:[#allocation58_spill] sm:$0xff] }
 0x399   : > { %v1965_v26 = vadd.f32 %v1961_v12, %v1817_v3  ;;  %v4397_v12 = vld [vmem:[#allocation4_spill] sm:$0xff] }
 0x39b   : > { %v2077_v18 = vadd.f32 %v2073_v7, %v1965_v26  ;;  %2568 = vset.pattern.permute.xlu2 %v4300_v55  ;;  %v3932_v55 = vadd.f32 %v2081_v46, %v1973_v33 }
 0x39c   : > { %922 = vperm.xlu2 %2568, %v4394_v8  }
 0x39d   : > { %v3922_v14 = vmul.f32 %v2125_v21, %v2077_v18  ;;  %v874_v60 = vpop.permute.xlu1 %873  ;;  %v2157_v2 = vmul.f32 %v3926_v17, %v3932_v55 }
 0x39e   : > { %v883_v59 = vmul.f32 %v874_v60, %v4396_v41  ;;  %2579 = vset.pattern.permute.xlu1 %v4303_v47 }
 0x39f   : > { %v2149_v24 = vmul.f32 %v2137_v48, %v3922_v14  ;;  %v1359_v52 = vpop.permute.xlu2 %1358  ;;  %2098 = vperm.xlu1 %2579, %v4397_v12  }
 0x3a0   : > { %v1055_v21 = vadd.f32 %v3852_v19, %v883_v59  ;;  %v1370_v3 = vmul.f32 %v1359_v52, %v3239_v4  ;;  %v4398_v19 = vld [vmem:[#allocation22_spill] sm:$0xff] }
 0x3a1   : > { %v2153_v25 = vmul.f32 %v2149_v24, %v2137_v48  ;;  %v4399_v48 = vld [vmem:[#allocation63_spill] sm:$0xff] }
 0x3a2   : > { %v1203_v10 = vadd.f32 %v3883_v37, %v1055_v21  ;;  %v1374_v7 = vadd.f32 %v1370_v3, %v1226_v58  ;;  %v4401_v3 = vld [vmem:[#allocation64_spill] sm:$0xff] }
 0x3a3   : > { %v2161_v26 = vadd.f32 %v2157_v2, %v2153_v25 }
 0x3a4   : > { %2569 = vset.pattern.permute.xlu2 %v4304_v57  ;;  %v1351_v36 = vadd.f32 %v1347_v54, %v1203_v10  ;;  %v4400_v57 = vld [vmem:[#allocation38_spill] sm:$0xff] }
 0x3a5   : > { %1070 = vperm.xlu2 %2569, %v4394_v8   ;;  %v3941_v60 = vmul.f32 %v2161_v26, %v2077_v18 }
 0x3a6   : > { %v2043_v33 = vpop.permute.xlu1 %2042 }
 0x3a7   : > { %v2051_v59 = vmul.f32 %v3533_v28, %v2043_v33  ;;  %2010 = vperm.xlu1 %2579, %v4398_v19   ;;  %v4402_v33 = vld [vmem:[#allocation65_spill] sm:$0xff] }
 0x3a8   : > { %v1487_v4 = vpop.permute.xlu2 %1486 }
 0x3a9   : > { %v1495_v46 = vmul.f32 %v1487_v4, %v4399_v48 }
 0x3ab   : > { %v1499_v24 = vadd.f32 %v1495_v46, %v1351_v36 }
 0x3ad   : > { %2570 = vset.pattern.permute.xlu2 %v4309_v0 }
 0x3ae   : > { %1218 = vperm.xlu2 %2570, %v4394_v8  }
 0x3af   : > { %v1951_v37 = vpop.permute.xlu1 %1950  ;;  %2022 = vperm.xlu1 %2579, %v4400_v57  }
 0x3b0   : > { %v1507_v58 = vpop.permute.xlu2 %1506  ;;  %v1962_v57 = vmul.f32 %v1951_v37, %v3816_v30 }
 0x3b1   : > { %v1518_v18 = vmul.f32 %v1507_v58, %v3263_v1 }
 0x3b3   : > { %v1522_v54 = vadd.f32 %v1518_v18, %v1374_v7 }
 0x3b6   : > { %2571 = vset.pattern.permute.xlu2 %v4314_v45 }
 0x3b7   : > { %1366 = vperm.xlu2 %2571, %v4394_v8  }
 0x3b8   : > { %v918_v52 = vpop.permute.xlu1 %917 }
 0x3b9   : > { %v927_v12 = vmul.f32 %v918_v52, %v4396_v41  ;;  %v1635_v21 = vpop.permute.xlu2 %1634  ;;  %v4403_v52 = vld [vmem:[#allocation2_spill] sm:$0xff] }
 0x3ba   : > { %v1643_v25 = vmul.f32 %v1635_v21, %v4401_v3 }
 0x3bc   : > { %v1647_v0 = vadd.f32 %v1643_v25, %v1499_v24 }
 0x3bf   : > { %2572 = vset.pattern.permute.xlu2 %v4292_v27 }
 0x3c0   : > { %1514 = vperm.xlu2 %2572, %v4394_v8  }
 0x3c1   : > { %v1655_v2 = vpop.permute.xlu2 %1654  ;;  %v1067_v10 = vpop.permute.xlu1 %1066 }
 0x3c2   : > { %v1666_v1 = vmul.f32 %v1655_v2, %v3292_v39  ;;  %v1075_v7 = vmul.f32 %v1067_v10, %v3404_v32 }
 0x3c4   : > { %v1670_v45 = vadd.f32 %v1666_v1, %v1522_v54  ;;  %v1079_v26 = vadd.f32 %v1075_v7, %v927_v12 }
 0x3c8   : > { %2573 = vset.pattern.permute.xlu2 %v4288_v38 }
 0x3c9   : > { %1662 = vperm.xlu2 %2573, %v4394_v8  }
 0x3ca   : > { %v1783_v41 = vpop.permute.xlu2 %1782  ;;  %v1215_v36 = vpop.permute.xlu1 %1214 }
 0x3cb   : > { %v1791_v19 = vmul.f32 %v1783_v41, %v4402_v33  ;;  %v1223_v27 = vmul.f32 %v1215_v36, %v4384_v13 }
 0x3cd   : > { %v1795_v4 = vadd.f32 %v1791_v19, %v1647_v0  ;;  %v1227_v46 = vadd.f32 %v1223_v27, %v1079_v26 }
 0x3d1   : > { %2574 = vset.pattern.permute.xlu2 %v4293_v49 }
 0x3d2   : > { %v1803_v24 = vpop.permute.xlu2 %1802  ;;  %1810 = vperm.xlu2 %2574, %v4394_v8  }
 0x3d3   : > { %v1814_v39 = vmul.f32 %v1803_v24, %v3322_v51  ;;  %v1363_v32 = vpop.permute.xlu1 %1362 }
 0x3d4   : > { %v1371_v38 = vmul.f32 %v1363_v32, %v4393_v53  ;;  %v4405_v32 = vld [vmem:[#allocation8_spill] sm:$0xff] }
 0x3d5   : > { %v1818_v58 = vadd.f32 %v1814_v39, %v1670_v45 }
 0x3d6   : > { %v1375_v18 = vadd.f32 %v1371_v38, %v1227_v46 }
 0x3d7   : > { %v1966_v54 = vadd.f32 %v1962_v57, %v1818_v58  ;;  %v4406_v58 = vld [vmem:[#allocation27_spill] sm:$0xff] }
 0x3da   : > { %2576 = vset.pattern.permute.xlu2 %v4303_v47 }
 0x3db   : > { %v1931_v13 = vpop.permute.xlu2 %1930  ;;  %2090 = vperm.xlu2 %2576, %v4403_v52  }
 0x3dc   : > { %v1939_v49 = vmul.f32 %v1931_v13, %v3540_v63  ;;  %v1511_v12 = vpop.permute.xlu1 %1510 }
 0x3dd   : > { %v1519_v21 = vmul.f32 %v1511_v12, %v4399_v48 }
 0x3de   : > { %v1943_v25 = vadd.f32 %v1939_v49, %v1795_v4 }
 0x3df   : > { %v1523_v51 = vadd.f32 %v1519_v21, %v1375_v18  ;;  %v4407_v18 = vld [vmem:[#allocation81_spill] sm:$0xff]  ;;  %v2106_v21 = vmul.f32 %v3805_v23, %v3800_v29 }
 0x3e0   : > { %v2055_v0 = vadd.f32 %v2051_v59, %v1943_v25  ;;  %v4409_v25 = vld [vmem:[#allocation48_spill] sm:$0xff] }
 0x3e2   : > { %2653 = vrcp.f32 %v2055_v0 }
 0x3e3   : > { %2578 = vset.pattern.permute.xlu2 %v4299_v11  ;;  %v4404_v11 = vld [vmem:[#allocation67_spill] sm:$0xff] }
 0x3e4   : > { %v2063_v53 = vpop.permute.xlu2 %2062  ;;  %2070 = vperm.xlu2 %2578, %v4394_v8   ;;  %v2135_v36 = vsub.f32 %v3794_v9, %v4404_v11 }
 0x3e5   : > { %v2074_v37 = vmul.f32 %v3805_v23, %v2063_v53  ;;  %v1659_v2 = vpop.permute.xlu1 %1658 }
 0x3e6   : > { %v1667_v10 = vmul.f32 %v1659_v2, %v4401_v3 }
 0x3e7   : > { %v2078_v1 = vadd.f32 %v2074_v37, %v1966_v54 }
 0x3e8   : > { %v2654_v7 = vpop.eup %2653  ;;  %v1671_v45 = vadd.f32 %v1667_v10, %v1523_v51 }
 0x3e9   : > { %v2119_v26 = vmul.f32 %v2654_v7, %v2055_v0  ;;  %v2130_v48 = vmul.f32 %v3843_v44, %v2078_v1 }
 0x3eb   : > { %v2123_v41 = vsub.f32 2.0, %v2119_v26  ;;  %v2150_v59 = vmul.f32 %v3848_v34, %v2130_v48  ;;  %v2174_v10 = vmul.f32 2.0, %v2130_v48 }
 0x3ec   : > { %2580 = vset.pattern.permute.xlu2 %v4303_v47  ;;  %v1970_v47 = vmul.f32 %v3816_v30, %v4405_v32 }
 0x3ed   : > { %2102 = vperm.xlu2 %2580, %v4391_v31   ;;  %v1955_v8 = vpop.permute.xlu2 %1954  ;;  %v2154_v19 = vmul.f32 %v2150_v59, %v3848_v34  ;;  %v2127_v3 = vmul.f32 %v2654_v7, %v2123_v41  ;;  %v2142_v31 = vsub.f32 1.0, %v3848_v34 }
 0x3ee   : > { %v1807_v27 = vpop.permute.xlu1 %1806  ;;  %v1963_v44 = vmul.f32 %v1955_v8, %v3540_v63 }
 0x3ef   : > { %v1815_v4 = vmul.f32 %v1807_v27, %v4402_v33  ;;  %v2139_v46 = vmul.f32 %v2135_v36, %v2127_v3  ;;  %v4408_v33 = vld [vmem:[#allocation47_spill] sm:$0xff]  ;;  %v2146_v53 = vmul.f32 %v2142_v31, %v3848_v34 }
 0x3f0   : > { %v1974_v49 = vadd.f32 %v1970_v47, %v4408_v33 }
 0x3f1   : > { %v1819_v24 = vadd.f32 %v1815_v4, %v1671_v45  ;;  %v2143_v39 = vsub.f32 1.0, %v2139_v46 }
 0x3f3   : > { %v1967_v38 = vadd.f32 %v1963_v44, %v1819_v24  ;;  %v2147_v57 = vmul.f32 %v2143_v39, %v2139_v46 }
 0x3f5   : > { %2014 = vperm.xlu2 %2580, %v4406_v58   ;;  %v2159_v54 = vmul.f32 %v2147_v57, %v4407_v18 }
 0x3f6   : > { %v3989_v13 = vpop.permute.xlu2 %922  ;;  %v1983_v52 = vpop.permute.xlu1 %1982 }
 0x3f7   : > { %v1994_v63 = vmul.f32 %v1983_v52, %v3816_v30  ;;  %v2082_v12 = vmul.f32 %v3805_v23, %v1983_v52 }
 0x3f9   : > { %v1998_v51 = vadd.f32 %v1994_v63, %v4409_v25  ;;  %v2086_v0 = vadd.f32 %v2082_v12, %v1974_v49 }
 0x3fb   : > { %v2110_v37 = vadd.f32 %v2106_v21, %v1998_v51  ;;  %v2158_v2 = vmul.f32 %v2146_v53, %v2086_v0 }
 0x3fd   : > { %v2162_v7 = vadd.f32 %v2158_v2, %v2154_v19  ;;  %v2170_v45 = vadd.f32 %v2110_v37, %v2086_v0  ;;  %v1253_v2 = vmul.f32 %v4387_v35, %v3677_v20  ;;  %v4414_v35 = vld [vmem:[#allocation68_spill] sm:$0xff] }
 0x3ff   : > { %v2178_v26 = vsub.f32 %v2170_v45, %v2174_v10  ;;  %v1071_v41 = vpop.permute.xlu2 %1070  ;;  %v2067_v59 = vpop.permute.xlu1 %2066  ;;  %v2166_v11 = vmul.f32 %v2162_v7, %v2078_v1 }
 0x400   : > { %v2075_v36 = vmul.f32 %v3533_v28, %v2067_v59  ;;  %v4411_v59 = vld [vmem:[#allocation39_spill] sm:$0xff] }
 0x401   : > { %v2182_v8 = vmul.f32 %v2178_v26, %v2146_v53  ;;  %v1105_v53 = vmul.f32 %v4386_v43, %v3655_v5  ;;  %v1549_v26 = vmul.f32 %v4389_v50, %v4379_v61  ;;  %v1004_v43 = vmul.f32 %v3573_v15, %v4411_v59  ;;  %v4419_v50 = vld [vmem:[#allocation36_spill] sm:$0xff]  ;;  %v4430_v59 = vld [vmem:[#allocation10_spill] sm:$0xff] }
 0x402   : > { %v2079_v27 = vadd.f32 %v2075_v36, %v1967_v38 }
 0x403   : > { %v2186_v4 = vadd.f32 %v2182_v8, %v2130_v48  ;;  %v4410_v48 = vld [vmem:[#allocation80_spill] sm:$0xff] }
 0x404   : > { %v2131_v29 = vmul.f32 %v2127_v3, %v2079_v27 }
 0x405   : > { %2655 = vrcp.f32 %v2186_v4 }
 0x406   : > { %v2151_v44 = vmul.f32 %v2139_v46, %v2131_v29  ;;  %v2175_v38 = vmul.f32 2.0, %v2131_v29 }
 0x408   : > { %v2155_v24 = vmul.f32 %v2151_v44, %v2139_v46  ;;  %v1219_v39 = vpop.permute.xlu2 %1218  ;;  %v3999_v34 = vpop.permute.xlu1 %1990 }
 0x40a   : > { %v2163_v32 = vadd.f32 %v2159_v54, %v2155_v24  ;;  %v4416_v24 = vld [vmem:[#allocation41_spill] sm:$0xff] }
 0x40b   : > { %v2656_v47 = vpop.eup %2655 }
 0x40c   : > { %v2167_v19 = vmul.f32 %v2163_v32, %v2079_v27  ;;  %v2194_v58 = vmul.f32 %v2656_v47, %v2186_v4  ;;  %v4413_v27 = vld [vmem:[#allocation17_spill] sm:$0xff] }
 0x40d   : > { %v4417_v32 = vld [vmem:[#allocation69_spill] sm:$0xff] }
 0x40e   : > { %v2198_v31 = vsub.f32 2.0, %v2194_v58 }
 0x410   : > { %v2202_v52 = vmul.f32 %v2656_v47, %v2198_v31  ;;  %v4418_v47 = vld [vmem:[#allocation44_spill] sm:$0xff] }
 0x411   : > { %v1367_v33 = vpop.permute.xlu2 %1366  ;;  %v2099_v1 = vpop.permute.xlu1 %2098 }
 0x412   : > { %v2107_v49 = vmul.f32 %v3533_v28, %v2099_v1  ;;  %v4002_v63 = vmul.f32 %v2202_v52, %v2166_v11  ;;  %v957_v28 = vmul.f32 %v4385_v6, %v3653_v40  ;;  %v4412_v6 = vld [vmem:[#allocation32_spill] sm:$0xff]  ;;  %v1845_v52 = vmul.f32 %v4392_v42, %v4419_v50  ;;  %v4426_v42 = vld [vmem:[#allocation61_spill] sm:$0xff] }
 0x413   : > { %v1697_v4 = vmul.f32 %v4413_v27, %v4412_v6 }
 0x414   : > { %v2111_v3 = vadd.f32 %v2107_v49, %v4410_v48  ;;  %v1109_v7 = vadd.f32 %v1105_v53, %v957_v28  ;;  %v4421_v49 = vld [vmem:[#allocation72_spill] sm:$0xff]  ;;  %v4425_v53 = vld [vmem:[#allocation73_spill] sm:$0xff]  ;;  %v837_v28 = vmul.f32 %v4426_v42, %v3653_v40 }
 0x415   : > { %v1372_v27 = vmul.f32 %v1367_v33, %v4421_v49 }
 0x416   : > { %v2171_v46 = vadd.f32 %v2111_v3, %v4407_v18  ;;  %v1257_v45 = vadd.f32 %v1253_v2, %v1109_v7  ;;  %v4422_v3 = vld [vmem:[#allocation83_spill] sm:$0xff]  ;;  %v928_v2 = vmul.f32 %v3989_v13, %v4414_v35 }
 0x418   : > { %v2179_v12 = vsub.f32 %v2171_v46, %v2175_v38  ;;  %v1076_v38 = vmul.f32 %v1071_v41, %v3573_v15 }
 0x41a   : > { %v2183_v21 = vmul.f32 %v2179_v12, %v2147_v57  ;;  %v1515_v25 = vpop.permute.xlu2 %1514  ;;  %v1401_v57 = vmul.f32 %v4388_v62, %v4372_v22  ;;  %v1152_v62 = vmul.f32 %v4417_v32, %v4416_v24  ;;  %v4423_v12 = vld [vmem:[#allocation82_spill] sm:$0xff]  ;;  %v1080_v40 = vadd.f32 %v1076_v38, %v928_v2  ;;  %v4435_v38 = vld [vmem:[#allocation12_spill] sm:$0xff] }
 0x41c   : > { %v2187_v54 = vadd.f32 %v2183_v21, %v2131_v29  ;;  %v1405_v8 = vadd.f32 %v1401_v57, %v1257_v45  ;;  %v4415_v29 = vld [vmem:[#allocation31_spill] sm:$0xff]  ;;  %v1993_v21 = vmul.f32 %v4395_v56, %v4423_v12  ;;  %v4427_v57 = vld [vmem:[#allocation37_spill] sm:$0xff] }
 0x41d   : > { %v812_v44 = vmul.f32 %v4415_v29, %v4414_v35  ;;  %v1025_v41 = vmul.f32 %v4427_v57, %v3655_v5  ;;  %v4428_v45 = vld [vmem:[#allocation51_spill] sm:$0xff]  ;;  %v960_v5 = vmul.f32 %v4430_v59, %v4414_v35 }
 0x41e   : > { %2657 = vrcp.f32 %v2187_v54  ;;  %v1553_v31 = vadd.f32 %v1549_v26, %v1405_v8  ;;  %v4429_v26 = vld [vmem:[#allocation74_spill] sm:$0xff]  ;;  %v4433_v29 = vld [vmem:[#allocation75_spill] sm:$0xff] }
 0x41f   : > { %v1008_v1 = vadd.f32 %v1004_v43, %v812_v44  ;;  %2659 = vrcp.f32 %v4422_v3  ;;  %v1596_v56 = vmul.f32 %v4429_v26, %v4428_v45  ;;  %v1084_v43 = vmul.f32 %v3573_v15, %v4430_v59  ;;  %v4439_v45 = vld [vmem:[#allocation46_spill] sm:$0xff] }
 0x420   : > { %v1701_v46 = vadd.f32 %v1697_v4, %v1553_v31  ;;  %v1029_v24 = vadd.f32 %v1025_v41, %v837_v28  ;;  %v4434_v31 = vld [vmem:[#allocation42_spill] sm:$0xff] }
 0x422   : > { %v1849_v7 = vadd.f32 %v1845_v52, %v1701_v46  ;;  %v1321_v52 = vmul.f32 %v4434_v31, %v4372_v22  ;;  %v1108_v46 = vmul.f32 %v4435_v38, %v3573_v15 }
 0x423   : > { %v1663_v51 = vpop.permute.xlu2 %1662 }
 0x424   : > { %v2658_v0 = vpop.eup %2657  ;;  %v1997_v13 = vadd.f32 %v1993_v21, %v1849_v7  ;;  %v1232_v21 = vmul.f32 %v4417_v32, %v4435_v38  ;;  %v1668_v22 = vmul.f32 %v1663_v51, %v4429_v26  ;;  %v4438_v7 = vld [vmem:[#allocation14_spill] sm:$0xff]  ;;  %v1112_v59 = vadd.f32 %v1108_v46, %v960_v5 }
 0x425   : > { %v2195_v37 = vmul.f32 %v2658_v0, %v2187_v54  ;;  %v1156_v54 = vadd.f32 %v1152_v62, %v1008_v1  ;;  %v1380_v51 = vmul.f32 %v4421_v49, %v4438_v7 }
 0x427   : > { %v2199_v10 = vsub.f32 2.0, %v2195_v37 }
 0x429   : > { %v2203_v18 = vmul.f32 %v2658_v0, %v2199_v10  ;;  %v4424_v0 = vld [vmem:[#allocation49_spill] sm:$0xff]  ;;  %v1224_v10 = vmul.f32 %v1219_v39, %v4417_v32  ;;  %v4432_v39 = vld [vmem:[#allocation54_spill] sm:$0xff] }
 0x42a   : > { %v1448_v37 = vmul.f32 %v4425_v53, %v4424_v0  ;;  %v1744_v44 = vmul.f32 %v4433_v29, %v4432_v39  ;;  %v4437_v0 = vld [vmem:[#allocation77_spill] sm:$0xff]  ;;  %v4443_v39 = vld [vmem:[#allocation76_spill] sm:$0xff] }
 0x42b   : > { %v2207_v11 = vmul.f32 %v2203_v18, %v2167_v19  ;;  %v4420_v19 = vld [vmem:[#allocation45_spill] sm:$0xff]  ;;  %v1228_v1 = vadd.f32 %v1224_v10, %v1080_v40 }
 0x42c   : > { %v1811_v36 = vpop.permute.xlu2 %1810  ;;  %v1300_v48 = vmul.f32 %v4421_v49, %v4420_v19 }
 0x42d   : > { %v4025_v58 = vadd.f32 %v2207_v11, %v4418_v47  ;;  %v4431_v11 = vld [vmem:[#allocation40_spill] sm:$0xff]  ;;  %v2660_v47 = vpop.eup %2659  ;;  %v1376_v42 = vadd.f32 %v1372_v27, %v1228_v1  ;;  %v1816_v15 = vmul.f32 %v1811_v36, %v4433_v29 }
 0x42e   : > { %v1304_v18 = vadd.f32 %v1300_v48, %v1156_v54  ;;  %v1173_v8 = vmul.f32 %v4431_v11, %v3677_v20  ;;  %v1520_v20 = vmul.f32 %v1515_v25, %v4425_v53  ;;  %v1088_v48 = vadd.f32 %v1084_v43, %v4414_v35  ;;  %v4436_v54 = vld [vmem:[#allocation57_spill] sm:$0xff]  ;;  %v4440_v43 = vld [vmem:[#allocation16_spill] sm:$0xff] }
 0x42f   : > { %2221 = vrot.lane.b32.xlu1 %v4025_v58, %s2691_s12  ;;  %v2120_v10 = vmul.f32 %v2660_v47, %v4422_v3  ;;  %v1256_v35 = vmul.f32 %v4438_v7, %v4417_v32  ;;  %v1404_v3 = vmul.f32 %v4440_v43, %v4421_v49 }
 0x430   : > { %v1452_v4 = vadd.f32 %v1448_v37, %v1304_v18  ;;  %v1892_v37 = vmul.f32 %v4437_v0, %v4436_v54  ;;  %v1177_v25 = vadd.f32 %v1173_v8, %v1029_v24  ;;  %v1524_v57 = vadd.f32 %v1520_v20, %v1376_v42  ;;  %v4444_v20 = vld [vmem:[#allocation20_spill] sm:$0xff] }
 0x431   : > { %v2173_v18 = vmul.f32 2.0, %v3922_v14  ;;  %v1236_v8 = vadd.f32 %v1232_v21, %v1088_v48  ;;  %v1260_v36 = vadd.f32 %v1256_v35, %v1112_v59  ;;  %v2124_v24 = vsub.f32 2.0, %v2120_v10  ;;  %v4445_v48 = vld [vmem:[#allocation56_spill] sm:$0xff] }
 0x432   : > { %v1600_v33 = vadd.f32 %v1596_v56, %v1452_v4  ;;  %v1469_v56 = vmul.f32 %v4439_v45, %v4379_v61  ;;  %v1672_v32 = vadd.f32 %v1668_v22, %v1524_v57  ;;  %v1325_v27 = vadd.f32 %v1321_v52, %v1177_v25  ;;  %v4442_v61 = vld [vmem:[#allocation59_spill] sm:$0xff]  ;;  %v4446_v22 = vld [vmem:[#allocation21_spill] sm:$0xff] }
 0x433   : > { %v1384_v31 = vadd.f32 %v1380_v51, %v1236_v8  ;;  %v1408_v1 = vadd.f32 %v1404_v3, %v1260_v36  ;;  %v2128_v42 = vmul.f32 %v2660_v47, %v2124_v24  ;;  %v1972_v35 = vmul.f32 %v4437_v0, %v4446_v22  ;;  %v2011_v3 = vpop.permute.xlu1 %2010 }
 0x434   : > { %v1748_v2 = vadd.f32 %v1744_v44, %v1600_v33  ;;  %v2004_v44 = vmul.f32 %v4443_v39, %v4442_v61  ;;  %v1820_v5 = vadd.f32 %v1816_v15, %v1672_v32  ;;  %v1473_v21 = vadd.f32 %v1469_v56, %v1325_v27 }
 0x435   : > { %v2091_v62 = vpop.permute.xlu2 %2090  ;;  %v1996_v57 = vmul.f32 %v3999_v34, %v4437_v0  ;;  %v2084_v45 = vmul.f32 %v4443_v39, %v3999_v34  ;;  %v2025_v34 = vmul.f32 %v3745_v16, %v2011_v3 }
 0x436   : > { %v2105_v19 = vmul.f32 %v3745_v16, %v2091_v62  ;;  %v1896_v11 = vadd.f32 %v1892_v37, %v1748_v2  ;;  %v1824_v37 = vmul.f32 %v4433_v29, %v4444_v20  ;;  %v4447_v2 = vld [vmem:[#allocation50_spill] sm:$0xff] }
 0x437   : > { %v1617_v25 = vmul.f32 %v4447_v2, %v4412_v6  ;;  %v4448_v6 = vld [vmem:[#allocation53_spill] sm:$0xff]  ;;  %v4452_v2 = vld [vmem:[#allocation52_spill] sm:$0xff] }
 0x438   : > { %v2109_v28 = vadd.f32 %v2105_v19, %v1997_v13  ;;  %v4441_v13 = vld [vmem:[#allocation18_spill] sm:$0xff]  ;;  %v1700_v19 = vmul.f32 %v4444_v20, %v4429_v26  ;;  %v2008_v33 = vadd.f32 %v2004_v44, %v1896_v11  ;;  %v1765_v56 = vmul.f32 %v4448_v6, %v4419_v50  ;;  %v4450_v44 = vld [vmem:[#allocation71_spill] sm:$0xff] }
 0x439   : > { %v1552_v4 = vmul.f32 %v4441_v13, %v4425_v53  ;;  %v1676_v52 = vmul.f32 %v4429_v26, %v4441_v13  ;;  %v1621_v47 = vadd.f32 %v1617_v25, %v1473_v21  ;;  %v1914_v24 = vmul.f32 %v4450_v44, %v3816_v30 }
 0x43a   : > { %v2169_v41 = vadd.f32 %v2109_v28, %v3932_v55  ;;  %v1528_v55 = vmul.f32 %v4425_v53, %v4440_v43  ;;  %v1964_v53 = vmul.f32 %v4445_v48, %v4437_v0  ;;  %v1848_v28 = vmul.f32 %v4446_v22, %v4433_v29 }
 0x43b   : > { %v1769_v0 = vadd.f32 %v1765_v56, %v1621_v47 }
 0x43c   : > { %v2177_v40 = vsub.f32 %v2169_v41, %v2173_v18  ;;  %v1532_v54 = vadd.f32 %v1528_v55, %v1384_v31  ;;  %v1968_v26 = vadd.f32 %v1964_v53, %v1820_v5  ;;  %v4449_v55 = vld [vmem:[#allocation55_spill] sm:$0xff] }
 0x43d   : > { %v1913_v13 = vmul.f32 %v4449_v55, %v4423_v12 }
 0x43e   : > { %v2181_v62 = vmul.f32 %v2177_v40, %v3926_v17  ;;  %v2071_v49 = vpop.permute.xlu2 %2070  ;;  %v1556_v17 = vadd.f32 %v1552_v4, %v1408_v1  ;;  %v1680_v10 = vadd.f32 %v1676_v52, %v1532_v54 }
 0x43f   : > { %v2076_v46 = vmul.f32 %v4443_v39, %v2071_v49  ;;  %v1917_v5 = vadd.f32 %v1913_v13, %v1769_v0 }
 0x440   : > { %v2185_v38 = vadd.f32 %v2181_v62, %v3922_v14  ;;  %v1704_v7 = vadd.f32 %v1700_v19, %v1556_v17  ;;  %v2136_v14 = vsub.f32 %v3794_v9, %v2008_v33  ;;  %v1828_v18 = vadd.f32 %v1824_v37, %v1680_v10  ;;  %v4451_v33 = vld [vmem:[#allocation70_spill] sm:$0xff] }
 0x441   : > { %v2080_v15 = vadd.f32 %v2076_v46, %v1968_v26  ;;  %v2029_v1 = vadd.f32 %v2025_v34, %v1917_v5  ;;  %v1918_v48 = vadd.f32 %v1914_v24, %v4451_v33 }
 0x442   : > { %2661 = vrcp.f32 %v2185_v38  ;;  %v2140_v41 = vmul.f32 %v2136_v14, %v2128_v42  ;;  %v1852_v29 = vadd.f32 %v1848_v28, %v1704_v7  ;;  %v1976_v9 = vadd.f32 %v1972_v35, %v1828_v18 }
 0x443   : > { %v2132_v11 = vmul.f32 %v2128_v42, %v2080_v15 }
 0x444   : > { %v2000_v43 = vadd.f32 %v1996_v57, %v1852_v29  ;;  %v2088_v40 = vadd.f32 %v2084_v45, %v1976_v9  ;;  %v2144_v27 = vsub.f32 1.0, %v2140_v41 }
 0x445   : > { %v2176_v61 = vmul.f32 2.0, %v2132_v11  ;;  %v2152_v46 = vmul.f32 %v2140_v41, %v2132_v11 }
 0x446   : > { %v2148_v49 = vmul.f32 %v2144_v27, %v2140_v41 }
 0x447   : > { %v2103_v59 = vpop.permute.xlu2 %2102  ;;  %v2156_v21 = vmul.f32 %v2152_v46, %v2140_v41 }
 0x448   : > { %v2662_v51 = vpop.eup %2661  ;;  %v2108_v8 = vmul.f32 %v4443_v39, %v2103_v59  ;;  %v2160_v54 = vmul.f32 %v2148_v49, %v2088_v40 }
 0x449   : > { %v2193_v32 = vmul.f32 %v2662_v51, %v2185_v38 }
 0x44a   : > { %v2112_v36 = vadd.f32 %v2108_v8, %v2000_v43  ;;  %v2164_v37 = vadd.f32 %v2160_v54, %v2156_v21 }
 0x44b   : > { %v2197_v4 = vsub.f32 2.0, %v2193_v32 }
 0x44c   : > { %v2172_v50 = vadd.f32 %v2112_v36, %v2088_v40  ;;  %v2168_v28 = vmul.f32 %v2164_v37, %v2080_v15 }
 0x44d   : > { %v2201_v62 = vmul.f32 %v2662_v51, %v2197_v4 }
 0x44e   : > { %v2180_v31 = vsub.f32 %v2172_v50, %v2176_v61 }
 0x44f   : > { %v2015_v52 = vpop.permute.xlu2 %2014  ;;  %v2205_v20 = vmul.f32 %v2201_v62, %v3941_v60  ;;  %v2023_v60 = vpop.permute.xlu1 %2022 }
 0x450   : > { %v2184_v19 = vmul.f32 %v2180_v31, %v2148_v49  ;;  %v2026_v12 = vmul.f32 %v3805_v23, %v2015_v52  ;;  %v2028_v22 = vmul.f32 %v4443_v39, %v2023_v60 }
 0x451   : > { %v2209_v16 = vadd.f32 %v2205_v20, %v2029_v1 }
 0x452   : > { %v2188_v53 = vadd.f32 %v2184_v19, %v2132_v11  ;;  %v2030_v38 = vadd.f32 %v2026_v12, %v1918_v48  ;;  %v2032_v25 = vadd.f32 %v2028_v22, %v4452_v2 }
 0x453   : > { %2217 = vrot.lane.b32.xlu2 %v2209_v16, %s2691_s12 }
 0x454   : > { %2663 = vrcp.f32 %v2188_v53  ;;  %v2210_v30 = vadd.f32 %v4002_v63, %v2030_v38 }
 0x456   : > { %2219 = vrot.lane.b32.xlu0 %v2210_v30, %s2691_s12 }
 0x45a   : > { %v2664_v17 = vpop.eup %2663 }
 0x45b   : > { %v2196_v42 = vmul.f32 %v2664_v17, %v2188_v53 }
 0x45d   : > { %v2200_v23 = vsub.f32 2.0, %v2196_v42 }
 0x45f   : > { %v2204_v26 = vmul.f32 %v2664_v17, %v2200_v23 }
 0x461   : > { %v2208_v10 = vmul.f32 %v2204_v26, %v2168_v28 }
 0x463   : > { %v2212_v7 = vadd.f32 %v2208_v10, %v2032_v25 }
 0x465   : > { %2223 = vrot.lane.b32.xlu2 %v2212_v7, %s2691_s12 }
 0x4a1   : > { %v2222_v63 = vpop.permute.xlu1 %2221 }
 0x4a2   : > { %v2231_v14 = vsub.f32 %v4025_v58, %v2222_v63 }
 0x4a4   : > { %v2235_v35 = vmax.f32 %v2231_v14, 1e-08 }
 0x4a6   : > { %2665 = vlog2.f32 %v2235_v35 }
 0x4ac   : > { %v2666_v57 = vpop.eup %2665 }
 0x4ad   : > { %v2242_v47 = vmul.f32 0.6931472, %v2666_v57  ;;  %v2218_v41 = vpop.permute.xlu2 %2217 }
 0x4ae   : > { %v2229_v18 = vsub.f32 %v2209_v16, %v2218_v41 }
 0x4af   : > { %2253 = vrot.lane.b32.xlu2 %v2242_v47, %s2694_s18 }
 0x4b0   : > { %v2233_v39 = vmax.f32 %v2229_v18, 1e-08 }
 0x4b2   : > { %2667 = vlog2.f32 %v2233_v39 }
 0x4b8   : > { %v2668_v15 = vpop.eup %2667 }
 0x4b9   : > { %v2238_v29 = vmul.f32 0.6931472, %v2668_v15 }
 0x4bb   : > { %2249 = vrot.lane.b32.xlu0 %v2238_v29, %s2694_s18 }
 0x4bf   : > { %v2224_v45 = vpop.permute.xlu2 %2223 }
 0x4c0   : > { %v2232_v6 = vsub.f32 %v2212_v7, %v2224_v45 }
 0x4c2   : > { %v2236_v56 = vmax.f32 %v2232_v6, 1e-08 }
 0x4c4   : > { %2669 = vlog2.f32 %v2236_v56 }
 0x4c8   : > { %v2220_v59 = vpop.permute.xlu0 %2219 }
 0x4c9   : > { %v2230_v58 = vsub.f32 %v2210_v30, %v2220_v59 }
 0x4ca   : > { %v2670_v51 = vpop.eup %2669 }
 0x4cb   : > { %v2244_v9 = vmul.f32 0.6931472, %v2670_v51  ;;  %v2234_v43 = vmax.f32 %v2230_v58, 1e-08 }
 0x4cd   : > { %2671 = vlog2.f32 %v2234_v43  ;;  %2255 = vrot.lane.b32.xlu0 %v2244_v9, %s2694_s18 }
 0x4d3   : > { %v2672_v3 = vpop.eup %2671 }
 0x4d4   : > { %v2240_v11 = vmul.f32 0.6931472, %v2672_v3 }
 0x4d6   : > { %2251 = vrot.lane.b32.xlu1 %v2240_v11, %s2694_s18 }
 0x509   : > { %v2254_v32 = vpop.permute.xlu2 %2253 }
 0x50a   : > { %2264 = vst.msk [vmem:[%s334_s21 + $0x10] sm:$0xff] %vm2261_vm3, %v2254_v32 }
 0x52d   : > { %v2250_v8 = vpop.permute.xlu0 %2249 }
 0x52e   : > { %2262 = vst.msk [vmem:[%s334_s21] sm:$0xff] %vm2261_vm3, %v2250_v8 }
 0x53f   : > { %v2256_v40 = vpop.permute.xlu0 %2255 }
 0x540   : > { %2265 = vst.msk [vmem:[%s334_s21 + $0x18] sm:$0xff] %vm2261_vm3, %v2256_v40 }
 0x548   : > { %v2252_v0 = vpop.permute.xlu1 %2251 }
 0x549   : > { %2263 = vst.msk [vmem:[%s334_s21 + $0x8] sm:$0xff] %vm2261_vm3, %v2252_v0 }
 0x54a PF: > { %s19_s30 = sadd.s32 1, %s2680_s30  }
 0x54b   : > { %p16_p4 = scmp.ge.s32.totalorder %s19_s30, 4  }
 0x54d   :  { %18 = sbr.rel (!%p16_p4) target bundleno = 1 (0x1), region = 86 }

</bundles_post_ra>
